<compile_context>
chip_gen: v5e
topology: v5e:2x2
jax: 0.10.0
libtpu: 0.0.40
codegen_flags: <defaults>
</compile_context>

<pallas_src>
import jax
import jax.numpy as jnp
from jax.experimental import pallas as pl
from jax.experimental.pallas import tpu as pltpu


# --------------------------- Pallas kernels ---------------------------------

def conv_pool_kernel(x_ref, w_ref, b_ref, sel_ref, o_ref):
    # x_ref   : (1, H+2, W+2, Cin)   padded NHWC image (one batch element)
    # w_ref   : (9, Cin, Cout)       conv weight, tap-major (kh, kw)
    # b_ref   : (1, Cout)
    # sel_ref : (2*Ho*Wo, Ho*W)      0/1 gather matrix (even cols | odd cols)
    # o_ref   : (1, Ho*Wo, Cout)     compact pooled activation (pre fc1)
    _, Hp, Wp, Cin = x_ref.shape
    H, W = Hp - 2, Wp - 2
    Ho = H // 2
    P = o_ref.shape[1]                      # Ho * Wo
    Cout = w_ref.shape[2]

    # ---- 3x3 conv as 9 accumulated (H*W, Cin) @ (Cin, Cout) MXU matmuls ------
    # Taps gathered with static slices of the padded input; no im2col in HBM.
    acc = None
    for t in range(9):
        dy, dx = t // 3, t % 3
        xs = x_ref[0, dy:dy + H, dx:dx + W, :].reshape(H * W, Cin)   # rows = y*W + x
        d = jnp.dot(xs, w_ref[t], preferred_element_type=jnp.float32)
        acc = d if acc is None else acc + d                          # (H*W, Cout)

    # ---- 2x2 max pool, fully in VMEM, compact output -------------------------
    # vertical pairs: rows y = 2*yo + yp -> tile-aligned reshape, reduce parity.
    vmax = jnp.max(acc.reshape(Ho, 2, W, Cout), axis=1)              # (Ho, W, Cout)
    vmax = vmax.reshape(Ho * W, Cout)                                # rows = yo*W + x
    # horizontal pairs: gather even/odd columns with one MXU matmul, then max.
    g = jnp.dot(sel_ref[...], vmax, preferred_element_type=jnp.float32)  # (2P, Cout)
    pooled = jnp.maximum(g[:P, :], g[P:, :])                         # (P, Cout)

    # bias + ReLU after pooling (identical result: max is monotone, bias is
    # constant per channel) -> 4x fewer elements touched.
    o_ref[0] = jnp.maximum(pooled + b_ref[...], 0.0)


def mlp_kernel(x_ref, w1_ref, b1_ref, w2_ref, b2_ref, w3_ref, b3_ref, o_ref):
    # fused fc1 -> relu -> fc2 -> relu -> fc3 (all weights resident in VMEM)
    h = jnp.dot(x_ref[...], w1_ref[...], preferred_element_type=jnp.float32) + b1_ref[...]
    h = jnp.maximum(h, 0.0)
    h = jnp.dot(h, w2_ref[...], preferred_element_type=jnp.float32) + b2_ref[...]
    h = jnp.maximum(h, 0.0)
    o_ref[...] = jnp.dot(h, w3_ref[...], preferred_element_type=jnp.float32) + b3_ref[...]


# --------------------------- wrappers ----------------------------------------

def conv_pool(x_pad, w_taps, b_conv, sel):
    N, Hp, Wp, Cin = x_pad.shape
    H, W = Hp - 2, Wp - 2
    Ho, Wo = H // 2, W // 2
    Cout = w_taps.shape[2]
    P = Ho * Wo
    return pl.pallas_call(
        conv_pool_kernel,
        out_shape=jax.ShapeDtypeStruct((N, P, Cout), jnp.float32),
        grid=(N,),
        in_specs=[
            pl.BlockSpec((1, Hp, Wp, Cin), lambda n: (n, 0, 0, 0)),
            pl.BlockSpec((9, Cin, Cout), lambda n: (0, 0, 0)),
            pl.BlockSpec((1, Cout), lambda n: (0, 0)),
            pl.BlockSpec((2 * P, Ho * W), lambda n: (0, 0)),
        ],
        out_specs=pl.BlockSpec((1, P, Cout), lambda n: (n, 0, 0)),
        compiler_params=pltpu.CompilerParams(dimension_semantics=("parallel",)),
    )(x_pad, w_taps, b_conv, sel)


def prepare_params(params, H, W):
    """One-time host-side weight re-layout (zero runtime cost)."""
    (w_conv, b_conv, w1, b1, w2, b2, w3, b3) = params
    Cout, Cin, _, _ = w_conv.shape
    Ho, Wo = H // 2, W // 2
    F = w1.shape[1]
    P = Ho * Wo

    # conv weight: OIHW -> (kh, kw, cin, cout) -> (9, Cin, Cout), tap-major.
    w_taps = jnp.transpose(w_conv, (2, 3, 1, 0)).reshape(9, Cin, Cout)

    # fc1 weight: torch flattens the pooled tensor in (c, yo, xo) order; the
    # kernel emits rows ordered (yo, xo) with channels in lanes -> permute once.
    w1p = jnp.transpose(w1.reshape(Cout, Ho, Wo, F), (1, 2, 0, 3)).reshape(P * Cout, F)

    # horizontal-pair gather matrix: row p picks column x = 2*xo of row-block yo,
    # row P+p picks x = 2*xo + 1 (vmax rows are ordered q = yo*W + x).
    p = jnp.arange(P)
    yo, xo = p // Wo, p % Wo
    q_even = yo * W + 2 * xo
    sel = jnp.zeros((2 * P, Ho * W), jnp.float32)
    sel = sel.at[p, q_even].set(1.0).at[P + p, q_even + 1].set(1.0)

    return (w_taps, b_conv.reshape(1, Cout), sel, w1p, b1, w2, b2, w3, b3)


def cnn_forward(x_nchw, prep):
    (w_taps, b_conv, sel, w1p, b1, w2, b2, w3, b3) = prep
    N, Cin, H, W = x_nchw.shape
    Cout = w_taps.shape[2]
    Ho, Wo = H // 2, W // 2

    # input prep (tiny): NCHW -> NHWC, zero-pad for 'same' conv.
    x = jnp.transpose(x_nchw, (0, 2, 3, 1))
    x_pad = jnp.pad(x, ((0, 0), (1, 1), (1, 1), (0, 0)))

    # ---- Pallas: conv + 2x2 maxpool + bias + relu, fused, grid over batch ----
    pooled = conv_pool(x_pad, w_taps, b_conv, sel)     # (N, Ho*Wo, Cout)

    # free, transpose-less flatten (row-major, matches w1p's row order).
    flat = pooled.reshape(N, Ho * Wo * Cout)

    # dropout: eval-mode identity

    # ---- Pallas: fused MLP head ----
    out = pl.pallas_call(
        mlp_kernel,
        out_shape=jax.ShapeDtypeStruct((N, 1), jnp.float32),
    )(flat, w1p, b1, w2, b2, w3, b3)
    return out


# --------------------------- reference (plain JAX) ---------------------------

def reference_forward(x_nchw, params):
    (w_conv, b_conv, w1, b1, w2, b2, w3, b3) = params
    conv = jax.lax.conv_general_dilated(
        x_nchw, w_conv, window_strides=(1, 1), padding="SAME",
        dimension_numbers=("NCHW", "OIHW", "NCHW"))
    conv = jax.nn.relu(conv + b_conv[None, :, None, None])
    N, C, H, W = conv.shape
    pooled = conv.reshape(N, C, H // 2, 2, W // 2, 2).max(axis=(3, 5))
    flat = pooled.reshape(N, -1)
    h = jax.nn.relu(flat @ w1 + b1)
    h = jax.nn.relu(h @ w2 + b2)
    return h @ w3 + b3


# --------------------------- params ------------------------------------------

def init_params(key, Cin, H, W):
    Cout = 32
    flattened = Cout * (H // 2) * (W // 2)
    ks = jax.random.split(key, 8)
    w_conv = jax.random.normal(ks[0], (Cout, Cin, 3, 3), jnp.float32) * 0.2
    b_conv = jax.random.normal(ks[1], (Cout,), jnp.float32) * 0.1
    w1 = jax.random.normal(ks[2], (flattened, 64), jnp.float32) / jnp.sqrt(flattened)
    b1 = jax.random.normal(ks[3], (1, 64), jnp.float32) * 0.1
    w2 = jax.random.normal(ks[4], (64, 32), jnp.float32) / jnp.sqrt(64.0)
    b2 = jax.random.normal(ks[5], (1, 32), jnp.float32) * 0.1
    w3 = jax.random.normal(ks[6], (32, 1), jnp.float32) / jnp.sqrt(32.0)
    b3 = jax.random.normal(ks[7], (1, 1), jnp.float32) * 0.1
    return (w_conv, b_conv, w1, b1, w2, b2, w3, b3)


# --------------------------- main ---------------------------------------------

if __name__ == "__main__":
    key = jax.random.PRNGKey(0)
    k_x, k_p = jax.random.split(key)

    N, Cin, H, W = 2, 4, 16, 16          # small shapes consistent with the module
    x = jax.random.normal(k_x, (N, Cin, H, W), jnp.float32)
    params = init_params(k_p, Cin, H, W)
    prep = prepare_params(params, H, W)   # one-time host-side weight re-layout

    out = jax.jit(cnn_forward)(x, prep)
    out = jax.block_until_ready(out)

    ref = jax.block_until_ready(reference_forward(x, params))

    assert out.shape == (N, 1), out.shape
    assert jnp.allclose(out, ref, rtol=1e-2, atol=1e-2), (out, ref)

    print("KERNEL_OK")
</pallas_src>

<mosaic_0001>
module attributes {stable_mosaic.version = 11 : i64} {
  func.func @conv_pool_kernel(%arg0: i32, %arg1: memref<1x18x18x4xf32, #tpu.memory_space<vmem>>, %arg2: memref<9x4x32xf32, #tpu.memory_space<vmem>>, %arg3: memref<1x32xf32, #tpu.memory_space<vmem>>, %arg4: memref<128x128xf32, #tpu.memory_space<vmem>>, %arg5: memref<1x64x32xf32, #tpu.memory_space<vmem>>) attributes {dimension_semantics = [#tpu.dimension_semantics<parallel>], iteration_bounds = array<i64: 2>, scalar_prefetch = 0 : i64, scratch_operands = 0 : i64, tpu.core_type = #tpu.core_type<tc>, window_params = [{transform_indices = @transform_0, window_bounds = array<i64: 1, 18, 18, 4>}, {pipeline_mode = #tpu.pipeline_mode<synchronous>, transform_indices = @transform_1, window_bounds = array<i64: 9, 4, 32>}, {pipeline_mode = #tpu.pipeline_mode<synchronous>, transform_indices = @transform_2, window_bounds = array<i64: 1, 32>}, {pipeline_mode = #tpu.pipeline_mode<synchronous>, transform_indices = @transform_3, window_bounds = array<i64: 128, 128>}, {transform_indices = @transform_4, window_bounds = array<i64: 1, 64, 32>}]} {
    %c0 = arith.constant 0 : index
    %c0_0 = arith.constant 0 : index
    %c0_1 = arith.constant 0 : index
    %c0_2 = arith.constant 0 : index
    %0 = vector.load %arg1[%c0, %c0_0, %c0_1, %c0_2] : memref<1x18x18x4xf32, #tpu.memory_space<vmem>>, vector<1x16x16x4xf32>
    %1 = vector.shape_cast %0 : vector<1x16x16x4xf32> to vector<16x16x4xf32>
    %2 = vector.shape_cast %1 : vector<16x16x4xf32> to vector<256x4xf32>
    %c0_3 = arith.constant 0 : index
    %c0_4 = arith.constant 0 : index
    %c0_5 = arith.constant 0 : index
    %3 = vector.load %arg2[%c0_3, %c0_4, %c0_5] : memref<9x4x32xf32, #tpu.memory_space<vmem>>, vector<1x4x32xf32>
    %4 = vector.shape_cast %3 : vector<1x4x32xf32> to vector<4x32xf32>
    %cst = arith.constant dense<0.000000e+00> : vector<256x32xf32>
    %5 = tpu.matmul %2, %4, %cst {dimension_numbers = #tpu.dot_dimension_numbers<[1], [0], [0], [1], [0, 0, 1, 1], [], []>} : vector<256x4xf32>, vector<4x32xf32>, vector<256x32xf32> -> vector<256x32xf32>
    %c0_6 = arith.constant 0 : index
    %c0_7 = arith.constant 0 : index
    %c1 = arith.constant 1 : index
    %c0_8 = arith.constant 0 : index
    %6 = vector.load %arg1[%c0_6, %c0_7, %c1, %c0_8] : memref<1x18x18x4xf32, #tpu.memory_space<vmem>>, vector<1x16x16x4xf32>
    %7 = vector.shape_cast %6 : vector<1x16x16x4xf32> to vector<16x16x4xf32>
    %8 = vector.shape_cast %7 : vector<16x16x4xf32> to vector<256x4xf32>
    %c1_9 = arith.constant 1 : index
    %c0_10 = arith.constant 0 : index
    %c0_11 = arith.constant 0 : index
    %9 = vector.load %arg2[%c1_9, %c0_10, %c0_11] : memref<9x4x32xf32, #tpu.memory_space<vmem>>, vector<1x4x32xf32>
    %10 = vector.shape_cast %9 : vector<1x4x32xf32> to vector<4x32xf32>
    %cst_12 = arith.constant dense<0.000000e+00> : vector<256x32xf32>
    %11 = tpu.matmul %8, %10, %cst_12 {dimension_numbers = #tpu.dot_dimension_numbers<[1], [0], [0], [1], [0, 0, 1, 1], [], []>} : vector<256x4xf32>, vector<4x32xf32>, vector<256x32xf32> -> vector<256x32xf32>
    %12 = arith.addf %5, %11 : vector<256x32xf32>
    %c0_13 = arith.constant 0 : index
    %c0_14 = arith.constant 0 : index
    %c2 = arith.constant 2 : index
    %c0_15 = arith.constant 0 : index
    %13 = vector.load %arg1[%c0_13, %c0_14, %c2, %c0_15] : memref<1x18x18x4xf32, #tpu.memory_space<vmem>>, vector<1x16x16x4xf32>
    %14 = vector.shape_cast %13 : vector<1x16x16x4xf32> to vector<16x16x4xf32>
    %15 = vector.shape_cast %14 : vector<16x16x4xf32> to vector<256x4xf32>
    %c2_16 = arith.constant 2 : index
    %c0_17 = arith.constant 0 : index
    %c0_18 = arith.constant 0 : index
    %16 = vector.load %arg2[%c2_16, %c0_17, %c0_18] : memref<9x4x32xf32, #tpu.memory_space<vmem>>, vector<1x4x32xf32>
    %17 = vector.shape_cast %16 : vector<1x4x32xf32> to vector<4x32xf32>
    %cst_19 = arith.constant dense<0.000000e+00> : vector<256x32xf32>
    %18 = tpu.matmul %15, %17, %cst_19 {dimension_numbers = #tpu.dot_dimension_numbers<[1], [0], [0], [1], [0, 0, 1, 1], [], []>} : vector<256x4xf32>, vector<4x32xf32>, vector<256x32xf32> -> vector<256x32xf32>
    %19 = arith.addf %12, %18 : vector<256x32xf32>
    %c0_20 = arith.constant 0 : index
    %c1_21 = arith.constant 1 : index
    %c0_22 = arith.constant 0 : index
    %c0_23 = arith.constant 0 : index
    %20 = vector.load %arg1[%c0_20, %c1_21, %c0_22, %c0_23] : memref<1x18x18x4xf32, #tpu.memory_space<vmem>>, vector<1x16x16x4xf32>
    %21 = vector.shape_cast %20 : vector<1x16x16x4xf32> to vector<16x16x4xf32>
    %22 = vector.shape_cast %21 : vector<16x16x4xf32> to vector<256x4xf32>
    %c3 = arith.constant 3 : index
    %c0_24 = arith.constant 0 : index
    %c0_25 = arith.constant 0 : index
    %23 = vector.load %arg2[%c3, %c0_24, %c0_25] : memref<9x4x32xf32, #tpu.memory_space<vmem>>, vector<1x4x32xf32>
    %24 = vector.shape_cast %23 : vector<1x4x32xf32> to vector<4x32xf32>
    %cst_26 = arith.constant dense<0.000000e+00> : vector<256x32xf32>
    %25 = tpu.matmul %22, %24, %cst_26 {dimension_numbers = #tpu.dot_dimension_numbers<[1], [0], [0], [1], [0, 0, 1, 1], [], []>} : vector<256x4xf32>, vector<4x32xf32>, vector<256x32xf32> -> vector<256x32xf32>
    %26 = arith.addf %19, %25 : vector<256x32xf32>
    %c0_27 = arith.constant 0 : index
    %c1_28 = arith.constant 1 : index
    %c1_29 = arith.constant 1 : index
    %c0_30 = arith.constant 0 : index
    %27 = vector.load %arg1[%c0_27, %c1_28, %c1_29, %c0_30] : memref<1x18x18x4xf32, #tpu.memory_space<vmem>>, vector<1x16x16x4xf32>
    %28 = vector.shape_cast %27 : vector<1x16x16x4xf32> to vector<16x16x4xf32>
    %29 = vector.shape_cast %28 : vector<16x16x4xf32> to vector<256x4xf32>
    %c4 = arith.constant 4 : index
    %c0_31 = arith.constant 0 : index
    %c0_32 = arith.constant 0 : index
    %30 = vector.load %arg2[%c4, %c0_31, %c0_32] : memref<9x4x32xf32, #tpu.memory_space<vmem>>, vector<1x4x32xf32>
    %31 = vector.shape_cast %30 : vector<1x4x32xf32> to vector<4x32xf32>
    %cst_33 = arith.constant dense<0.000000e+00> : vector<256x32xf32>
    %32 = tpu.matmul %29, %31, %cst_33 {dimension_numbers = #tpu.dot_dimension_numbers<[1], [0], [0], [1], [0, 0, 1, 1], [], []>} : vector<256x4xf32>, vector<4x32xf32>, vector<256x32xf32> -> vector<256x32xf32>
    %33 = arith.addf %26, %32 : vector<256x32xf32>
    %c0_34 = arith.constant 0 : index
    %c1_35 = arith.constant 1 : index
    %c2_36 = arith.constant 2 : index
    %c0_37 = arith.constant 0 : index
    %34 = vector.load %arg1[%c0_34, %c1_35, %c2_36, %c0_37] : memref<1x18x18x4xf32, #tpu.memory_space<vmem>>, vector<1x16x16x4xf32>
    %35 = vector.shape_cast %34 : vector<1x16x16x4xf32> to vector<16x16x4xf32>
    %36 = vector.shape_cast %35 : vector<16x16x4xf32> to vector<256x4xf32>
    %c5 = arith.constant 5 : index
    %c0_38 = arith.constant 0 : index
    %c0_39 = arith.constant 0 : index
    %37 = vector.load %arg2[%c5, %c0_38, %c0_39] : memref<9x4x32xf32, #tpu.memory_space<vmem>>, vector<1x4x32xf32>
    %38 = vector.shape_cast %37 : vector<1x4x32xf32> to vector<4x32xf32>
    %cst_40 = arith.constant dense<0.000000e+00> : vector<256x32xf32>
    %39 = tpu.matmul %36, %38, %cst_40 {dimension_numbers = #tpu.dot_dimension_numbers<[1], [0], [0], [1], [0, 0, 1, 1], [], []>} : vector<256x4xf32>, vector<4x32xf32>, vector<256x32xf32> -> vector<256x32xf32>
    %40 = arith.addf %33, %39 : vector<256x32xf32>
    %c0_41 = arith.constant 0 : index
    %c2_42 = arith.constant 2 : index
    %c0_43 = arith.constant 0 : index
    %c0_44 = arith.constant 0 : index
    %41 = vector.load %arg1[%c0_41, %c2_42, %c0_43, %c0_44] : memref<1x18x18x4xf32, #tpu.memory_space<vmem>>, vector<1x16x16x4xf32>
    %42 = vector.shape_cast %41 : vector<1x16x16x4xf32> to vector<16x16x4xf32>
    %43 = vector.shape_cast %42 : vector<16x16x4xf32> to vector<256x4xf32>
    %c6 = arith.constant 6 : index
    %c0_45 = arith.constant 0 : index
    %c0_46 = arith.constant 0 : index
    %44 = vector.load %arg2[%c6, %c0_45, %c0_46] : memref<9x4x32xf32, #tpu.memory_space<vmem>>, vector<1x4x32xf32>
    %45 = vector.shape_cast %44 : vector<1x4x32xf32> to vector<4x32xf32>
    %cst_47 = arith.constant dense<0.000000e+00> : vector<256x32xf32>
    %46 = tpu.matmul %43, %45, %cst_47 {dimension_numbers = #tpu.dot_dimension_numbers<[1], [0], [0], [1], [0, 0, 1, 1], [], []>} : vector<256x4xf32>, vector<4x32xf32>, vector<256x32xf32> -> vector<256x32xf32>
    %47 = arith.addf %40, %46 : vector<256x32xf32>
    %c0_48 = arith.constant 0 : index
    %c2_49 = arith.constant 2 : index
    %c1_50 = arith.constant 1 : index
    %c0_51 = arith.constant 0 : index
    %48 = vector.load %arg1[%c0_48, %c2_49, %c1_50, %c0_51] : memref<1x18x18x4xf32, #tpu.memory_space<vmem>>, vector<1x16x16x4xf32>
    %49 = vector.shape_cast %48 : vector<1x16x16x4xf32> to vector<16x16x4xf32>
    %50 = vector.shape_cast %49 : vector<16x16x4xf32> to vector<256x4xf32>
    %c7 = arith.constant 7 : index
    %c0_52 = arith.constant 0 : index
    %c0_53 = arith.constant 0 : index
    %51 = vector.load %arg2[%c7, %c0_52, %c0_53] : memref<9x4x32xf32, #tpu.memory_space<vmem>>, vector<1x4x32xf32>
    %52 = vector.shape_cast %51 : vector<1x4x32xf32> to vector<4x32xf32>
    %cst_54 = arith.constant dense<0.000000e+00> : vector<256x32xf32>
    %53 = tpu.matmul %50, %52, %cst_54 {dimension_numbers = #tpu.dot_dimension_numbers<[1], [0], [0], [1], [0, 0, 1, 1], [], []>} : vector<256x4xf32>, vector<4x32xf32>, vector<256x32xf32> -> vector<256x32xf32>
    %54 = arith.addf %47, %53 : vector<256x32xf32>
    %c0_55 = arith.constant 0 : index
    %c2_56 = arith.constant 2 : index
    %c2_57 = arith.constant 2 : index
    %c0_58 = arith.constant 0 : index
    %55 = vector.load %arg1[%c0_55, %c2_56, %c2_57, %c0_58] : memref<1x18x18x4xf32, #tpu.memory_space<vmem>>, vector<1x16x16x4xf32>
    %56 = vector.shape_cast %55 : vector<1x16x16x4xf32> to vector<16x16x4xf32>
    %57 = vector.shape_cast %56 : vector<16x16x4xf32> to vector<256x4xf32>
    %c8 = arith.constant 8 : index
    %c0_59 = arith.constant 0 : index
    %c0_60 = arith.constant 0 : index
    %58 = vector.load %arg2[%c8, %c0_59, %c0_60] : memref<9x4x32xf32, #tpu.memory_space<vmem>>, vector<1x4x32xf32>
    %59 = vector.shape_cast %58 : vector<1x4x32xf32> to vector<4x32xf32>
    %cst_61 = arith.constant dense<0.000000e+00> : vector<256x32xf32>
    %60 = tpu.matmul %57, %59, %cst_61 {dimension_numbers = #tpu.dot_dimension_numbers<[1], [0], [0], [1], [0, 0, 1, 1], [], []>} : vector<256x4xf32>, vector<4x32xf32>, vector<256x32xf32> -> vector<256x32xf32>
    %61 = arith.addf %54, %60 : vector<256x32xf32>
    %62 = vector.shape_cast %61 : vector<256x32xf32> to vector<8x2x16x32xf32>
    %cst_62 = arith.constant dense<0xFF800000> : vector<8x16x32xf32>
    %63 = vector.multi_reduction <maximumf>, %62, %cst_62 [1] : vector<8x2x16x32xf32> to vector<8x16x32xf32>
    %64 = vector.shape_cast %63 : vector<8x16x32xf32> to vector<128x32xf32>
    %c0_63 = arith.constant 0 : index
    %c0_64 = arith.constant 0 : index
    %65 = vector.load %arg4[%c0_63, %c0_64] : memref<128x128xf32, #tpu.memory_space<vmem>>, vector<128x128xf32>
    %cst_65 = arith.constant dense<0.000000e+00> : vector<128x32xf32>
    %66 = tpu.matmul %65, %64, %cst_65 {dimension_numbers = #tpu.dot_dimension_numbers<[1], [0], [0], [1], [0, 0, 1, 1], [], []>} : vector<128x128xf32>, vector<128x32xf32>, vector<128x32xf32> -> vector<128x32xf32>
    %67 = vector.extract_strided_slice %66 {offsets = [0, 0], sizes = [64, 32], strides = [1, 1]} : vector<128x32xf32> to vector<64x32xf32>
    %68 = vector.extract_strided_slice %66 {offsets = [64, 0], sizes = [64, 32], strides = [1, 1]} : vector<128x32xf32> to vector<64x32xf32>
    %69 = arith.maximumf %67, %68 : vector<64x32xf32>
    %c0_66 = arith.constant 0 : index
    %c0_67 = arith.constant 0 : index
    %70 = vector.load %arg3[%c0_66, %c0_67] : memref<1x32xf32, #tpu.memory_space<vmem>>, vector<1x32xf32>
    %71 = vector.broadcast %70 : vector<1x32xf32> to vector<64x32xf32>
    %72 = arith.addf %69, %71 : vector<64x32xf32>
    %cst_68 = arith.constant 0.000000e+00 : f32
    %73 = vector.broadcast %cst_68 : f32 to vector<64x32xf32>
    %74 = arith.maximumf %72, %73 : vector<64x32xf32>
    %c0_69 = arith.constant 0 : index
    %c0_70 = arith.constant 0 : index
    %c0_71 = arith.constant 0 : index
    %75 = vector.load %arg5[%c0_69, %c0_70, %c0_71] : memref<1x64x32xf32, #tpu.memory_space<vmem>>, vector<1x64x32xf32>
    %76 = vector.shape_cast %75 : vector<1x64x32xf32> to vector<64x32xf32>
    %77 = vector.shape_cast %74 : vector<64x32xf32> to vector<1x64x32xf32>
    tpu.vector_store %arg5[%c0_69, %c0_70, %c0_71], %77 {strides = array<i32>} : memref<1x64x32xf32, #tpu.memory_space<vmem>>, vector<1x64x32xf32>,
    return
  }
  func.func @transform_0(%arg0: i32) -> (i32, i32, i32, i32) {
    %c0_i32 = arith.constant 0 : i32
    %c0_i32_0 = arith.constant 0 : i32
    %c0_i32_1 = arith.constant 0 : i32
    %c0_i32_2 = arith.constant 0 : i32
    return %arg0, %c0_i32, %c0_i32_0, %c0_i32_1 : i32, i32, i32, i32
  }
  func.func @transform_1(%arg0: i32) -> (i32, i32, i32) {
    %c0_i32 = arith.constant 0 : i32
    %c0_i32_0 = arith.constant 0 : i32
    %c0_i32_1 = arith.constant 0 : i32
    %c0_i32_2 = arith.constant 0 : i32
    return %c0_i32, %c0_i32_0, %c0_i32_1 : i32, i32, i32
  }
  func.func @transform_2(%arg0: i32) -> (i32, i32) {
    %c0_i32 = arith.constant 0 : i32
    %c0_i32_0 = arith.constant 0 : i32
    %c0_i32_1 = arith.constant 0 : i32
    return %c0_i32, %c0_i32_0 : i32, i32
  }
  func.func @transform_3(%arg0: i32) -> (i32, i32) {
    %c0_i32 = arith.constant 0 : i32
    %c0_i32_0 = arith.constant 0 : i32
    %c0_i32_1 = arith.constant 0 : i32
    return %c0_i32, %c0_i32_0 : i32, i32
  }
  func.func @transform_4(%arg0: i32) -> (i32, i32, i32) {
    %c0_i32 = arith.constant 0 : i32
    %c0_i32_0 = arith.constant 0 : i32
    %c0_i32_1 = arith.constant 0 : i32
    return %arg0, %c0_i32, %c0_i32_0 : i32, i32, i32
  }
}

module attributes {stable_mosaic.version = 11 : i64} {
  func.func @mlp_kernel(%arg0: memref<2x2048xf32, #tpu.memory_space<vmem>>, %arg1: memref<2048x64xf32, #tpu.memory_space<vmem>>, %arg2: memref<1x64xf32, #tpu.memory_space<vmem>>, %arg3: memref<64x32xf32, #tpu.memory_space<vmem>>, %arg4: memref<1x32xf32, #tpu.memory_space<vmem>>, %arg5: memref<32x1xf32, #tpu.memory_space<vmem>>, %arg6: memref<1x1xf32, #tpu.memory_space<vmem>>, %arg7: memref<2x1xf32, #tpu.memory_space<vmem>>) attributes {dimension_semantics = [], scalar_prefetch = 0 : i64, scratch_operands = 0 : i64, tpu.core_type = #tpu.core_type<tc>} {
    %c0 = arith.constant 0 : index
    %c0_0 = arith.constant 0 : index
    %0 = vector.load %arg0[%c0, %c0_0] : memref<2x2048xf32, #tpu.memory_space<vmem>>, vector<2x2048xf32>
    %c0_1 = arith.constant 0 : index
    %c0_2 = arith.constant 0 : index
    %1 = vector.load %arg1[%c0_1, %c0_2] : memref<2048x64xf32, #tpu.memory_space<vmem>>, vector<2048x64xf32>
    %cst = arith.constant dense<0.000000e+00> : vector<2x64xf32>
    %2 = tpu.matmul %0, %1, %cst {dimension_numbers = #tpu.dot_dimension_numbers<[1], [0], [0], [1], [0, 0, 1, 1], [], []>} : vector<2x2048xf32>, vector<2048x64xf32>, vector<2x64xf32> -> vector<2x64xf32>
    %c0_3 = arith.constant 0 : index
    %c0_4 = arith.constant 0 : index
    %3 = vector.load %arg2[%c0_3, %c0_4] : memref<1x64xf32, #tpu.memory_space<vmem>>, vector<1x64xf32>
    %4 = vector.broadcast %3 : vector<1x64xf32> to vector<2x64xf32>
    %5 = arith.addf %2, %4 : vector<2x64xf32>
    %cst_5 = arith.constant 0.000000e+00 : f32
    %6 = vector.broadcast %cst_5 : f32 to vector<2x64xf32>
    %7 = arith.maximumf %5, %6 : vector<2x64xf32>
    %c0_6 = arith.constant 0 : index
    %c0_7 = arith.constant 0 : index
    %8 = vector.load %arg3[%c0_6, %c0_7] : memref<64x32xf32, #tpu.memory_space<vmem>>, vector<64x32xf32>
    %cst_8 = arith.constant dense<0.000000e+00> : vector<2x32xf32>
    %9 = tpu.matmul %7, %8, %cst_8 {dimension_numbers = #tpu.dot_dimension_numbers<[1], [0], [0], [1], [0, 0, 1, 1], [], []>} : vector<2x64xf32>, vector<64x32xf32>, vector<2x32xf32> -> vector<2x32xf32>
    %c0_9 = arith.constant 0 : index
    %c0_10 = arith.constant 0 : index
    %10 = vector.load %arg4[%c0_9, %c0_10] : memref<1x32xf32, #tpu.memory_space<vmem>>, vector<1x32xf32>
    %11 = vector.broadcast %10 : vector<1x32xf32> to vector<2x32xf32>
    %12 = arith.addf %9, %11 : vector<2x32xf32>
    %cst_11 = arith.constant 0.000000e+00 : f32
    %13 = vector.broadcast %cst_11 : f32 to vector<2x32xf32>
    %14 = arith.maximumf %12, %13 : vector<2x32xf32>
    %c0_12 = arith.constant 0 : index
    %c0_13 = arith.constant 0 : index
    %15 = vector.load %arg5[%c0_12, %c0_13] : memref<32x1xf32, #tpu.memory_space<vmem>>, vector<32x1xf32>
    %cst_14 = arith.constant dense<0.000000e+00> : vector<2x1xf32>
    %16 = tpu.matmul %14, %15, %cst_14 {dimension_numbers = #tpu.dot_dimension_numbers<[1], [0], [0], [1], [0, 0, 1, 1], [], []>} : vector<2x32xf32>, vector<32x1xf32>, vector<2x1xf32> -> vector<2x1xf32>
    %c0_15 = arith.constant 0 : index
    %c0_16 = arith.constant 0 : index
    %17 = vector.load %arg6[%c0_15, %c0_16] : memref<1x1xf32, #tpu.memory_space<vmem>>, vector<1x1xf32>
    %18 = vector.broadcast %17 : vector<1x1xf32> to vector<2x1xf32>
    %19 = arith.addf %16, %18 : vector<2x1xf32>
    %c0_17 = arith.constant 0 : index
    %c0_18 = arith.constant 0 : index
    %20 = vector.load %arg7[%c0_17, %c0_18] : memref<2x1xf32, #tpu.memory_space<vmem>>, vector<2x1xf32>
    tpu.vector_store %arg7[%c0_17, %c0_18], %19 {strides = array<i32>} : memref<2x1xf32, #tpu.memory_space<vmem>>, vector<2x1xf32>,
    return
  }
}

</mosaic_0001>

<bundles_post_ra>
// kernel: cnn_forward.3
= control target key start
LH: loop header
LB: loop body
LE: loop exit
PB: predicated region body
PF: predicated region fallthrough
CT: control target
= control target key end

     0   :  { %vm666_vm0 = vcmask 523264   ;;  %vm699_vm1 = vcmask 261120   ;;  %vm723_vm2 = vcmask 1024   ;;  %s1620_s1 = inlined_call_operand.vmem [shape: f32[2048,64], index: 1, kind: input, shape index: {}]   ;;  %s1621_s0 = inlined_call_operand.vmem [shape: f32[2,2048], index: 0, kind: input, shape index: {}]   ;;  %s1622_s2 = inlined_call_operand.vmem [shape: f32[1,64], index: 2, kind: input, shape index: {}]   ;;  %s1623_s4 = inlined_call_operand.vmem [shape: f32[1,32], index: 4, kind: input, shape index: {}]   ;;  %s1624_s3 = inlined_call_operand.vmem [shape: f32[64,32], index: 3, kind: input, shape index: {}]   ;;  %s1625_s5 = inlined_call_operand.vmem [shape: f32[32,1], index: 5, kind: input, shape index: {}]   ;;  %s1626_s6 = inlined_call_operand.<no memory space> [shape: f32[1,1], index: 6, kind: input, shape index: {}]   ;;  %s1627_s7 = inlined_call_operand.vmem [shape: f32[2,1], index: 7, kind: output, shape index: {}]  }
   0x1   :  { %v47_v0 = vld [vmem:[%s1620_s1 + $0x78] sm:$0xff]  ;;  %v46_v2 = vld [vmem:[%s1620_s1 + $0x70] sm:$0xff]  ;;  %v45_v6 = vld [vmem:[%s1620_s1 + $0x68] sm:$0xff] }
   0x2   :  { %v79_v1 = vld [vmem:[%s1620_s1 + $0x178] sm:$0xff]  ;;  %333 = vmatpush.msra.mxu0 %v47_v0  ;;  %v78_v4 = vld [vmem:[%s1620_s1 + $0x170] sm:$0xff]  ;;  %v77_v8 = vld [vmem:[%s1620_s1 + $0x168] sm:$0xff] }
   0x3   :  { %373 = vmatpush.msra.mxu2 %v79_v1  ;;  %v63_v3 = vld [vmem:[%s1620_s1 + $0xf8] sm:$0xff]  ;;  %v62_v7 = vld [vmem:[%s1620_s1 + $0xf0] sm:$0xff]  ;;  %v61_v10 = vld [vmem:[%s1620_s1 + $0xe8] sm:$0xff] }
   0x4   :  { %v95_v5 = vld [vmem:[%s1620_s1 + $0x1f8] sm:$0xff]  ;;  %353 = vmatpush.msra.mxu1 %v63_v3  ;;  %334 = vmatpush.msra.mxu0 %v46_v2  ;;  %v94_v9 = vld [vmem:[%s1620_s1 + $0x1f0] sm:$0xff]  ;;  %v44_v11 = vld [vmem:[%s1620_s1 + $0x60] sm:$0xff] }
   0x5   :  { %393 = vmatpush.msra.mxu3 %v95_v5  ;;  %374 = vmatpush.msra.mxu2 %v78_v4  ;;  %v76_v12 = vld [vmem:[%s1620_s1 + $0x160] sm:$0xff]  ;;  %v93_v13 = vld [vmem:[%s1620_s1 + $0x1e8] sm:$0xff]  ;;  %v43_v16 = vld [vmem:[%s1620_s1 + $0x58] sm:$0xff] }
   0x6   :  { %354 = vmatpush.msra.mxu1 %v62_v7  ;;  %335 = vmatpush.msra.mxu0 %v45_v6  ;;  %v60_v14 = vld [vmem:[%s1620_s1 + $0xe0] sm:$0xff]  ;;  %v75_v17 = vld [vmem:[%s1620_s1 + $0x158] sm:$0xff]  ;;  %v42_v20 = vld [vmem:[%s1620_s1 + $0x50] sm:$0xff] }
   0x7   :  { %394 = vmatpush.msra.mxu3 %v94_v9  ;;  %375 = vmatpush.msra.mxu2 %v77_v8  ;;  %v92_v15 = vld [vmem:[%s1620_s1 + $0x1e0] sm:$0xff]  ;;  %v59_v18 = vld [vmem:[%s1620_s1 + $0xd8] sm:$0xff]  ;;  %v74_v21 = vld [vmem:[%s1620_s1 + $0x150] sm:$0xff] }
   0x8   :  { %355 = vmatpush.msra.mxu1 %v61_v10  ;;  %336 = vmatpush.msra.mxu0 %v44_v11  ;;  %v91_v19 = vld [vmem:[%s1620_s1 + $0x1d8] sm:$0xff]  ;;  %v58_v22 = vld [vmem:[%s1620_s1 + $0xd0] sm:$0xff]  ;;  %v41_v24 = vld [vmem:[%s1620_s1 + $0x48] sm:$0xff] }
   0x9   :  { %395 = vmatpush.msra.mxu3 %v93_v13  ;;  %376 = vmatpush.msra.mxu2 %v76_v12  ;;  %v90_v23 = vld [vmem:[%s1620_s1 + $0x1d0] sm:$0xff]  ;;  %v73_v25 = vld [vmem:[%s1620_s1 + $0x148] sm:$0xff]  ;;  %v40_v28 = vld [vmem:[%s1620_s1 + $0x40] sm:$0xff] }
   0xa   :  { %356 = vmatpush.msra.mxu1 %v60_v14  ;;  %337 = vmatpush.msra.mxu0 %v43_v16  ;;  %v57_v26 = vld [vmem:[%s1620_s1 + $0xc8] sm:$0xff]  ;;  %v72_v29 = vld [vmem:[%s1620_s1 + $0x140] sm:$0xff]  ;;  %v39_v32 = vld [vmem:[%s1620_s1 + $0x38] sm:$0xff] }
   0xb   :  { %396 = vmatpush.msra.mxu3 %v92_v15  ;;  %377 = vmatpush.msra.mxu2 %v75_v17  ;;  %v89_v27 = vld [vmem:[%s1620_s1 + $0x1c8] sm:$0xff]  ;;  %v56_v30 = vld [vmem:[%s1620_s1 + $0xc0] sm:$0xff]  ;;  %v71_v33 = vld [vmem:[%s1620_s1 + $0x138] sm:$0xff] }
   0xc   :  { %357 = vmatpush.msra.mxu1 %v59_v18  ;;  %338 = vmatpush.msra.mxu0 %v42_v20  ;;  %v88_v31 = vld [vmem:[%s1620_s1 + $0x1c0] sm:$0xff]  ;;  %v55_v34 = vld [vmem:[%s1620_s1 + $0xb8] sm:$0xff]  ;;  %v38_v36 = vld [vmem:[%s1620_s1 + $0x30] sm:$0xff] }
   0xd   :  { %397 = vmatpush.msra.mxu3 %v91_v19  ;;  %378 = vmatpush.msra.mxu2 %v74_v21  ;;  %v87_v35 = vld [vmem:[%s1620_s1 + $0x1b8] sm:$0xff]  ;;  %v70_v37 = vld [vmem:[%s1620_s1 + $0x130] sm:$0xff]  ;;  %v37_v40 = vld [vmem:[%s1620_s1 + $0x28] sm:$0xff] }
   0xe   :  { %358 = vmatpush.msra.mxu1 %v58_v22  ;;  %339 = vmatpush.msra.mxu0 %v41_v24  ;;  %v54_v38 = vld [vmem:[%s1620_s1 + $0xb0] sm:$0xff]  ;;  %v69_v41 = vld [vmem:[%s1620_s1 + $0x128] sm:$0xff]  ;;  %v36_v44 = vld [vmem:[%s1620_s1 + $0x20] sm:$0xff] }
   0xf   :  { %398 = vmatpush.msra.mxu3 %v90_v23  ;;  %379 = vmatpush.msra.mxu2 %v73_v25  ;;  %v86_v39 = vld [vmem:[%s1620_s1 + $0x1b0] sm:$0xff]  ;;  %v53_v42 = vld [vmem:[%s1620_s1 + $0xa8] sm:$0xff]  ;;  %v68_v45 = vld [vmem:[%s1620_s1 + $0x120] sm:$0xff] }
  0x10   :  { %359 = vmatpush.msra.mxu1 %v57_v26  ;;  %340 = vmatpush.msra.mxu0 %v40_v28  ;;  %v85_v43 = vld [vmem:[%s1620_s1 + $0x1a8] sm:$0xff]  ;;  %v52_v46 = vld [vmem:[%s1620_s1 + $0xa0] sm:$0xff]  ;;  %v35_v48 = vld [vmem:[%s1620_s1 + $0x18] sm:$0xff] }
  0x11   :  { %399 = vmatpush.msra.mxu3 %v89_v27  ;;  %380 = vmatpush.msra.mxu2 %v72_v29  ;;  %v84_v47 = vld [vmem:[%s1620_s1 + $0x1a0] sm:$0xff]  ;;  %v67_v49 = vld [vmem:[%s1620_s1 + $0x118] sm:$0xff]  ;;  %v34_v52 = vld [vmem:[%s1620_s1 + $0x10] sm:$0xff] }
  0x12   :  { %360 = vmatpush.msra.mxu1 %v56_v30  ;;  %341 = vmatpush.msra.mxu0 %v39_v32  ;;  %v51_v50 = vld [vmem:[%s1620_s1 + $0x98] sm:$0xff]  ;;  %v66_v53 = vld [vmem:[%s1620_s1 + $0x110] sm:$0xff]  ;;  %v33_v56 = vld [vmem:[%s1620_s1 + $0x8] sm:$0xff] }
  0x13   :  { %400 = vmatpush.msra.mxu3 %v88_v31  ;;  %381 = vmatpush.msra.mxu2 %v71_v33  ;;  %v83_v51 = vld [vmem:[%s1620_s1 + $0x198] sm:$0xff]  ;;  %v50_v54 = vld [vmem:[%s1620_s1 + $0x90] sm:$0xff]  ;;  %v65_v57 = vld [vmem:[%s1620_s1 + $0x108] sm:$0xff] }
  0x14   :  { %361 = vmatpush.msra.mxu1 %v55_v34  ;;  %342 = vmatpush.msra.mxu0 %v38_v36  ;;  %v82_v55 = vld [vmem:[%s1620_s1 + $0x190] sm:$0xff]  ;;  %v49_v58 = vld [vmem:[%s1620_s1 + $0x88] sm:$0xff]  ;;  %v32_v60 = vld [vmem:[%s1620_s1] sm:$0xff] }
  0x15   :  { %401 = vmatpush.msra.mxu3 %v87_v35  ;;  %382 = vmatpush.msra.mxu2 %v70_v37  ;;  %v81_v59 = vld [vmem:[%s1620_s1 + $0x188] sm:$0xff]  ;;  %v64_v61 = vld [vmem:[%s1620_s1 + $0x100] sm:$0xff]  ;;  %v111_v62 = vld [vmem:[%s1620_s1 + $0x278] sm:$0xff] }
  0x16   :  { %362 = vmatpush.msra.mxu1 %v54_v38  ;;  %343 = vmatpush.msra.mxu0 %v37_v40  ;;  %v143_v63 = vld [vmem:[%s1620_s1 + $0x378] sm:$0xff]  ;;  %v48_v0 = vld [vmem:[%s1620_s1 + $0x80] sm:$0xff]  ;;  %v110_v2 = vld [vmem:[%s1620_s1 + $0x270] sm:$0xff] }
  0x17   :  { %402 = vmatpush.msra.mxu3 %v86_v39  ;;  %383 = vmatpush.msra.mxu2 %v69_v41  ;;  %v80_v1 = vld [vmem:[%s1620_s1 + $0x180] sm:$0xff]  ;;  %v127_v3 = vld [vmem:[%s1620_s1 + $0x2f8] sm:$0xff]  ;;  %v142_v4 = vld [vmem:[%s1620_s1 + $0x370] sm:$0xff] }
  0x18   :  { %363 = vmatpush.msra.mxu1 %v53_v42  ;;  %344 = vmatpush.msra.mxu0 %v36_v44  ;;  %v159_v5 = vld [vmem:[%s1620_s1 + $0x3f8] sm:$0xff]  ;;  %v109_v6 = vld [vmem:[%s1620_s1 + $0x268] sm:$0xff]  ;;  %v126_v7 = vld [vmem:[%s1620_s1 + $0x2f0] sm:$0xff] }
  0x19   :  { %403 = vmatpush.msra.mxu3 %v85_v43  ;;  %384 = vmatpush.msra.mxu2 %v68_v45  ;;  %v141_v8 = vld [vmem:[%s1620_s1 + $0x368] sm:$0xff]  ;;  %v158_v9 = vld [vmem:[%s1620_s1 + $0x3f0] sm:$0xff]  ;;  %v108_v10 = vld [vmem:[%s1620_s1 + $0x260] sm:$0xff] }
  0x1a   :  { %364 = vmatpush.msra.mxu1 %v52_v46  ;;  %345 = vmatpush.msra.mxu0 %v35_v48  ;;  %v125_v11 = vld [vmem:[%s1620_s1 + $0x2e8] sm:$0xff]  ;;  %v140_v12 = vld [vmem:[%s1620_s1 + $0x360] sm:$0xff]  ;;  %v107_v14 = vld [vmem:[%s1620_s1 + $0x258] sm:$0xff] }
  0x1b   :  { %404 = vmatpush.msra.mxu3 %v84_v47  ;;  %385 = vmatpush.msra.mxu2 %v67_v49  ;;  %v157_v13 = vld [vmem:[%s1620_s1 + $0x3e8] sm:$0xff]  ;;  %v124_v15 = vld [vmem:[%s1620_s1 + $0x2e0] sm:$0xff]  ;;  %v139_v16 = vld [vmem:[%s1620_s1 + $0x358] sm:$0xff] }
  0x1c   :  { %365 = vmatpush.msra.mxu1 %v51_v50  ;;  %346 = vmatpush.msra.mxu0 %v34_v52  ;;  %v156_v17 = vld [vmem:[%s1620_s1 + $0x3e0] sm:$0xff]  ;;  %v106_v18 = vld [vmem:[%s1620_s1 + $0x250] sm:$0xff]  ;;  %v123_v19 = vld [vmem:[%s1620_s1 + $0x2d8] sm:$0xff] }
  0x1d   :  { %405 = vmatpush.msra.mxu3 %v83_v51  ;;  %386 = vmatpush.msra.mxu2 %v66_v53  ;;  %v138_v20 = vld [vmem:[%s1620_s1 + $0x350] sm:$0xff]  ;;  %v155_v21 = vld [vmem:[%s1620_s1 + $0x3d8] sm:$0xff]  ;;  %v105_v22 = vld [vmem:[%s1620_s1 + $0x248] sm:$0xff] }
  0x1e   :  { %366 = vmatpush.msra.mxu1 %v50_v54  ;;  %347 = vmatpush.msra.mxu0 %v33_v56  ;;  %v122_v23 = vld [vmem:[%s1620_s1 + $0x2d0] sm:$0xff]  ;;  %v137_v24 = vld [vmem:[%s1620_s1 + $0x348] sm:$0xff]  ;;  %v28_v26 = vld [vmem:[%s1621_s0] sm:$0xff] }
  0x1f   :  { %406 = vmatpush.msra.mxu3 %v82_v55  ;;  %387 = vmatpush.msra.mxu2 %v65_v57  ;;  %v154_v25 = vld [vmem:[%s1620_s1 + $0x3d0] sm:$0xff]  ;;  %v104_v27 = vld [vmem:[%s1620_s1 + $0x240] sm:$0xff]  ;;  %v121_v28 = vld [vmem:[%s1620_s1 + $0x2c8] sm:$0xff]  ;;  %296 = vst [vmem:[#allocation1] ss:$4 sm:$0xff] %v28_v26 }
  0x20   :  { %367 = vmatpush.msra.mxu1 %v49_v58  ;;  %348 = vmatpush.msra.mxu0 %v32_v60  ;;  %v136_v29 = vld [vmem:[%s1620_s1 + $0x340] sm:$0xff]  ;;  %v153_v30 = vld [vmem:[%s1620_s1 + $0x3c8] sm:$0xff]  ;;  %v103_v31 = vld [vmem:[%s1620_s1 + $0x238] sm:$0xff] }
  0x21   :  { %407 = vmatpush.msra.mxu3 %v81_v59  ;;  %388 = vmatpush.msra.mxu2 %v64_v61  ;;  %v120_v32 = vld [vmem:[%s1620_s1 + $0x2c0] sm:$0xff]  ;;  %v135_v33 = vld [vmem:[%s1620_s1 + $0x338] sm:$0xff]  ;;  %v102_v35 = vld [vmem:[%s1620_s1 + $0x230] sm:$0xff] }
  0x22   :  { %413 = vmatpush.msrb.mxu0 %v111_v62  ;;  %368 = vmatpush.msra.mxu1 %v48_v0  ;;  %v152_v34 = vld [vmem:[%s1620_s1 + $0x3c0] sm:$0xff]  ;;  %v119_v36 = vld [vmem:[%s1620_s1 + $0x2b8] sm:$0xff]  ;;  %v134_v37 = vld [vmem:[%s1620_s1 + $0x330] sm:$0xff] }
  0x23   :  { %453 = vmatpush.msrb.mxu2 %v143_v63  ;;  %408 = vmatpush.msra.mxu3 %v80_v1  ;;  %v151_v38 = vld [vmem:[%s1620_s1 + $0x3b8] sm:$0xff]  ;;  %v101_v39 = vld [vmem:[%s1620_s1 + $0x228] sm:$0xff]  ;;  %v118_v40 = vld [vmem:[%s1620_s1 + $0x2b0] sm:$0xff] }
  0x24   :  { %414 = vmatpush.msrb.mxu0 %v110_v2  ;;  %433 = vmatpush.msrb.mxu1 %v127_v3  ;;  %v133_v41 = vld [vmem:[%s1620_s1 + $0x328] sm:$0xff]  ;;  %v150_v42 = vld [vmem:[%s1620_s1 + $0x3b0] sm:$0xff]  ;;  %v100_v44 = vld [vmem:[%s1620_s1 + $0x220] sm:$0xff] }
  0x25   :  { %454 = vmatpush.msrb.mxu2 %v142_v4  ;;  %473 = vmatpush.msrb.mxu3 %v159_v5  ;;  %v29_v43 = vld [vmem:[%s1621_s0 + $0x8] sm:$0xff]  ;;  %v30_v46 = vld [vmem:[%s1621_s0 + $0x10] sm:$0xff]  ;;  %v132_v47 = vld [vmem:[%s1620_s1 + $0x320] sm:$0xff] }
  0x26   :  { %415 = vmatpush.msrb.mxu0 %v109_v6  ;;  %434 = vmatpush.msrb.mxu1 %v126_v7  ;;  %v117_v45 = vld [vmem:[%s1620_s1 + $0x2a8] sm:$0xff]  ;;  %298 = vst [vmem:[#allocation1 + $0x20] ss:$4 sm:$0xff] %v29_v43  ;;  %v299_v48 = vld.sshfl [vmem:[#allocation1] sm:$0xff pattern:$0x73625140] }
  0x27   :  { %455 = vmatpush.msrb.mxu2 %v141_v8  ;;  %474 = vmatpush.msrb.mxu3 %v158_v9  ;;  %v301_v49 = vld.sshfl [vmem:[#allocation1 + $0x10] sm:$0xff pattern:$0x73625140]  ;;  %v1110_v50 = vld.sshfl [vmem:[#allocation1 + $0x8] sm:$0xff pattern:$0x73625140] }
  0x28   :  { %416 = vmatpush.msrb.mxu0 %v108_v10  ;;  %435 = vmatpush.msrb.mxu1 %v125_v11  ;;  %v1112_v51 = vld.sshfl [vmem:[#allocation1 + $0x18] sm:$0xff pattern:$0x73625140]  ;;  %v149_v52 = vld [vmem:[%s1620_s1 + $0x3a8] sm:$0xff]  ;;  %v116_v54 = vld [vmem:[%s1620_s1 + $0x2a0] sm:$0xff] }
  0x29   :  { %456 = vmatpush.msrb.mxu2 %v140_v12  ;;  %475 = vmatpush.msrb.mxu3 %v157_v13  ;;  %v99_v53 = vld [vmem:[%s1620_s1 + $0x218] sm:$0xff]  ;;  %307 = vst [vmem:[#allocation1] ss:$4 sm:$0xff] %v30_v46  ;;  %v148_v56 = vld [vmem:[%s1620_s1 + $0x3a0] sm:$0xff]  ;;  %v98_v57 = vld [vmem:[%s1620_s1 + $0x210] sm:$0xff] }
  0x2a   :  { %417 = vmatpush.msrb.mxu0 %v107_v14  ;;  %436 = vmatpush.msrb.mxu1 %v124_v15  ;;  %v131_v55 = vld [vmem:[%s1620_s1 + $0x318] sm:$0xff]  ;;  %v130_v59 = vld [vmem:[%s1620_s1 + $0x310] sm:$0xff]  ;;  %v97_v61 = vld [vmem:[%s1620_s1 + $0x208] sm:$0xff] }
  0x2b   :  { %457 = vmatpush.msrb.mxu2 %v139_v16  ;;  %476 = vmatpush.msrb.mxu3 %v156_v17  ;;  %v115_v58 = vld [vmem:[%s1620_s1 + $0x298] sm:$0xff]  ;;  %v114_v62 = vld [vmem:[%s1620_s1 + $0x290] sm:$0xff]  ;;  %v129_v4 = vld [vmem:[%s1620_s1 + $0x308] sm:$0xff] }
  0x2c   :  { %418 = vmatpush.msrb.mxu0 %v106_v18  ;;  %437 = vmatpush.msrb.mxu1 %v123_v19  ;;  %v147_v60 = vld [vmem:[%s1620_s1 + $0x398] sm:$0xff]  ;;  %v146_v5 = vld [vmem:[%s1620_s1 + $0x390] sm:$0xff]  ;;  %v96_v6 = vld [vmem:[%s1620_s1 + $0x200] sm:$0xff] }
  0x2d   :  { %458 = vmatpush.msrb.mxu2 %v138_v20  ;;  %477 = vmatpush.msrb.mxu3 %v155_v21  ;;  %v31_v63 = vld [vmem:[%s1621_s0 + $0x18] sm:$0xff]  ;;  %v1150_v0 = vld.sshfl [vmem:[#allocation1 + $0x30] sm:$0xff pattern:$0x73625140]  ;;  %v113_v7 = vld [vmem:[%s1620_s1 + $0x288] sm:$0xff] }
  0x2e   :  { %419 = vmatpush.msrb.mxu0 %v105_v22  ;;  %438 = vmatpush.msrb.mxu1 %v122_v23  ;;  %v1152_v1 = vld.sshfl [vmem:[#allocation1 + $0x20] sm:$0xff pattern:$0x73625140]  ;;  %v1154_v2 = vld.sshfl [vmem:[#allocation1 + $0x38] sm:$0xff pattern:$0x73625140] }
  0x2f   :  { %459 = vmatpush.msrb.mxu2 %v137_v24  ;;  %478 = vmatpush.msrb.mxu3 %v154_v25  ;;  %v1156_v3 = vld.sshfl [vmem:[#allocation1 + $0x28] sm:$0xff pattern:$0x73625140]  ;;  %v128_v8 = vld [vmem:[%s1620_s1 + $0x300] sm:$0xff]  ;;  %v175_v10 = vld [vmem:[%s1620_s1 + $0x478] sm:$0xff] }
  0x30   :  { %420 = vmatpush.msrb.mxu0 %v104_v27  ;;  %439 = vmatpush.msrb.mxu1 %v121_v28  ;;  %308 = vst [vmem:[#allocation1 + $0x20] ss:$4 sm:$0xff] %v31_v63  ;;  %v145_v9 = vld [vmem:[%s1620_s1 + $0x388] sm:$0xff]  ;;  %v207_v11 = vld [vmem:[%s1620_s1 + $0x578] sm:$0xff]  ;;  %v112_v12 = vld [vmem:[%s1620_s1 + $0x280] sm:$0xff] }
  0x31   :  { %460 = vmatpush.msrb.mxu2 %v136_v29  ;;  %479 = vmatpush.msrb.mxu3 %v153_v30  ;;  %v144_v13 = vld [vmem:[%s1620_s1 + $0x380] sm:$0xff]  ;;  %v174_v14 = vld [vmem:[%s1620_s1 + $0x470] sm:$0xff]  ;;  %v191_v15 = vld [vmem:[%s1620_s1 + $0x4f8] sm:$0xff] }
  0x32   :  { %421 = vmatpush.msrb.mxu0 %v103_v31  ;;  %440 = vmatpush.msrb.mxu1 %v120_v32  ;;  %v206_v16 = vld [vmem:[%s1620_s1 + $0x570] sm:$0xff]  ;;  %v223_v17 = vld [vmem:[%s1620_s1 + $0x5f8] sm:$0xff]  ;;  %v173_v18 = vld [vmem:[%s1620_s1 + $0x468] sm:$0xff] }
  0x33   :  { %461 = vmatpush.msrb.mxu2 %v135_v33  ;;  %480 = vmatpush.msrb.mxu3 %v152_v34  ;;  %v190_v19 = vld [vmem:[%s1620_s1 + $0x4f0] sm:$0xff]  ;;  %v205_v20 = vld [vmem:[%s1620_s1 + $0x568] sm:$0xff]  ;;  %v172_v22 = vld [vmem:[%s1620_s1 + $0x460] sm:$0xff] }
  0x34   :  { %422 = vmatpush.msrb.mxu0 %v102_v35  ;;  %441 = vmatpush.msrb.mxu1 %v119_v36  ;;  %v222_v21 = vld [vmem:[%s1620_s1 + $0x5f0] sm:$0xff]  ;;  %v189_v23 = vld [vmem:[%s1620_s1 + $0x4e8] sm:$0xff]  ;;  %v204_v24 = vld [vmem:[%s1620_s1 + $0x560] sm:$0xff] }
  0x35   :  { %462 = vmatpush.msrb.mxu2 %v134_v37  ;;  %481 = vmatpush.msrb.mxu3 %v151_v38  ;;  %v221_v25 = vld [vmem:[%s1620_s1 + $0x5e8] sm:$0xff]  ;;  %v171_v26 = vld [vmem:[%s1620_s1 + $0x458] sm:$0xff]  ;;  %v188_v27 = vld [vmem:[%s1620_s1 + $0x4e0] sm:$0xff] }
  0x36   :  { %423 = vmatpush.msrb.mxu0 %v101_v39  ;;  %442 = vmatpush.msrb.mxu1 %v118_v40  ;;  %v203_v28 = vld [vmem:[%s1620_s1 + $0x558] sm:$0xff]  ;;  %v220_v29 = vld [vmem:[%s1620_s1 + $0x5e0] sm:$0xff]  ;;  %v170_v30 = vld [vmem:[%s1620_s1 + $0x450] sm:$0xff] }
  0x37   :  { %463 = vmatpush.msrb.mxu2 %v133_v41  ;;  %482 = vmatpush.msrb.mxu3 %v150_v42  ;;  %v187_v31 = vld [vmem:[%s1620_s1 + $0x4d8] sm:$0xff]  ;;  %v202_v32 = vld [vmem:[%s1620_s1 + $0x550] sm:$0xff]  ;;  %v169_v34 = vld [vmem:[%s1620_s1 + $0x448] sm:$0xff] }
  0x38   :  { %424 = vmatpush.msrb.mxu0 %v100_v44  ;;  %443 = vmatpush.msrb.mxu1 %v117_v45  ;;  %v219_v33 = vld [vmem:[%s1620_s1 + $0x5d8] sm:$0xff]  ;;  %v186_v35 = vld [vmem:[%s1620_s1 + $0x4d0] sm:$0xff]  ;;  %v201_v36 = vld [vmem:[%s1620_s1 + $0x548] sm:$0xff] }
  0x39   :  { %464 = vmatpush.msrb.mxu2 %v132_v47  ;;  %483 = vmatpush.msrb.mxu3 %v149_v52  ;;  %v218_v37 = vld [vmem:[%s1620_s1 + $0x5d0] sm:$0xff]  ;;  %v168_v38 = vld [vmem:[%s1620_s1 + $0x440] sm:$0xff]  ;;  %v185_v39 = vld [vmem:[%s1620_s1 + $0x4c8] sm:$0xff] }
  0x3a   :  { %425 = vmatpush.msrb.mxu0 %v99_v53  ;;  %444 = vmatpush.msrb.mxu1 %v116_v54  ;;  %v200_v40 = vld [vmem:[%s1620_s1 + $0x540] sm:$0xff]  ;;  %v217_v41 = vld [vmem:[%s1620_s1 + $0x5c8] sm:$0xff]  ;;  %v167_v42 = vld [vmem:[%s1620_s1 + $0x438] sm:$0xff] }
  0x3b   :  { %465 = vmatpush.msrb.mxu2 %v131_v55  ;;  %484 = vmatpush.msrb.mxu3 %v148_v56  ;;  %v184_v43 = vld [vmem:[%s1620_s1 + $0x4c0] sm:$0xff]  ;;  %v199_v44 = vld [vmem:[%s1620_s1 + $0x538] sm:$0xff]  ;;  %v166_v46 = vld [vmem:[%s1620_s1 + $0x430] sm:$0xff] }
  0x3c   :  { %426 = vmatpush.msrb.mxu0 %v98_v57  ;;  %445 = vmatpush.msrb.mxu1 %v115_v58  ;;  %v216_v45 = vld [vmem:[%s1620_s1 + $0x5c0] sm:$0xff]  ;;  %v183_v47 = vld [vmem:[%s1620_s1 + $0x4b8] sm:$0xff]  ;;  %v197_v52 = vld [vmem:[%s1620_s1 + $0x528] sm:$0xff] }
  0x3d   :  { %466 = vmatpush.msrb.mxu2 %v130_v59  ;;  %485 = vmatpush.msrb.mxu3 %v147_v60  ;;  %v214_v53 = vld [vmem:[%s1620_s1 + $0x5b0] sm:$0xff]  ;;  %v164_v54 = vld [vmem:[%s1620_s1 + $0x420] sm:$0xff]  ;;  %v181_v55 = vld [vmem:[%s1620_s1 + $0x4a8] sm:$0xff] }
  0x3e   :  { %427 = vmatpush.msrb.mxu0 %v97_v61  ;;  %446 = vmatpush.msrb.mxu1 %v114_v62  ;;  %v196_v56 = vld [vmem:[%s1620_s1 + $0x520] sm:$0xff]  ;;  %v213_v57 = vld [vmem:[%s1620_s1 + $0x5a8] sm:$0xff]  ;;  %v163_v58 = vld [vmem:[%s1620_s1 + $0x418] sm:$0xff] }
  0x3f   :  { %467 = vmatpush.msrb.mxu2 %v129_v4  ;;  %486 = vmatpush.msrb.mxu3 %v146_v5  ;;  %v180_v59 = vld [vmem:[%s1620_s1 + $0x4a0] sm:$0xff]  ;;  %v195_v60 = vld [vmem:[%s1620_s1 + $0x518] sm:$0xff]  ;;  %v162_v62 = vld [vmem:[%s1620_s1 + $0x410] sm:$0xff] }
  0x40   :  { %428 = vmatpush.msrb.mxu0 %v96_v6  ;;  %447 = vmatpush.msrb.mxu1 %v113_v7  ;;  %v212_v61 = vld [vmem:[%s1620_s1 + $0x5a0] sm:$0xff]  ;;  %v179_v63 = vld [vmem:[%s1620_s1 + $0x498] sm:$0xff]  ;;  %v193_v4 = vld [vmem:[%s1620_s1 + $0x508] sm:$0xff] }
  0x41   :  { %468 = vmatpush.msrb.mxu2 %v128_v8  ;;  %487 = vmatpush.msrb.mxu3 %v145_v9  ;;  %v210_v5 = vld [vmem:[%s1620_s1 + $0x590] sm:$0xff]  ;;  %v160_v6 = vld [vmem:[%s1620_s1 + $0x400] sm:$0xff]  ;;  %v177_v7 = vld [vmem:[%s1620_s1 + $0x488] sm:$0xff] }
  0x42   :  { %349 = vmatmul.f32.vlgmr.msra.gmra.mxu0 %v299_v48  ;;  %389 = vmatmul.f32.vlgmr.msra.gmra.mxu2 %v301_v49  ;;  %v198_v48 = vld [vmem:[%s1620_s1 + $0x530] sm:$0xff]  ;;  %v215_v49 = vld [vmem:[%s1620_s1 + $0x5b8] sm:$0xff]  ;;  %v192_v8 = vld [vmem:[%s1620_s1 + $0x500] sm:$0xff] }
  0x43   :  { %493 = vmatpush.msra.mxu0 %v175_v10  ;;  %533 = vmatpush.msra.mxu2 %v207_v11  ;;  %v209_v9 = vld [vmem:[%s1620_s1 + $0x588] sm:$0xff]  ;;  %v309_v10 = vld.sshfl [vmem:[#allocation1] sm:$0xff pattern:$0x73625140] }
  0x44   :  { %448 = vmatpush.msrb.mxu1 %v112_v12  ;;  %488 = vmatpush.msrb.mxu3 %v144_v13  ;;  %v311_v11 = vld.sshfl [vmem:[#allocation1 + $0x10] sm:$0xff pattern:$0x73625140]  ;;  %v239_v12 = vld [vmem:[%s1620_s1 + $0x678] sm:$0xff] }
  0x45   :  { %369 = vmatmul.f32.vlgmr.msra.gmra.mxu1 %v1110_v50  ;;  %409 = vmatmul.f32.vlgmr.msra.gmra.mxu3 %v1112_v51  ;;  %v165_v50 = vld [vmem:[%s1620_s1 + $0x428] sm:$0xff]  ;;  %v182_v51 = vld [vmem:[%s1620_s1 + $0x4b0] sm:$0xff]  ;;  %v271_v13 = vld [vmem:[%s1620_s1 + $0x778] sm:$0xff] }
  0x46   :  { %494 = vmatpush.msra.mxu0 %v174_v14  ;;  %513 = vmatpush.msra.mxu1 %v191_v15  ;;  %v176_v14 = vld [vmem:[%s1620_s1 + $0x480] sm:$0xff] }
  0x47   :  { %534 = vmatpush.msra.mxu2 %v206_v16  ;;  %553 = vmatpush.msra.mxu3 %v223_v17  ;;  %v208_v15 = vld [vmem:[%s1620_s1 + $0x580] sm:$0xff]  ;;  %v310_v16 = vld.sshfl [vmem:[#allocation1 + $0x8] sm:$0xff pattern:$0x73625140] }
  0x48   :  { %495 = vmatpush.msra.mxu0 %v173_v18  ;;  %514 = vmatpush.msra.mxu1 %v190_v19  ;;  %v312_v17 = vld.sshfl [vmem:[#allocation1 + $0x18] sm:$0xff pattern:$0x73625140]  ;;  %v238_v18 = vld [vmem:[%s1620_s1 + $0x670] sm:$0xff] }
  0x49   :  { %535 = vmatpush.msra.mxu2 %v205_v20  ;;  %554 = vmatpush.msra.mxu3 %v222_v21  ;;  %v255_v19 = vld [vmem:[%s1620_s1 + $0x6f8] sm:$0xff]  ;;  %v270_v20 = vld [vmem:[%s1620_s1 + $0x770] sm:$0xff] }
  0x4a   :  { %496 = vmatpush.msra.mxu0 %v172_v22  ;;  %515 = vmatpush.msra.mxu1 %v189_v23  ;;  %v287_v21 = vld [vmem:[%s1620_s1 + $0x7f8] sm:$0xff]  ;;  %v237_v22 = vld [vmem:[%s1620_s1 + $0x668] sm:$0xff]  ;;  %v254_v23 = vld [vmem:[%s1620_s1 + $0x6f0] sm:$0xff] }
  0x4b   :  { %536 = vmatpush.msra.mxu2 %v204_v24  ;;  %555 = vmatpush.msra.mxu3 %v221_v25  ;;  %v269_v24 = vld [vmem:[%s1620_s1 + $0x768] sm:$0xff]  ;;  %v286_v25 = vld [vmem:[%s1620_s1 + $0x7f0] sm:$0xff] }
  0x4c   :  { %469 = vmatmul.f32.vlgmr.msrb.gmra.mxu2 %v1150_v0  ;;  %497 = vmatpush.msra.mxu0 %v171_v26  ;;  %v194_v0 = vld [vmem:[%s1620_s1 + $0x510] sm:$0xff]  ;;  %v236_v26 = vld [vmem:[%s1620_s1 + $0x660] sm:$0xff] }
  0x4d   :  { %516 = vmatpush.msra.mxu1 %v188_v27  ;;  %537 = vmatpush.msra.mxu2 %v203_v28  ;;  %v253_v27 = vld [vmem:[%s1620_s1 + $0x6e8] sm:$0xff]  ;;  %v268_v28 = vld [vmem:[%s1620_s1 + $0x760] sm:$0xff] }
  0x4e   :  { %556 = vmatpush.msra.mxu3 %v220_v29  ;;  %429 = vmatmul.f32.vlgmr.msrb.gmra.mxu0 %v1152_v1  ;;  %v211_v1 = vld [vmem:[%s1620_s1 + $0x598] sm:$0xff]  ;;  %v285_v29 = vld [vmem:[%s1620_s1 + $0x7e8] sm:$0xff] }
  0x4f   :  { %489 = vmatmul.f32.vlgmr.msrb.gmra.mxu3 %v1154_v2  ;;  %498 = vmatpush.msra.mxu0 %v170_v30  ;;  %v161_v2 = vld [vmem:[%s1620_s1 + $0x408] sm:$0xff]  ;;  %v235_v30 = vld [vmem:[%s1620_s1 + $0x658] sm:$0xff] }
  0x50   :  { %517 = vmatpush.msra.mxu1 %v187_v31  ;;  %538 = vmatpush.msra.mxu2 %v202_v32  ;;  %v252_v31 = vld [vmem:[%s1620_s1 + $0x6e0] sm:$0xff]  ;;  %v267_v32 = vld [vmem:[%s1620_s1 + $0x758] sm:$0xff] }
  0x51   :  { %557 = vmatpush.msra.mxu3 %v219_v33  ;;  %449 = vmatmul.f32.vlgmr.msrb.gmra.mxu1 %v1156_v3  ;;  %v178_v3 = vld [vmem:[%s1620_s1 + $0x490] sm:$0xff]  ;;  %v284_v33 = vld [vmem:[%s1620_s1 + $0x7e0] sm:$0xff] }
  0x52   :  { %499 = vmatpush.msra.mxu0 %v169_v34  ;;  %518 = vmatpush.msra.mxu1 %v186_v35  ;;  %v234_v34 = vld [vmem:[%s1620_s1 + $0x650] sm:$0xff]  ;;  %v251_v35 = vld [vmem:[%s1620_s1 + $0x6d8] sm:$0xff] }
  0x53   :  { %539 = vmatpush.msra.mxu2 %v201_v36  ;;  %558 = vmatpush.msra.mxu3 %v218_v37  ;;  %v266_v36 = vld [vmem:[%s1620_s1 + $0x750] sm:$0xff]  ;;  %v283_v37 = vld [vmem:[%s1620_s1 + $0x7d8] sm:$0xff] }
  0x54   :  { %500 = vmatpush.msra.mxu0 %v168_v38  ;;  %519 = vmatpush.msra.mxu1 %v185_v39  ;;  %v233_v38 = vld [vmem:[%s1620_s1 + $0x648] sm:$0xff]  ;;  %v250_v39 = vld [vmem:[%s1620_s1 + $0x6d0] sm:$0xff] }
  0x55   :  { %540 = vmatpush.msra.mxu2 %v200_v40  ;;  %559 = vmatpush.msra.mxu3 %v217_v41  ;;  %v265_v40 = vld [vmem:[%s1620_s1 + $0x748] sm:$0xff]  ;;  %v282_v41 = vld [vmem:[%s1620_s1 + $0x7d0] sm:$0xff] }
  0x56   :  { %501 = vmatpush.msra.mxu0 %v167_v42  ;;  %520 = vmatpush.msra.mxu1 %v184_v43  ;;  %v232_v42 = vld [vmem:[%s1620_s1 + $0x640] sm:$0xff]  ;;  %v249_v43 = vld [vmem:[%s1620_s1 + $0x6c8] sm:$0xff] }
  0x57   :  { %541 = vmatpush.msra.mxu2 %v199_v44  ;;  %560 = vmatpush.msra.mxu3 %v216_v45  ;;  %v264_v44 = vld [vmem:[%s1620_s1 + $0x740] sm:$0xff]  ;;  %v281_v45 = vld [vmem:[%s1620_s1 + $0x7c8] sm:$0xff] }
  0x58   :  { %502 = vmatpush.msra.mxu0 %v166_v46  ;;  %521 = vmatpush.msra.mxu1 %v183_v47  ;;  %v231_v46 = vld [vmem:[%s1620_s1 + $0x638] sm:$0xff]  ;;  %v248_v47 = vld [vmem:[%s1620_s1 + $0x6c0] sm:$0xff] }
  0x59   :  { %542 = vmatpush.msra.mxu2 %v198_v48  ;;  %561 = vmatpush.msra.mxu3 %v215_v49  ;;  %v263_v48 = vld [vmem:[%s1620_s1 + $0x738] sm:$0xff]  ;;  %v280_v49 = vld [vmem:[%s1620_s1 + $0x7c0] sm:$0xff] }
  0x5a   :  { %503 = vmatpush.msra.mxu0 %v165_v50  ;;  %522 = vmatpush.msra.mxu1 %v182_v51  ;;  %v230_v50 = vld [vmem:[%s1620_s1 + $0x630] sm:$0xff]  ;;  %v247_v51 = vld [vmem:[%s1620_s1 + $0x6b8] sm:$0xff] }
  0x5b   :  { %543 = vmatpush.msra.mxu2 %v197_v52  ;;  %562 = vmatpush.msra.mxu3 %v214_v53  ;;  %v262_v52 = vld [vmem:[%s1620_s1 + $0x730] sm:$0xff]  ;;  %v279_v53 = vld [vmem:[%s1620_s1 + $0x7b8] sm:$0xff] }
  0x5c   :  { %504 = vmatpush.msra.mxu0 %v164_v54  ;;  %523 = vmatpush.msra.mxu1 %v181_v55  ;;  %v229_v54 = vld [vmem:[%s1620_s1 + $0x628] sm:$0xff]  ;;  %v246_v55 = vld [vmem:[%s1620_s1 + $0x6b0] sm:$0xff] }
  0x5d   :  { %544 = vmatpush.msra.mxu2 %v196_v56  ;;  %563 = vmatpush.msra.mxu3 %v213_v57  ;;  %v261_v56 = vld [vmem:[%s1620_s1 + $0x728] sm:$0xff]  ;;  %v278_v57 = vld [vmem:[%s1620_s1 + $0x7b0] sm:$0xff] }
  0x5e   :  { %505 = vmatpush.msra.mxu0 %v163_v58  ;;  %524 = vmatpush.msra.mxu1 %v180_v59  ;;  %v228_v58 = vld [vmem:[%s1620_s1 + $0x620] sm:$0xff]  ;;  %v245_v59 = vld [vmem:[%s1620_s1 + $0x6a8] sm:$0xff] }
  0x5f   :  { %545 = vmatpush.msra.mxu2 %v195_v60  ;;  %564 = vmatpush.msra.mxu3 %v212_v61  ;;  %v260_v60 = vld [vmem:[%s1620_s1 + $0x720] sm:$0xff]  ;;  %v277_v61 = vld [vmem:[%s1620_s1 + $0x7a8] sm:$0xff] }
  0x60   :  { %506 = vmatpush.msra.mxu0 %v162_v62  ;;  %525 = vmatpush.msra.mxu1 %v179_v63  ;;  %v227_v62 = vld [vmem:[%s1620_s1 + $0x618] sm:$0xff]  ;;  %v244_v63 = vld [vmem:[%s1620_s1 + $0x6a0] sm:$0xff] }
  0x61   :  { %546 = vmatpush.msra.mxu2 %v194_v0  ;;  %565 = vmatpush.msra.mxu3 %v211_v1  ;;  %v259_v0 = vld [vmem:[%s1620_s1 + $0x718] sm:$0xff]  ;;  %v276_v1 = vld [vmem:[%s1620_s1 + $0x7a0] sm:$0xff] }
  0x62   :  { %507 = vmatpush.msra.mxu0 %v161_v2  ;;  %526 = vmatpush.msra.mxu1 %v178_v3  ;;  %v226_v2 = vld [vmem:[%s1620_s1 + $0x610] sm:$0xff]  ;;  %v243_v3 = vld [vmem:[%s1620_s1 + $0x698] sm:$0xff] }
  0x63   :  { %547 = vmatpush.msra.mxu2 %v193_v4  ;;  %566 = vmatpush.msra.mxu3 %v210_v5  ;;  %v258_v4 = vld [vmem:[%s1620_s1 + $0x710] sm:$0xff]  ;;  %v275_v5 = vld [vmem:[%s1620_s1 + $0x798] sm:$0xff] }
  0x64   :  { %508 = vmatpush.msra.mxu0 %v160_v6  ;;  %527 = vmatpush.msra.mxu1 %v177_v7  ;;  %v225_v6 = vld [vmem:[%s1620_s1 + $0x608] sm:$0xff]  ;;  %v242_v7 = vld [vmem:[%s1620_s1 + $0x690] sm:$0xff] }
  0x65   :  { %548 = vmatpush.msra.mxu2 %v192_v8  ;;  %567 = vmatpush.msra.mxu3 %v209_v9  ;;  %v257_v8 = vld [vmem:[%s1620_s1 + $0x708] sm:$0xff]  ;;  %v274_v9 = vld [vmem:[%s1620_s1 + $0x790] sm:$0xff] }
  0x66   :  { %509 = vmatmul.f32.vlgmr.msra.gmra.mxu0 %v309_v10  ;;  %549 = vmatmul.f32.vlgmr.msra.gmra.mxu2 %v311_v11  ;;  %v224_v10 = vld [vmem:[%s1620_s1 + $0x600] sm:$0xff]  ;;  %v241_v11 = vld [vmem:[%s1620_s1 + $0x688] sm:$0xff] }
  0x67   :  { %573 = vmatpush.msrb.mxu0 %v239_v12  ;;  %613 = vmatpush.msrb.mxu2 %v271_v13  ;;  %v256_v12 = vld [vmem:[%s1620_s1 + $0x700] sm:$0xff]  ;;  %v273_v13 = vld [vmem:[%s1620_s1 + $0x788] sm:$0xff] }
  0x68   :  { %528 = vmatpush.msra.mxu1 %v176_v14  ;;  %568 = vmatpush.msra.mxu3 %v208_v15  ;;  %v313_v14 = vld.sshfl [vmem:[#allocation1 + $0x20] sm:$0xff pattern:$0x73625140]  ;;  %v315_v15 = vld.sshfl [vmem:[#allocation1 + $0x30] sm:$0xff pattern:$0x73625140] }
  0x69   :  { %529 = vmatmul.f32.vlgmr.msra.gmra.mxu1 %v310_v16  ;;  %569 = vmatmul.f32.vlgmr.msra.gmra.mxu3 %v312_v17  ;;  %v240_v16 = vld [vmem:[%s1620_s1 + $0x680] sm:$0xff] }
  0x6a   :  { %574 = vmatpush.msrb.mxu0 %v238_v18  ;;  %593 = vmatpush.msrb.mxu1 %v255_v19  ;;  %v272_v17 = vld [vmem:[%s1620_s1 + $0x780] sm:$0xff]  ;;  %v314_v18 = vld.sshfl [vmem:[#allocation1 + $0x28] sm:$0xff pattern:$0x73625140] }
  0x6b   :  { %614 = vmatpush.msrb.mxu2 %v270_v20  ;;  %633 = vmatpush.msrb.mxu3 %v287_v21  ;;  %v316_v19 = vld.sshfl [vmem:[#allocation1 + $0x38] sm:$0xff pattern:$0x73625140]  ;;  %v731_v21 = vld [vmem:[%s1622_s2] ss:$0 sm:$0xff] }
  0x6c   :  { %575 = vmatpush.msrb.mxu0 %v237_v22  ;;  %594 = vmatpush.msrb.mxu1 %v254_v23  ;;  %v661_v20 = vld [vmem:[%s1624_s3 + $0x38] sm:$0xff] }
  0x6d   :  { %615 = vmatpush.msrb.mxu2 %v269_v24  ;;  %634 = vmatpush.msrb.mxu3 %v286_v25 }
  0x6e   :  { %576 = vmatpush.msrb.mxu0 %v236_v26  ;;  %595 = vmatpush.msrb.mxu1 %v253_v27 }
  0x6f   :  { %616 = vmatpush.msrb.mxu2 %v268_v28  ;;  %635 = vmatpush.msrb.mxu3 %v285_v29  ;;  %v660_v28 = vld [vmem:[%s1624_s3 + $0x30] sm:$0xff] }
  0x70   :  { %577 = vmatpush.msrb.mxu0 %v235_v30  ;;  %596 = vmatpush.msrb.mxu1 %v252_v31  ;;  %v659_v30 = vld [vmem:[%s1624_s3 + $0x28] sm:$0xff] }
  0x71   :  { %617 = vmatpush.msrb.mxu2 %v267_v32  ;;  %636 = vmatpush.msrb.mxu3 %v284_v33  ;;  %v658_v32 = vld [vmem:[%s1624_s3 + $0x20] sm:$0xff] }
  0x72   :  { %578 = vmatpush.msrb.mxu0 %v234_v34  ;;  %597 = vmatpush.msrb.mxu1 %v251_v35  ;;  %v657_v34 = vld [vmem:[%s1624_s3 + $0x18] sm:$0xff] }
  0x73   :  { %618 = vmatpush.msrb.mxu2 %v266_v36  ;;  %637 = vmatpush.msrb.mxu3 %v283_v37  ;;  %v656_v36 = vld [vmem:[%s1624_s3 + $0x10] sm:$0xff] }
  0x74   :  { %579 = vmatpush.msrb.mxu0 %v233_v38  ;;  %598 = vmatpush.msrb.mxu1 %v250_v39  ;;  %v655_v38 = vld [vmem:[%s1624_s3 + $0x8] sm:$0xff] }
  0x75   :  { %619 = vmatpush.msrb.mxu2 %v265_v40  ;;  %638 = vmatpush.msrb.mxu3 %v282_v41  ;;  %v654_v40 = vld [vmem:[%s1624_s3] sm:$0xff] }
  0x76   :  { %580 = vmatpush.msrb.mxu0 %v232_v42  ;;  %599 = vmatpush.msrb.mxu1 %v249_v43  ;;  %v694_v42 = vld [vmem:[%s1625_s5 + $0x18] sm:$0xff]  ;;  %v693_v43 = vld [vmem:[%s1625_s5 + $0x10] sm:$0xff] }
  0x77   :  { %620 = vmatpush.msrb.mxu2 %v264_v44  ;;  %639 = vmatpush.msrb.mxu3 %v281_v45 }
  0x78   :  { %581 = vmatpush.msrb.mxu0 %v231_v46  ;;  %600 = vmatpush.msrb.mxu1 %v248_v47 }
  0x79   :  { %621 = vmatpush.msrb.mxu2 %v263_v48  ;;  %640 = vmatpush.msrb.mxu3 %v280_v49 }
  0x7a   :  { %582 = vmatpush.msrb.mxu0 %v230_v50  ;;  %601 = vmatpush.msrb.mxu1 %v247_v51 }
  0x7b   :  { %622 = vmatpush.msrb.mxu2 %v262_v52  ;;  %641 = vmatpush.msrb.mxu3 %v279_v53 }
  0x7c   :  { %583 = vmatpush.msrb.mxu0 %v229_v54  ;;  %602 = vmatpush.msrb.mxu1 %v246_v55 }
  0x7d   :  { %623 = vmatpush.msrb.mxu2 %v261_v56  ;;  %642 = vmatpush.msrb.mxu3 %v278_v57 }
  0x7e   :  { %584 = vmatpush.msrb.mxu0 %v228_v58  ;;  %603 = vmatpush.msrb.mxu1 %v245_v59 }
  0x7f   :  { %624 = vmatpush.msrb.mxu2 %v260_v60  ;;  %643 = vmatpush.msrb.mxu3 %v277_v61 }
  0x80   :  { %585 = vmatpush.msrb.mxu0 %v227_v62  ;;  %604 = vmatpush.msrb.mxu1 %v244_v63 }
  0x81   :  { %625 = vmatpush.msrb.mxu2 %v259_v0  ;;  %644 = vmatpush.msrb.mxu3 %v276_v1  ;;  %v692_v0 = vld [vmem:[%s1625_s5 + $0x8] sm:$0xff]  ;;  %v691_v1 = vld [vmem:[%s1625_s5] sm:$0xff] }
  0x82   :  { %586 = vmatpush.msrb.mxu0 %v226_v2  ;;  %605 = vmatpush.msrb.mxu1 %v243_v3  ;;  %v12_v2 = vstv %s1626_s6  ;;  %v732_v3 = vld [vmem:[%s1623_s4] ss:$0 sm:$0xff] }
  0x83   :  { %626 = vmatpush.msrb.mxu2 %v258_v4  ;;  %645 = vmatpush.msrb.mxu3 %v275_v5  ;;  %13 = vst [vmem:[#allocation2] sm:$0x1] %v12_v2 }
  0x84   :  { %587 = vmatpush.msrb.mxu0 %v225_v6  ;;  %606 = vmatpush.msrb.mxu1 %v242_v7 }
  0x85   :  { %627 = vmatpush.msrb.mxu2 %v257_v8  ;;  %646 = vmatpush.msrb.mxu3 %v274_v9 }
  0x86   :  { %588 = vmatpush.msrb.mxu0 %v224_v10  ;;  %607 = vmatpush.msrb.mxu1 %v241_v11 }
  0x87   :  { %628 = vmatpush.msrb.mxu2 %v256_v12  ;;  %647 = vmatpush.msrb.mxu3 %v273_v13 }
  0x88   :  { %589 = vmatmul.f32.vlgmr.msrb.gmra.mxu0 %v313_v14  ;;  %629 = vmatmul.f32.vlgmr.msrb.gmra.mxu2 %v315_v15 }
  0x89   :  { %608 = vmatpush.msrb.mxu1 %v240_v16  ;;  %648 = vmatpush.msrb.mxu3 %v272_v17 }
  0x8a   :  { %609 = vmatmul.f32.vlgmr.msrb.gmra.mxu1 %v314_v18  ;;  %649 = vmatmul.f32.vlgmr.msrb.gmra.mxu3 %v316_v19  ;;  %v733_v7 = vld [vmem:[#allocation2] ss:$0 sm:$0xff] }
  0x8b   :  { %678 = vmatpush.msra.mxu0 %v661_v20  ;;  %715 = vmatpush.msra.mxu1 %v694_v42 }
  0x8d   :  { %679 = vmatpush.msra.mxu0 %v660_v28  ;;  %716 = vmatpush.msra.mxu1 %v693_v43 }
  0x8f   :  { %680 = vmatpush.msra.mxu0 %v659_v30  ;;  %717 = vmatpush.msra.mxu1 %v692_v0 }
  0x91   :  { %681 = vmatpush.msra.mxu0 %v658_v32  ;;  %718 = vmatpush.msra.mxu1 %v691_v1 }
  0x93   :  { %682 = vmatpush.msra.mxu0 %v657_v34 }
  0x95   :  { %683 = vmatpush.msra.mxu0 %v656_v36 }
  0x97   :  { %684 = vmatpush.msra.mxu0 %v655_v38 }
  0x99   :  { %685 = vmatpush.msra.mxu0 %v654_v40 }
  0xbf   :  { %v350_v22 = vpop.f32.mrf.mxu0 }
  0xc0   :  { %v351_v23 = vadd.f32 %v731_v21, %v350_v22 }
  0xc2   :  { %v370_v24 = vpop.f32.mrf.mxu1 }
  0xc3   :  { %v371_v25 = vadd.f32 %v370_v24, %v351_v23 }
  0xc5   :  { %v390_v26 = vpop.f32.mrf.mxu2 }
  0xc6   :  { %v391_v27 = vadd.f32 %v390_v26, %v371_v25 }
  0xc8   :  { %v410_v29 = vpop.f32.mrf.mxu3 }
  0xc9   :  { %v411_v31 = vadd.f32 %v410_v29, %v391_v27 }
  0xcb   :  { %v430_v33 = vpop.f32.mrf.mxu0 }
  0xcc   :  { %v431_v35 = vadd.f32 %v430_v33, %v411_v31 }
  0xce   :  { %v450_v37 = vpop.f32.mrf.mxu1 }
  0xcf   :  { %v451_v39 = vadd.f32 %v450_v37, %v431_v35  ;;  %v470_v41 = vpop.f32.mrf.mxu2 }
  0xd1   :  { %v471_v44 = vadd.f32 %v470_v41, %v451_v39 }
  0xd2   :  { %v490_v45 = vpop.f32.mrf.mxu3 }
  0xd3   :  { %v491_v47 = vadd.f32 %v490_v45, %v471_v44 }
  0xe3   :  { %v510_v46 = vpop.f32.mrf.mxu0 }
  0xe4   :  { %v511_v48 = vadd.f32 %v510_v46, %v491_v47 }
  0xe6   :  { %v530_v49 = vpop.f32.mrf.mxu1 }
  0xe7   :  { %v531_v51 = vadd.f32 %v530_v49, %v511_v48 }
  0xe9   :  { %v550_v50 = vpop.f32.mrf.mxu2 }
  0xea   :  { %v551_v52 = vadd.f32 %v550_v50, %v531_v51 }
  0xec   :  { %v570_v53 = vpop.f32.mrf.mxu3 }
  0xed   :  { %v571_v54 = vadd.f32 %v570_v53, %v551_v52 }
 0x105   :  { %v590_v55 = vpop.f32.mrf.mxu0 }
 0x106   :  { %v591_v56 = vadd.f32 %v590_v55, %v571_v54 }
 0x107   :  { %v610_v57 = vpop.f32.mrf.mxu1 }
 0x108   :  { %v611_v58 = vadd.f32 %v610_v57, %v591_v56 }
 0x10b   :  { %v630_v59 = vpop.f32.mrf.mxu2 }
 0x10c   :  { %v631_v60 = vadd.f32 %v630_v59, %v611_v58 }
 0x10d   :  { %v650_v61 = vpop.f32.mrf.mxu3 }
 0x10e   :  { %v651_v62 = vadd.f32 %v650_v61, %v631_v60 }
 0x110   :  { %v653_v63 = vmax.f32 %v651_v62, 0.0 }
 0x112   :  { %729 = vmatmul.msk.f32.vlgmr.msra.gmra.mxu0 %vm666_vm0, %v653_v63 }
 0x18f   :  { %v687_v4 = vpop.f32.mrf.mxu0 }
 0x190   :  { %v688_v5 = vadd.f32 %v732_v3, %v687_v4 }
 0x192   :  { %v690_v6 = vmax.f32 %v688_v5, 0.0 }
 0x194   :  { %730 = vmatmul.msk.f32.vlgmr.msra.gmra.mxu1 %vm699_vm1, %v690_v6 }
 0x211   :  { %v720_v8 = vpop.f32.mrf.mxu1 }
 0x212   :  { %v721_v9 = vadd.f32 %v733_v7, %v720_v8 }
 0x214   :  { %724 = vst.msk [vmem:[%s1627_s7] sm:$0x3] %vm723_vm2, %v721_v9 }

// kernel: cnn_forward.2
= control target key start
LH: loop header
LB: loop body
LE: loop exit
PB: predicated region body
PF: predicated region fallthrough
CT: control target
= control target key end

     0   :  { %s3414_s15 = smov 0   ;;  %s4870_s0 = inlined_call_operand.vmem [shape: f32[2,18,18,4], index: 0, kind: input, shape index: {}]   ;;  %s4871_s1 = inlined_call_operand.vmem [shape: f32[9,4,32], index: 1, kind: input, shape index: {}]   ;;  %s4872_s2 = inlined_call_operand.vmem [shape: f32[1,32], index: 2, kind: input, shape index: {}]   ;;  %s4873_s3 = inlined_call_operand.vmem [shape: f32[128,128], index: 3, kind: input, shape index: {}]   ;;  %s4874_s4 = inlined_call_operand.vmem [shape: f32[2,64,32], index: 4, kind: output, shape index: {}]  }
   0x1 LB: > { %s2860_s16 = sadd.s32 4294967295, %s3387_s15   ;;  %p2864_p0 = scmp.ge.s32.totalorder %s3387_s15, 1  ;;  %s3387_s15 = sphi %s3414_s15, %s14_s15  }
   0x2   : > { %p162_p1 = scmp.lt.s32.totalorder %s3387_s15, 3 }
   0x4   : > { %p163_p2 = pnand %p2864_p0, %p162_p1 }
   0x6   : > { %166 = sbr.rel (%p163_p2) target bundleno = 1043 (0x413), region = 36 }
   0xb   : > { %v2868_v0 = vld [vmem:[%s4871_s1 + $0x4] sm:$0xf]  ;;  %vm362_vm0 = vcmask 1043456   ;;  %v230_v1 = vld [vmem:[%s4871_s1] sm:$0xf]  ;;  %p188_p3 = scmp.lt.s32.totalorder %s2860_s16, 1 }
   0xc   : > { %3368 = vmatpush.msk.msra.mxu2 %vm362_vm0, %v2868_v0  ;;  %3369 = vmatpush.msk.msra.mxu3 %vm362_vm0, %v2868_v0  ;;  %vm265_vm1 = vcmask 31744   ;;  %v2935_v34 = vld [vmem:[%s4871_s1 + $0x8] sm:$0xf]  ;;  %v3001_v39 = vld [vmem:[%s4871_s1 + $0xc] sm:$0xf]  ;;  %vm2639_vm2 = vcmask 261120  }
   0xd   : > { %2902 = vmatpush.msk.msra.mxu1 %vm362_vm0, %v230_v1  ;;  %s4970_s16 = smov (!%p188_p3, %s2860_s16), 1  ;;  %2869 = vmatpush.msk.msra.mxu0 %vm362_vm0, %v2868_v0  ;;  %v3067_v44 = vld [vmem:[%s4871_s1 + $0x10] sm:$0xf] }
   0xe   : > { %3370 = vmatpush.msk.msrb.mxu3 %vm362_vm0, %v230_v1  ;;  %s3371_s21 = smul.u32 432, %s4970_s16  ;;  %2936 = vmatpush.msk.msrb.mxu2 %vm362_vm0, %v2935_v34  ;;  %s3367_s25 = sshll.u32 %s4970_s16, 6 }
   0xf   : > { %3068 = vmatpush.msk.msrb.mxu0 %vm362_vm0, %v3067_v44  ;;  %s4849_s28 = scalar_lea.vmem %s4874_s4, %s3367_s25 }
  0x10   : > { %s3439_s24 = scalar_lea.vmem %s4870_s0, %s3371_s21 }
  0x11   : > { %v3442_v2 = vld [vmem:[%s3439_s24 + $0x91] sm:$0xff]  ;;  %v3445_v3 = vld [vmem:[%s3439_s24 + $0x121] sm:$0xff]  ;;  %v3456_v6 = vld [vmem:[%s3439_s24 + $0x99] sm:$0xff] }
  0x12   : > { %v198_v4 = vld [vmem:[%s3439_s24] sm:$0xff]  ;;  %2882 = vmatmul.msk.f32.vlgmr.msra.gmra.mxu2 %vm265_vm1, %v3442_v2  ;;  %2894 = vmatmul.msk.f32.vlgmr.msra.gmra.mxu3 %vm265_vm1, %v3445_v3  ;;  %v3459_v7 = vld [vmem:[%s3439_s24 + $0x129] sm:$0xff]  ;;  %v3476_v12 = vld [vmem:[%s3439_s24 + $0x18] sm:$0xff] }
  0x13   : > { %2903 = vmatmul.msk.f32.vlgmr.msra.gmra.mxu1 %vm265_vm1, %v198_v4  ;;  %v231_v5 = vld [vmem:[%s3439_s24 + $0x1] sm:$0xff]  ;;  %v232_v9 = vld [vmem:[%s3439_s24 + $0x9] sm:$0xff]  ;;  %v3473_v11 = vld [vmem:[%s3439_s24 + $0x139] sm:$0xff]  ;;  %3002 = vmatpush.msk.msra.mxu3 %vm362_vm0, %v3001_v39 }
  0x14   : > { %2870 = vmatmul.msk.f32.vlgmr.msra.gmra.mxu0 %vm265_vm1, %v231_v5  ;;  %v199_v8 = vld [vmem:[%s3439_s24 + $0x8] sm:$0xff]  ;;  %v3479_v13 = vld [vmem:[%s3439_s24 + $0x19] sm:$0xff]  ;;  %v3490_v14 = vld [vmem:[%s3439_s24 + $0xb1] sm:$0xff] }
  0x15   : > { %v3470_v10 = vld [vmem:[%s3439_s24 + $0xa9] sm:$0xff]  ;;  %v3493_v15 = vld [vmem:[%s3439_s24 + $0x141] sm:$0xff]  ;;  %v3513_v19 = vld [vmem:[%s3439_s24 + $0x151] sm:$0xff] }
  0x16   : > { %v3496_v16 = vld [vmem:[%s3439_s24 + $0x20] sm:$0xff]  ;;  %4891 = vst [vmem:[#allocation2_spill] sm:$0xff] %v3513_v19  ;;  %v3516_v20 = vld [vmem:[%s3439_s24 + $0x30] sm:$0xff]  ;;  %v3536_v24 = vld [vmem:[%s3439_s24 + $0x38] sm:$0xff] }
  0x17   : > { %v3499_v17 = vld [vmem:[%s3439_s24 + $0x21] sm:$0xff]  ;;  %v3519_v21 = vld [vmem:[%s3439_s24 + $0x31] sm:$0xff]  ;;  %v3530_v22 = vld [vmem:[%s3439_s24 + $0xc9] sm:$0xff] }
  0x18   : > { %v3510_v18 = vld [vmem:[%s3439_s24 + $0xc1] sm:$0xff]  ;;  %v3533_v23 = vld [vmem:[%s3439_s24 + $0x159] sm:$0xff]  ;;  %v3553_v27 = vld [vmem:[%s3439_s24 + $0x169] sm:$0xff] }
  0x19   : > { %4892 = vst [vmem:[#allocation3_spill] sm:$0xff] %v3533_v23  ;;  %v3539_v25 = vld [vmem:[%s3439_s24 + $0x39] sm:$0xff]  ;;  %v3556_v28 = vld [vmem:[%s3439_s24 + $0x48] sm:$0xff]  ;;  %v3573_v31 = vld [vmem:[%s3439_s24 + $0x171] sm:$0xff] }
  0x1a   : > { %2883 = vmatmul.msk.f32.gmra.mxu2 %vm265_vm1, %v3456_v6  ;;  %2895 = vmatmul.msk.f32.gmra.mxu3 %vm265_vm1, %v3459_v7  ;;  %v3550_v26 = vld [vmem:[%s3439_s24 + $0xd9] sm:$0xff]  ;;  %4893 = vst [vmem:[#allocation4_spill] sm:$0xff] %v3553_v27  ;;  %v3559_v29 = vld [vmem:[%s3439_s24 + $0x49] sm:$0xff]  ;;  %v3570_v30 = vld [vmem:[%s3439_s24 + $0xe1] sm:$0xff] }
  0x1b   : > { %2904 = vmatmul.msk.f32.gmra.mxu1 %vm265_vm1, %v199_v8  ;;  %4894 = vst [vmem:[#allocation5_spill] sm:$0xff] %v3573_v31  ;;  %v3576_v32 = vld [vmem:[%s3439_s24 + $0x50] sm:$0xff]  ;;  %v3600_v37 = vld [vmem:[%s3439_s24 + $0x60] sm:$0xff]  ;;  %v3621_v41 = vld [vmem:[%s3439_s24 + $0x158] sm:$0xff] }
  0x1c   : > { %2871 = vmatmul.msk.f32.gmra.mxu0 %vm265_vm1, %v232_v9  ;;  %v3579_v33 = vld [vmem:[%s3439_s24 + $0x51] sm:$0xff]  ;;  %v3603_v38 = vld [vmem:[%s3439_s24 + $0x61] sm:$0xff]  ;;  %v3618_v40 = vld [vmem:[%s3439_s24 + $0xf9] sm:$0xff]  ;;  %4895 = vst [vmem:[#allocation6_spill] sm:$0xff] %v3621_v41 }
  0x1d   : > { %v3594_v35 = vld [vmem:[%s3439_s24 + $0xf1] sm:$0xff]  ;;  %v3624_v42 = vld [vmem:[%s3439_s24 + $0x68] sm:$0xff]  ;;  %v3651_v48 = vld [vmem:[%s3439_s24 + $0x79] sm:$0xff] }
  0x1e   : > { %v3597_v36 = vld [vmem:[%s3439_s24 + $0x150] sm:$0xff]  ;;  %v3645_v46 = vld [vmem:[%s3439_s24 + $0x168] sm:$0xff]  ;;  %v3648_v47 = vld [vmem:[%s3439_s24 + $0x78] sm:$0xff] }
  0x1f   : > { %v3627_v43 = vld [vmem:[%s3439_s24 + $0x69] sm:$0xff]  ;;  %4896 = vst [vmem:[#allocation7_spill] sm:$0xff] %v3645_v46  ;;  %v3662_v49 = vld [vmem:[%s3439_s24 + $0x111] sm:$0xff]  ;;  %v3668_v51 = vld [vmem:[%s3439_s24 + $0x80] sm:$0xff] }
  0x20   : > { %v3642_v45 = vld [vmem:[%s3439_s24 + $0x109] sm:$0xff]  ;;  %v3671_v52 = vld [vmem:[%s3439_s24 + $0x81] sm:$0xff]  ;;  %v3694_v56 = vld [vmem:[%s3439_s24 + $0x98] sm:$0xff] }
  0x21   : > { %v3665_v50 = vld [vmem:[%s3439_s24 + $0x170] sm:$0xff]  ;;  %v691_v53 = vld [vmem:[%s3439_s24 + $0x2] sm:$0xff]  ;;  %v3704_v57 = vld [vmem:[%s3439_s24 + $0x1a] sm:$0xff] }
  0x22   : > { %2884 = vmatmul.msk.f32.gmra.mxu2 %vm265_vm1, %v3470_v10  ;;  %2896 = vmatmul.msk.f32.gmra.mxu3 %vm265_vm1, %v3473_v11  ;;  %4897 = vst [vmem:[#allocation8_spill] sm:$0xff] %v3665_v50  ;;  %v3683_v54 = vld [vmem:[%s3439_s24 + $0x90] sm:$0xff]  ;;  %v3707_v58 = vld [vmem:[%s3439_s24 + $0xa8] sm:$0xff]  ;;  %v3737_v63 = vld [vmem:[%s3439_s24 + $0xc0] sm:$0xff] }
  0x23   : > { %2905 = vmatmul.msk.f32.gmra.mxu1 %vm265_vm1, %v3476_v12  ;;  %v692_v55 = vld [vmem:[%s3439_s24 + $0xa] sm:$0xff]  ;;  %v3718_v59 = vld [vmem:[%s3439_s24 + $0x22] sm:$0xff]  ;;  %v3732_v61 = vld [vmem:[%s3439_s24 + $0x32] sm:$0xff] }
  0x24   : > { %2872 = vmatmul.msk.f32.gmra.mxu0 %vm265_vm1, %v3479_v13  ;;  %v3721_v60 = vld [vmem:[%s3439_s24 + $0xb0] sm:$0xff]  ;;  %v3754_v5 = vld [vmem:[%s3439_s24 + $0x3a] sm:$0xff]  ;;  %v3759_v9 = vld [vmem:[%s3439_s24 + $0xc8] sm:$0xff] }
  0x25   : > { %v3820_v39 = vld [vmem:[%s3439_s24 + $0x62] sm:$0xff]  ;;  %v3823_v44 = vld [vmem:[%s3439_s24 + $0xf0] sm:$0xff] }
  0x2a   : > { %2885 = vmatmul.msk.f32.gmra.mxu2 %vm265_vm1, %v3490_v14  ;;  %2897 = vmatmul.msk.f32.gmra.mxu3 %vm265_vm1, %v3493_v15 }
  0x2b   : > { %2906 = vmatmul.msk.f32.gmra.mxu1 %vm265_vm1, %v3496_v16 }
  0x2c   : > { %2873 = vmatmul.msk.f32.gmra.mxu0 %vm265_vm1, %v3499_v17 }
  0x32   : > { %2886 = vmatmul.msk.f32.gmra.mxu2 %vm265_vm1, %v3510_v18  ;;  %2898 = vmatmul.msk.f32.gmra.mxu3 %vm265_vm1, %v3513_v19  ;;  %v3927_v19 = vld [vmem:[%s3439_s24 + $0x128] sm:$0xff] }
  0x33   : > { %2907 = vmatmul.msk.f32.gmra.mxu1 %vm265_vm1, %v3516_v20 }
  0x34   : > { %2874 = vmatmul.msk.f32.gmra.mxu0 %vm265_vm1, %v3519_v21 }
  0x3a   : > { %2887 = vmatmul.msk.f32.gmra.mxu2 %vm265_vm1, %v3530_v22  ;;  %2899 = vmatmul.msk.f32.gmra.mxu3 %vm265_vm1, %v3533_v23 }
  0x3b   : > { %2908 = vmatmul.msk.f32.gmra.mxu1 %vm265_vm1, %v3536_v24 }
  0x3c   : > { %2875 = vmatmul.msk.f32.gmra.mxu0 %vm265_vm1, %v3539_v25 }
  0x42   : > { %2888 = vmatmul.msk.f32.gmra.mxu2 %vm265_vm1, %v3550_v26  ;;  %2900 = vmatmul.msk.f32.gmra.mxu3 %vm265_vm1, %v3553_v27  ;;  %v3901_v27 = vld [vmem:[%s3439_s24 + $0x120] sm:$0xff] }
  0x43   : > { %2909 = vmatmul.msk.f32.gmra.mxu1 %vm265_vm1, %v3556_v28 }
  0x44   : > { %2876 = vmatmul.msk.f32.gmra.mxu0 %vm265_vm1, %v3559_v29 }
  0x4a   : > { %2889 = vmatmul.msk.f32.gmra.mxu2 %vm265_vm1, %v3570_v30  ;;  %2901 = vmatmul.msk.f32.gmra.mxu3 %vm265_vm1, %v3573_v31 }
  0x4b   : > { %2910 = vmatmul.msk.f32.gmra.mxu1 %vm265_vm1, %v3576_v32 }
  0x4c   : > { %2877 = vmatmul.msk.f32.gmra.mxu0 %vm265_vm1, %v3579_v33 }
  0x52   : > { %2890 = vmatmul.msk.f32.gmra.mxu2 %vm265_vm1, %v3594_v35  ;;  %2931 = vmatmul.msk.f32.vlgmr.msrb.gmra.mxu3 %vm265_vm1, %v3597_v36 }
  0x53   : > { %2911 = vmatmul.msk.f32.gmra.mxu1 %vm265_vm1, %v3600_v37 }
  0x54   : > { %2878 = vmatmul.msk.f32.gmra.mxu0 %vm265_vm1, %v3603_v38 }
  0x5a   : > { %2891 = vmatmul.msk.f32.gmra.mxu2 %vm265_vm1, %v3618_v40  ;;  %2932 = vmatmul.msk.f32.gmra.mxu3 %vm265_vm1, %v3621_v41  ;;  %v3924_v41 = vld [vmem:[%s3439_s24 + $0x9a] sm:$0xff] }
  0x5b   : > { %2912 = vmatmul.msk.f32.gmra.mxu1 %vm265_vm1, %v3624_v42  ;;  %4912 = vst [vmem:[#allocation23_spill] sm:$0xff] %v3924_v41 }
  0x5c   : > { %2879 = vmatmul.msk.f32.gmra.mxu0 %vm265_vm1, %v3627_v43 }
  0x62   : > { %2892 = vmatmul.msk.f32.gmra.mxu2 %vm265_vm1, %v3642_v45  ;;  %2933 = vmatmul.msk.f32.gmra.mxu3 %vm265_vm1, %v3645_v46 }
  0x63   : > { %2913 = vmatmul.msk.f32.gmra.mxu1 %vm265_vm1, %v3648_v47 }
  0x64   : > { %2880 = vmatmul.msk.f32.gmra.mxu0 %vm265_vm1, %v3651_v48 }
  0x6a   : > { %2893 = vmatmul.msk.f32.gmra.mxu2 %vm265_vm1, %v3662_v49  ;;  %2934 = vmatmul.msk.f32.gmra.mxu3 %vm265_vm1, %v3665_v50 }
  0x6b   : > { %2914 = vmatmul.msk.f32.gmra.mxu1 %vm265_vm1, %v3668_v51 }
  0x6c   : > { %2881 = vmatmul.msk.f32.gmra.mxu0 %vm265_vm1, %v3671_v52 }
  0x72   : > { %2937 = vmatmul.msk.f32.vlgmr.msrb.gmra.mxu2 %vm265_vm1, %v691_v53  ;;  %3003 = vmatmul.msk.f32.vlgmr.msra.gmra.mxu3 %vm265_vm1, %v3476_v12 }
  0x73   : > { %2915 = vmatmul.msk.f32.gmra.mxu1 %vm265_vm1, %v3683_v54 }
  0x74   : > { %3069 = vmatmul.msk.f32.vlgmr.msrb.gmra.mxu0 %vm265_vm1, %v3479_v13 }
  0x7a   : > { %2938 = vmatmul.msk.f32.gmra.mxu2 %vm265_vm1, %v692_v55  ;;  %3004 = vmatmul.msk.f32.gmra.mxu3 %vm265_vm1, %v3496_v16 }
  0x7b   : > { %2916 = vmatmul.msk.f32.gmra.mxu1 %vm265_vm1, %v3694_v56 }
  0x7c   : > { %3070 = vmatmul.msk.f32.gmra.mxu0 %vm265_vm1, %v3499_v17  ;;  %v3776_v17 = vld [vmem:[%s3439_s24 + $0x4a] sm:$0xff] }
  0x82   : > { %2939 = vmatmul.msk.f32.gmra.mxu2 %vm265_vm1, %v3704_v57  ;;  %3005 = vmatmul.msk.f32.gmra.mxu3 %vm265_vm1, %v3516_v20 }
  0x83   : > { %2917 = vmatmul.msk.f32.gmra.mxu1 %vm265_vm1, %v3707_v58 }
  0x84   : > { %3071 = vmatmul.msk.f32.gmra.mxu0 %vm265_vm1, %v3519_v21  ;;  %v3781_v21 = vld [vmem:[%s3439_s24 + $0xd8] sm:$0xff] }
  0x8a   : > { %2940 = vmatmul.msk.f32.gmra.mxu2 %vm265_vm1, %v3718_v59  ;;  %3006 = vmatmul.msk.f32.gmra.mxu3 %vm265_vm1, %v3536_v24 }
  0x8b   : > { %2918 = vmatmul.msk.f32.gmra.mxu1 %vm265_vm1, %v3721_v60 }
  0x8c   : > { %3072 = vmatmul.msk.f32.gmra.mxu0 %vm265_vm1, %v3539_v25 }
  0x90   : > { %v3734_v62 = vpop.f32.mrf.mxu1 }
  0x91   : > { %v3739_v0 = vpop.f32.mrf.mxu0 }
  0x92   : > { %2941 = vmatmul.msk.f32.gmra.mxu2 %vm265_vm1, %v3732_v61  ;;  %3007 = vmatmul.msk.f32.gmra.mxu3 %vm265_vm1, %v3556_v28 }
  0x93   : > { %2919 = vmatmul.msk.f32.gmra.mxu1 %vm265_vm1, %v3737_v63 }
  0x94   : > { %3073 = vmatmul.msk.f32.gmra.mxu0 %vm265_vm1, %v3559_v29  ;;  %v3798_v29 = vld [vmem:[%s3439_s24 + $0x52] sm:$0xff] }
  0x95   : > { %v3749_v1 = vpop.f32.mrf.mxu2  ;;  %v3751_v4 = vpop.f32.mrf.mxu3 }
  0x96   : > { %4898 = vst [vmem:[#allocation9_spill] sm:$0xff] %v3749_v1 }
  0x97   : > { %4899 = vst [vmem:[#allocation10_spill] sm:$0xff] %v3751_v4 }
  0x98   : > { %v3756_v8 = vpop.f32.mrf.mxu1 }
  0x99   : > { %v3761_v12 = vpop.f32.mrf.mxu0 }
  0x9a   : > { %2942 = vmatmul.msk.f32.gmra.mxu2 %vm265_vm1, %v3754_v5  ;;  %3008 = vmatmul.msk.f32.gmra.mxu3 %vm265_vm1, %v3576_v32  ;;  %v3801_v32 = vld [vmem:[%s3439_s24 + $0xe0] sm:$0xff] }
  0x9b   : > { %2920 = vmatmul.msk.f32.gmra.mxu1 %vm265_vm1, %v3759_v9 }
  0x9c   : > { %3074 = vmatmul.msk.f32.gmra.mxu0 %vm265_vm1, %v3579_v33 }
  0x9d   : > { %v3771_v13 = vpop.f32.mrf.mxu2  ;;  %v3773_v16 = vpop.f32.mrf.mxu3 }
  0x9e   : > { %4900 = vst [vmem:[#allocation11_spill] sm:$0xff] %v3771_v13  ;;  %v3883_v13 = vld [vmem:[%s3439_s24 + $0x110] sm:$0xff] }
  0x9f   : > { %4901 = vst [vmem:[#allocation12_spill] sm:$0xff] %v3773_v16 }
  0xa0   : > { %v3778_v20 = vpop.f32.mrf.mxu1 }
  0xa1   : > { %v3783_v24 = vpop.f32.mrf.mxu0 }
  0xa2   : > { %2943 = vmatmul.msk.f32.gmra.mxu2 %vm265_vm1, %v3776_v17  ;;  %3009 = vmatmul.msk.f32.gmra.mxu3 %vm265_vm1, %v3600_v37 }
  0xa3   : > { %2921 = vmatmul.msk.f32.gmra.mxu1 %vm265_vm1, %v3781_v21 }
  0xa4   : > { %3075 = vmatmul.msk.f32.gmra.mxu0 %vm265_vm1, %v3603_v38 }
  0xa5   : > { %v3793_v25 = vpop.f32.mrf.mxu2  ;;  %v3795_v28 = vpop.f32.mrf.mxu3 }
  0xa6   : > { %4902 = vst [vmem:[#allocation13_spill] sm:$0xff] %v3793_v25 }
  0xa7   : > { %4903 = vst [vmem:[#allocation14_spill] sm:$0xff] %v3795_v28  ;;  %v3843_v28 = vld [vmem:[%s3439_s24 + $0xf8] sm:$0xff] }
  0xa8   : > { %v3805_v34 = vpop.f32.mrf.mxu1 }
  0xa9   : > { %v3803_v33 = vpop.f32.mrf.mxu0 }
  0xaa   : > { %2944 = vmatmul.msk.f32.gmra.mxu2 %vm265_vm1, %v3798_v29  ;;  %3010 = vmatmul.msk.f32.gmra.mxu3 %vm265_vm1, %v3624_v42 }
  0xab   : > { %2922 = vmatmul.msk.f32.gmra.mxu1 %vm265_vm1, %v3801_v32 }
  0xac   : > { %3076 = vmatmul.msk.f32.gmra.mxu0 %vm265_vm1, %v3627_v43 }
  0xad   : > { %v3815_v37 = vpop.f32.mrf.mxu2  ;;  %v3817_v38 = vpop.f32.mrf.mxu3 }
  0xae   : > { %4904 = vst [vmem:[#allocation15_spill] sm:$0xff] %v3815_v37  ;;  %v3863_v37 = vld [vmem:[%s3439_s24 + $0x108] sm:$0xff] }
  0xaf   : > { %4905 = vst [vmem:[#allocation16_spill] sm:$0xff] %v3817_v38  ;;  %v3840_v38 = vld [vmem:[%s3439_s24 + $0x6a] sm:$0xff] }
  0xb0   : > { %v3833_v42 = vpop.f32.mrf.mxu1 }
  0xb1   : > { %v3825_v53 = vpop.f32.mrf.mxu0 }
  0xb2   : > { %2945 = vmatmul.msk.f32.gmra.mxu2 %vm265_vm1, %v3820_v39  ;;  %3011 = vmatmul.msk.f32.gmra.mxu3 %vm265_vm1, %v3648_v47 }
  0xb3   : > { %2923 = vmatmul.msk.f32.gmra.mxu1 %vm265_vm1, %v3823_v44 }
  0xb4   : > { %3077 = vmatmul.msk.f32.gmra.mxu0 %vm265_vm1, %v3651_v48 }
  0xb5   : > { %v3837_v43 = vpop.f32.mrf.mxu2  ;;  %v467_v55 = vpop.f32.mrf.mxu3 }
  0xb6   : > { %4906 = vst [vmem:[#allocation17_spill] sm:$0xff] %v3837_v43  ;;  %v3860_v43 = vld [vmem:[%s3439_s24 + $0x7a] sm:$0xff] }
  0xb8   : > { %v3857_v4 = vpop.f32.mrf.mxu1 }
  0xb9   : > { %v3845_v16 = vpop.f32.mrf.mxu0 }
  0xba   : > { %2946 = vmatmul.msk.f32.gmra.mxu2 %vm265_vm1, %v3840_v38  ;;  %3012 = vmatmul.msk.f32.gmra.mxu3 %vm265_vm1, %v3668_v51 }
  0xbb   : > { %2924 = vmatmul.msk.f32.gmra.mxu1 %vm265_vm1, %v3843_v28 }
  0xbc   : > { %3078 = vmatmul.msk.f32.gmra.mxu0 %vm265_vm1, %v3671_v52 }
  0xbd   : > { %v3855_v47 = vpop.f32.mrf.mxu2  ;;  %v470_v48 = vpop.f32.mrf.mxu3 }
  0xbe   : > { %4907 = vst [vmem:[#allocation18_spill] sm:$0xff] %v3855_v47  ;;  %v3878_v47 = vld [vmem:[%s3439_s24 + $0x82] sm:$0xff] }
  0xc0   : > { %v3880_v31 = vpop.f32.mrf.mxu1 }
  0xc1   : > { %v3865_v25 = vpop.f32.mrf.mxu0 }
  0xc2   : > { %2947 = vmatmul.msk.f32.gmra.mxu2 %vm265_vm1, %v3860_v43  ;;  %3013 = vmatmul.msk.f32.gmra.mxu3 %vm265_vm1, %v3683_v54 }
  0xc3   : > { %2925 = vmatmul.msk.f32.gmra.mxu1 %vm265_vm1, %v3863_v37 }
  0xc4   : > { %3079 = vmatmul.msk.f32.gmra.mxu0 %vm265_vm1, %v3442_v2 }
  0xc5   : > { %v3875_v51 = vpop.f32.mrf.mxu2  ;;  %v473_v52 = vpop.f32.mrf.mxu3 }
  0xc6   : > { %4908 = vst [vmem:[#allocation19_spill] sm:$0xff] %v3875_v51  ;;  %v3898_v51 = vld [vmem:[%s3439_s24 + $0x92] sm:$0xff] }
  0xc8   : > { %v3908_v46 = vpop.f32.mrf.mxu1 }
  0xc9   : > { %v3885_v50 = vpop.f32.mrf.mxu0 }
  0xca   : > { %2948 = vmatmul.msk.f32.gmra.mxu2 %vm265_vm1, %v3878_v47  ;;  %3014 = vmatmul.msk.f32.gmra.mxu3 %vm265_vm1, %v3694_v56  ;;  %v3133_v56 = vld [vmem:[%s4871_s1 + $0x14] sm:$0xf] }
  0xcb   : > { %2926 = vmatmul.msk.f32.gmra.mxu1 %vm265_vm1, %v3883_v13 }
  0xcc   : > { %3080 = vmatmul.msk.f32.gmra.mxu0 %vm265_vm1, %v3456_v6  ;;  %3134 = vmatpush.msk.msrb.mxu1 %vm362_vm0, %v3133_v56 }
  0xcd   : > { %v3895_v2 = vpop.f32.mrf.mxu2  ;;  %v476_v54 = vpop.f32.mrf.mxu3 }
  0xce   : > { %4909 = vst [vmem:[#allocation20_spill] sm:$0xff] %v3895_v2 }
  0xd1   : > { %v3903_v1 = vpop.f32.mrf.mxu0 }
  0xd2   : > { %2949 = vmatmul.msk.f32.gmra.mxu2 %vm265_vm1, %v3898_v51  ;;  %3015 = vmatmul.msk.f32.gmra.mxu3 %vm265_vm1, %v3707_v58 }
  0xd3   : > { %2927 = vmatmul.msk.f32.gmra.mxu1 %vm265_vm1, %v3901_v27 }
  0xd4   : > { %3081 = vmatmul.msk.f32.gmra.mxu0 %vm265_vm1, %v3470_v10  ;;  %v3937_v10 = vpop.f32.mrf.mxu1 }
  0xd5   : > { %v3919_v6 = vpop.f32.mrf.mxu2  ;;  %v679_v2 = vpop.f32.mrf.mxu3 }
  0xd6   : > { %4910 = vst [vmem:[#allocation21_spill] sm:$0xff] %v3919_v6  ;;  %v3921_v23 = vadd.f32 %v679_v2, %v467_v55  ;;  %v3949_v6 = vld [vmem:[%s3439_s24 + $0x138] sm:$0xff] }
  0xd8   : > { %4911 = vst [vmem:[#allocation22_spill] sm:$0xff] %v3921_v23  ;;  %v3946_v23 = vld [vmem:[%s3439_s24 + $0xaa] sm:$0xff] }
  0xd9   : > { %v3929_v58 = vpop.f32.mrf.mxu0  ;;  %4915 = vst [vmem:[#allocation26_spill] sm:$0xff] %v3946_v23 }
  0xda   : > { %2950 = vmatmul.msk.f32.gmra.mxu2 %vm265_vm1, %v3924_v41  ;;  %3016 = vmatmul.msk.f32.gmra.mxu3 %vm265_vm1, %v3721_v60 }
  0xdb   : > { %2928 = vmatmul.msk.f32.gmra.mxu1 %vm265_vm1, %v3927_v19 }
  0xdc   : > { %3082 = vmatmul.msk.f32.gmra.mxu0 %vm265_vm1, %v3490_v14 }
  0xdd   : > { %v3941_v55 = vpop.f32.mrf.mxu2  ;;  %v682_v2 = vpop.f32.mrf.mxu3 }
  0xde   : > { %4913 = vst [vmem:[#allocation24_spill] sm:$0xff] %v3941_v55  ;;  %v3943_v56 = vadd.f32 %v682_v2, %v470_v48  ;;  %v3963_v2 = vpop.f32.mrf.mxu1  ;;  %v3968_v55 = vld [vmem:[%s3439_s24 + $0xb2] sm:$0xff] }
  0xdf   : > { %4918 = vst [vmem:[#allocation29_spill] sm:$0xff] %v3968_v55 }
  0xe0   : > { %4914 = vst [vmem:[#allocation25_spill] sm:$0xff] %v3943_v56 }
  0xe1   : > { %v3951_v60 = vpop.f32.mrf.mxu0 }
  0xe2   : > { %2951 = vmatmul.msk.f32.gmra.mxu2 %vm265_vm1, %v3946_v23  ;;  %3017 = vmatmul.msk.f32.gmra.mxu3 %vm265_vm1, %v3737_v63  ;;  %v3971_v23 = vld [vmem:[%s3439_s24 + $0x140] sm:$0xff] }
  0xe3   : > { %2929 = vmatmul.msk.f32.gmra.mxu1 %vm265_vm1, %v3949_v6 }
  0xe4   : > { %3083 = vmatmul.msk.f32.gmra.mxu0 %vm265_vm1, %v3510_v18 }
  0xe5   : > { %v3961_v14 = vpop.f32.mrf.mxu2  ;;  %v685_v48 = vpop.f32.mrf.mxu3 }
  0xe6   : > { %4916 = vst [vmem:[#allocation27_spill] sm:$0xff] %v3961_v14  ;;  %v3965_v56 = vadd.f32 %v685_v48, %v473_v52  ;;  %v3988_v48 = vld [vmem:[%s3439_s24 + $0xc2] sm:$0xff] }
  0xe7   : > { %4921 = vst [vmem:[#allocation32_spill] sm:$0xff] %v3988_v48 }
  0xe8   : > { %4917 = vst [vmem:[#allocation28_spill] sm:$0xff] %v3965_v56  ;;  %v3990_v56 = vpop.f32.mrf.mxu1 }
  0xe9   : > { %v3973_v41 = vpop.f32.mrf.mxu0 }
  0xea   : > { %2952 = vmatmul.msk.f32.gmra.mxu2 %vm265_vm1, %v3968_v55  ;;  %3018 = vmatmul.msk.f32.gmra.mxu3 %vm265_vm1, %v3759_v9 }
  0xeb   : > { %2930 = vmatmul.msk.f32.gmra.mxu1 %vm265_vm1, %v3971_v23 }
  0xec   : > { %3084 = vmatmul.msk.f32.gmra.mxu0 %vm265_vm1, %v3530_v22  ;;  %v596_v22 = vadd.f32 %v3734_v62, %v3739_v0 }
  0xed   : > { %v3983_v18 = vpop.f32.mrf.mxu2  ;;  %v688_v63 = vpop.f32.mrf.mxu3 }
  0xee   : > { %4919 = vst [vmem:[#allocation30_spill] sm:$0xff] %v3983_v18  ;;  %v3985_v52 = vadd.f32 %v688_v63, %v476_v54 }
  0xf0   : > { %4920 = vst [vmem:[#allocation31_spill] sm:$0xff] %v3985_v52  ;;  %v4003_v52 = vld [vmem:[%s3439_s24 + $0xca] sm:$0xff]  ;;  %v4005_v55 = vpop.f32.mrf.mxu1 }
  0xf1   : > { %v1398_v14 = vpop.f32.mrf.mxu0 }
  0xf2   : > { %2953 = vmatmul.msk.f32.gmra.mxu2 %vm265_vm1, %v3988_v48  ;;  %3019 = vmatmul.msk.f32.gmra.mxu3 %vm265_vm1, %v3781_v21 }
  0xf3   : > { %3135 = vmatmul.msk.f32.vlgmr.msrb.gmra.mxu1 %vm265_vm1, %v3704_v57 }
  0xf4   : > { %3085 = vmatmul.msk.f32.gmra.mxu0 %vm265_vm1, %v3550_v26  ;;  %v599_v26 = vadd.f32 %v3756_v8, %v3761_v12 }
  0xf5   : > { %v841_v9 = vpop.f32.mrf.mxu2  ;;  %v1120_v54 = vpop.f32.mrf.mxu3 }
  0xf6   : > { %v937_v63 = vadd.f32 %v841_v9, %v596_v22 }
  0xf8   : > { %v1216_v18 = vadd.f32 %v1120_v54, %v937_v63 }
  0xf9   : > { %v1401_v48 = vpop.f32.mrf.mxu0 }
  0xfa   : > { %v4007_v21 = vadd.f32 %v1398_v14, %v1216_v18  ;;  %2954 = vmatmul.msk.f32.gmra.mxu2 %vm265_vm1, %v4003_v52  ;;  %3020 = vmatmul.msk.f32.gmra.mxu3 %vm265_vm1, %v3801_v32  ;;  %v4020_v14 = vld [vmem:[%s3439_s24 + $0xda] sm:$0xff] }
  0xfb   : > { %3136 = vmatmul.msk.f32.gmra.mxu1 %vm265_vm1, %v3718_v59  ;;  %v4032_v59 = vpop.f32.mrf.mxu1 }
  0xfc   : > { %3086 = vmatmul.msk.f32.gmra.mxu0 %vm265_vm1, %v3570_v30  ;;  %v602_v30 = vadd.f32 %v3778_v20, %v3783_v24 }
  0xfd   : > { %v844_v57 = vpop.f32.mrf.mxu2  ;;  %v1123_v62 = vpop.f32.mrf.mxu3 }
  0xfe   : > { %v938_v0 = vadd.f32 %v844_v57, %v599_v26 }
 0x100   : > { %v1217_v18 = vadd.f32 %v1123_v62, %v938_v0  ;;  %v4054_v62 = vld [vmem:[%s3439_s24 + $0xf2] sm:$0xff] }
 0x101   : > { %v1404_v22 = vpop.f32.mrf.mxu0 }
 0x102   : > { %v4022_v9 = vadd.f32 %v1401_v48, %v1217_v18  ;;  %2955 = vmatmul.msk.f32.gmra.mxu2 %vm265_vm1, %v4020_v14  ;;  %3021 = vmatmul.msk.f32.gmra.mxu3 %vm265_vm1, %v3823_v44  ;;  %v4037_v48 = vld [vmem:[%s3439_s24 + $0xe2] sm:$0xff] }
 0x103   : > { %3137 = vmatmul.msk.f32.gmra.mxu1 %vm265_vm1, %v3732_v61  ;;  %v4051_v26 = vpop.f32.mrf.mxu1 }
 0x104   : > { %3087 = vmatmul.msk.f32.gmra.mxu0 %vm265_vm1, %v3594_v35  ;;  %v605_v35 = vadd.f32 %v3805_v34, %v3803_v33 }
 0x105   : > { %v847_v8 = vpop.f32.mrf.mxu2  ;;  %v1126_v12 = vpop.f32.mrf.mxu3 }
 0x106   : > { %v939_v32 = vadd.f32 %v847_v8, %v602_v30  ;;  %v4069_v30 = vld [vmem:[%s3439_s24 + $0xfa] sm:$0xff] }
 0x108   : > { %v1218_v54 = vadd.f32 %v1126_v12, %v939_v32 }
 0x109   : > { %v1407_v63 = vpop.f32.mrf.mxu0 }
 0x10a   : > { %v4039_v44 = vadd.f32 %v1404_v22, %v1218_v54  ;;  %2956 = vmatmul.msk.f32.gmra.mxu2 %vm265_vm1, %v4037_v48  ;;  %3022 = vmatmul.msk.f32.gmra.mxu3 %vm265_vm1, %v3843_v28 }
 0x10b   : > { %3138 = vmatmul.msk.f32.gmra.mxu1 %vm265_vm1, %v3754_v5  ;;  %v4071_v8 = vpop.f32.mrf.mxu1 }
 0x10c   : > { %3088 = vmatmul.msk.f32.gmra.mxu0 %vm265_vm1, %v3618_v40  ;;  %v608_v40 = vadd.f32 %v3833_v42, %v3825_v53 }
 0x10d   : > { %v850_v20 = vpop.f32.mrf.mxu2  ;;  %v1129_v24 = vpop.f32.mrf.mxu3 }
 0x10e   : > { %v940_v57 = vadd.f32 %v850_v20, %v605_v35 }
 0x110   : > { %v1219_v0 = vadd.f32 %v1129_v24, %v940_v57 }
 0x111   : > { %v1410_v18 = vpop.f32.mrf.mxu0 }
 0x112   : > { %v4056_v28 = vadd.f32 %v1407_v63, %v1219_v0  ;;  %2957 = vmatmul.msk.f32.gmra.mxu2 %vm265_vm1, %v4054_v62  ;;  %3023 = vmatmul.msk.f32.gmra.mxu3 %vm265_vm1, %v3863_v37  ;;  %v4086_v63 = vld [vmem:[%s3439_s24 + $0x10a] sm:$0xff]  ;;  %v4103_v0 = vld [vmem:[%s3439_s24 + $0x112] sm:$0xff] }
 0x113   : > { %3139 = vmatmul.msk.f32.gmra.mxu1 %vm265_vm1, %v3776_v17  ;;  %v4088_v24 = vpop.f32.mrf.mxu1 }
 0x114   : > { %3089 = vmatmul.msk.f32.gmra.mxu0 %vm265_vm1, %v3642_v45  ;;  %v611_v45 = vadd.f32 %v3857_v4, %v3845_v16 }
 0x115   : > { %v853_v33 = vpop.f32.mrf.mxu2  ;;  %v1132_v34 = vpop.f32.mrf.mxu3 }
 0x116   : > { %v941_v22 = vadd.f32 %v853_v33, %v608_v40 }
 0x118   : > { %v1220_v12 = vadd.f32 %v1132_v34, %v941_v22  ;;  %v4120_v22 = vld [vmem:[%s3439_s24 + $0x122] sm:$0xff] }
 0x119   : > { %v1413_v32 = vpop.f32.mrf.mxu0 }
 0x11a   : > { %v4073_v37 = vadd.f32 %v1410_v18, %v1220_v12  ;;  %2958 = vmatmul.msk.f32.gmra.mxu2 %vm265_vm1, %v4069_v30  ;;  %3024 = vmatmul.msk.f32.gmra.mxu3 %vm265_vm1, %v3883_v13 }
 0x11b   : > { %3140 = vmatmul.msk.f32.gmra.mxu1 %vm265_vm1, %v3798_v29 }
 0x11c   : > { %3090 = vmatmul.msk.f32.gmra.mxu0 %vm265_vm1, %v3662_v49  ;;  %v614_v49 = vadd.f32 %v3880_v31, %v3865_v25 }
 0x11d   : > { %v856_v53 = vpop.f32.mrf.mxu2  ;;  %v1135_v42 = vpop.f32.mrf.mxu3 }
 0x11e   : > { %v942_v54 = vadd.f32 %v856_v53, %v611_v45 }
 0x120   : > { %v1221_v35 = vadd.f32 %v1135_v42, %v942_v54  ;;  %v3265_v42 = vld [vmem:[%s4871_s1 + $0x1c] sm:$0xf]  ;;  %v4144_v54 = vld [vmem:[%s3439_s24 + $0x12a] sm:$0xff] }
 0x121   : > { %v1416_v20 = vpop.f32.mrf.mxu0  ;;  %3266 = vmatpush.msk.msrb.mxu3 %vm362_vm0, %v3265_v42 }
 0x122   : > { %v4090_v13 = vadd.f32 %v1413_v32, %v1221_v35  ;;  %2959 = vmatmul.msk.f32.gmra.mxu2 %vm265_vm1, %v4086_v63  ;;  %3025 = vmatmul.msk.f32.gmra.mxu3 %vm265_vm1, %v3901_v27  ;;  %v4115_v27 = vpop.f32.mrf.mxu1 }
 0x123   : > { %3141 = vmatmul.msk.f32.gmra.mxu1 %vm265_vm1, %v3820_v39 }
 0x124   : > { %3091 = vmatmul.msk.f32.gmra.mxu0 %vm265_vm1, %v3445_v3  ;;  %v617_v3 = vadd.f32 %v3908_v46, %v3885_v50  ;;  %v620_v46 = vadd.f32 %v3937_v10, %v3903_v1 }
 0x125   : > { %v859_v4 = vpop.f32.mrf.mxu2  ;;  %v1138_v16 = vpop.f32.mrf.mxu3 }
 0x126   : > { %v943_v57 = vadd.f32 %v859_v4, %v614_v49 }
 0x128   : > { %v1222_v18 = vadd.f32 %v1138_v16, %v943_v57  ;;  %v3331_v16 = vld [vmem:[%s4871_s1 + $0x20] sm:$0xf] }
 0x129   : > { %v1419_v40 = vpop.f32.mrf.mxu0  ;;  %v4163_v57 = vld [vmem:[%s3439_s24 + $0x13a] sm:$0xff]  ;;  %3332 = vmatpush.msk.msra.mxu0 %vm362_vm0, %v3331_v16 }
 0x12a   : > { %v4105_v33 = vadd.f32 %v1416_v20, %v1222_v18  ;;  %2960 = vmatmul.msk.f32.gmra.mxu2 %vm265_vm1, %v4103_v0  ;;  %3026 = vmatmul.msk.f32.gmra.mxu3 %vm265_vm1, %v3927_v19  ;;  %v4138_v53 = vpop.f32.mrf.mxu1 }
 0x12b   : > { %3142 = vmatmul.msk.f32.gmra.mxu1 %vm265_vm1, %v3840_v38 }
 0x12c   : > { %3092 = vmatmul.msk.f32.gmra.mxu0 %vm265_vm1, %v3459_v7  ;;  %v3199_v7 = vld [vmem:[%s4871_s1 + $0x18] sm:$0xf] }
 0x12d   : > { %v862_v31 = vpop.f32.mrf.mxu2  ;;  %v1141_v25 = vpop.f32.mrf.mxu3  ;;  %3200 = vmatpush.msk.msra.mxu2 %vm362_vm0, %v3199_v7 }
 0x12e   : > { %v944_v34 = vadd.f32 %v862_v31, %v617_v3 }
 0x130   : > { %v1223_v12 = vadd.f32 %v1141_v25, %v944_v34  ;;  %v4181_v34 = vld [vmem:[%s3439_s24 + $0x142] sm:$0xff] }
 0x131   : > { %v1422_v32 = vpop.f32.mrf.mxu0 }
 0x132   : > { %v4122_v19 = vadd.f32 %v1419_v40, %v1223_v12  ;;  %2961 = vmatmul.msk.f32.gmra.mxu2 %vm265_vm1, %v4120_v22  ;;  %3027 = vmatmul.msk.f32.gmra.mxu3 %vm265_vm1, %v3949_v6 }
 0x133   : > { %3143 = vmatmul.msk.f32.gmra.mxu1 %vm265_vm1, %v3860_v43 }
 0x134   : > { %3093 = vmatmul.msk.f32.gmra.mxu0 %vm265_vm1, %v3473_v11  ;;  %v623_v11 = vadd.f32 %v3963_v2, %v3929_v58  ;;  %v4922_v2 = vld [vmem:[#allocation2_spill] sm:$0xff] }
 0x135   : > { %v865_v50 = vpop.f32.mrf.mxu2  ;;  %v1144_v45 = vpop.f32.mrf.mxu3 }
 0x136   : > { %v945_v6 = vadd.f32 %v865_v50, %v620_v46  ;;  %v4923_v46 = vld [vmem:[#allocation6_spill] sm:$0xff]  ;;  %v4925_v50 = vld [vmem:[#allocation3_spill] sm:$0xff] }
 0x138   : > { %v1224_v1 = vadd.f32 %v1144_v45, %v945_v6 }
 0x139   : > { %v1425_v10 = vpop.f32.mrf.mxu0 }
 0x13a   : > { %v4147_v35 = vadd.f32 %v1422_v32, %v1224_v1  ;;  %2962 = vmatmul.msk.f32.gmra.mxu2 %vm265_vm1, %v4144_v54  ;;  %3028 = vmatmul.msk.f32.gmra.mxu3 %vm265_vm1, %v3971_v23  ;;  %v4166_v23 = vpop.f32.mrf.mxu1  ;;  %v4198_v1 = vld [vmem:[%s3439_s24 + $0x152] sm:$0xff] }
 0x13b   : > { %3144 = vmatmul.msk.f32.gmra.mxu1 %vm265_vm1, %v3878_v47 }
 0x13c   : > { %3094 = vmatmul.msk.f32.gmra.mxu0 %vm265_vm1, %v3493_v15  ;;  %v626_v15 = vadd.f32 %v3990_v56, %v3951_v60  ;;  %v4924_v56 = vld [vmem:[#allocation23_spill] sm:$0xff]  ;;  %v629_v60 = vadd.f32 %v4005_v55, %v3973_v41  ;;  %v4927_v41 = vld [vmem:[#allocation26_spill] sm:$0xff]  ;;  %v4928_v55 = vld [vmem:[#allocation9_spill] sm:$0xff] }
 0x13d   : > { %v868_v20 = vpop.f32.mrf.mxu2  ;;  %v1147_v49 = vpop.f32.mrf.mxu3 }
 0x13e   : > { %v946_v4 = vadd.f32 %v868_v20, %v623_v11 }
 0x140   : > { %v1225_v18 = vadd.f32 %v1147_v49, %v946_v4  ;;  %v4926_v49 = vld [vmem:[#allocation7_spill] sm:$0xff]  ;;  %v632_v4 = vadd.f32 %v4032_v59, %v4928_v55  ;;  %v4930_v59 = vld [vmem:[#allocation8_spill] sm:$0xff] }
 0x141   : > { %v1428_v40 = vpop.f32.mrf.mxu0 }
 0x142   : > { %v4168_v58 = vadd.f32 %v1425_v10, %v1225_v18  ;;  %2963 = vmatmul.msk.f32.gmra.mxu2 %vm265_vm1, %v4163_v57  ;;  %3029 = vmatmul.msk.f32.gmra.mxu3 %vm265_vm1, %v3597_v36  ;;  %v4183_v7 = vpop.f32.mrf.mxu1  ;;  %v4929_v18 = vld [vmem:[#allocation4_spill] sm:$0xff] }
 0x143   : > { %3145 = vmatmul.msk.f32.gmra.mxu1 %vm265_vm1, %v3898_v51 }
 0x144   : > { %3095 = vmatmul.msk.f32.gmra.mxu0 %vm265_vm1, %v4922_v2 }
 0x145   : > { %v871_v3 = vpop.f32.mrf.mxu2  ;;  %v1150_v31 = vpop.f32.mrf.mxu3 }
 0x146   : > { %v947_v25 = vadd.f32 %v871_v3, %v626_v15  ;;  %v4215_v3 = vld [vmem:[%s3439_s24 + $0x15a] sm:$0xff] }
 0x148   : > { %v1226_v12 = vadd.f32 %v1150_v31, %v947_v25 }
 0x149   : > { %v1431_v32 = vpop.f32.mrf.mxu0 }
 0x14a   : > { %v4185_v36 = vadd.f32 %v1428_v40, %v1226_v12  ;;  %2964 = vmatmul.msk.f32.gmra.mxu2 %vm265_vm1, %v4181_v34  ;;  %3030 = vmatmul.msk.f32.gmra.mxu3 %vm265_vm1, %v4923_v46  ;;  %v4210_v16 = vpop.f32.mrf.mxu1  ;;  %v4932_v46 = vld [vmem:[#allocation11_spill] sm:$0xff] }
 0x14b   : > { %3146 = vmatmul.msk.f32.gmra.mxu1 %vm265_vm1, %v4924_v56 }
 0x14c   : > { %3096 = vmatmul.msk.f32.gmra.mxu0 %vm265_vm1, %v4925_v50  ;;  %v4933_v50 = vld [vmem:[#allocation5_spill] sm:$0xff] }
 0x14d   : > { %v874_v45 = vpop.f32.mrf.mxu2  ;;  %v1153_v6 = vpop.f32.mrf.mxu3 }
 0x14e   : > { %v948_v42 = vadd.f32 %v874_v45, %v629_v60  ;;  %v635_v60 = vadd.f32 %v4051_v26, %v4932_v46 }
 0x150   : > { %v1227_v10 = vadd.f32 %v1153_v6, %v948_v42 }
 0x151   : > { %v1434_v11 = vpop.f32.mrf.mxu0 }
 0x152   : > { %v4200_v20 = vadd.f32 %v1431_v32, %v1227_v10  ;;  %2965 = vmatmul.msk.f32.gmra.mxu2 %vm265_vm1, %v4198_v1  ;;  %3031 = vmatmul.msk.f32.gmra.mxu3 %vm265_vm1, %v4926_v49  ;;  %v4931_v32 = vld [vmem:[#allocation29_spill] sm:$0xff]  ;;  %v4229_v42 = vpop.f32.mrf.mxu1  ;;  %v4235_v49 = vld [vmem:[%s3439_s24 + $0x180] sm:$0xff] }
 0x153   : > { %3147 = vmatmul.msk.f32.gmra.mxu1 %vm265_vm1, %v4927_v41 }
 0x154   : > { %3097 = vmatmul.msk.f32.gmra.mxu0 %vm265_vm1, %v4929_v18  ;;  %v4238_v18 = vld [vmem:[%s3439_s24 + $0x181] sm:$0xff] }
 0x155   : > { %v877_v40 = vpop.f32.mrf.mxu2  ;;  %v1156_v15 = vpop.f32.mrf.mxu3 }
 0x156   : > { %v949_v2 = vadd.f32 %v877_v40, %v632_v4  ;;  %v4935_v40 = vld [vmem:[#allocation32_spill] sm:$0xff] }
 0x158   : > { %v1228_v31 = vadd.f32 %v1156_v15, %v949_v2  ;;  %v4936_v15 = vld [vmem:[#allocation13_spill] sm:$0xff] }
 0x159   : > { %v1437_v25 = vpop.f32.mrf.mxu0  ;;  %v638_v2 = vadd.f32 %v4071_v8, %v4936_v15  ;;  %v4939_v8 = vld [vmem:[#allocation15_spill] sm:$0xff] }
 0x15a   : > { %v4217_v12 = vadd.f32 %v1434_v11, %v1228_v31  ;;  %2966 = vmatmul.msk.f32.gmra.mxu2 %vm265_vm1, %v4215_v3  ;;  %3032 = vmatmul.msk.f32.gmra.mxu3 %vm265_vm1, %v4930_v59  ;;  %v4232_v11 = vld [vmem:[%s3439_s24 + $0x16a] sm:$0xff]  ;;  %v641_v15 = vadd.f32 %v4088_v24, %v4939_v8  ;;  %v4941_v24 = vld [vmem:[#allocation17_spill] sm:$0xff] }
 0x15b   : > { %3148 = vmatmul.msk.f32.gmra.mxu1 %vm265_vm1, %v4931_v32  ;;  %v644_v8 = vadd.f32 %v4115_v27, %v4941_v24  ;;  %v4942_v27 = vld [vmem:[#allocation18_spill] sm:$0xff] }
 0x15c   : > { %3098 = vmatmul.msk.f32.gmra.mxu0 %vm265_vm1, %v4933_v50  ;;  %v4258_v50 = vpop.f32.mrf.mxu1 }
 0x15d   : > { %v880_v45 = vpop.f32.mrf.mxu2  ;;  %v1159_v6 = vpop.f32.mrf.mxu3 }
 0x15e   : > { %v950_v10 = vadd.f32 %v880_v45, %v635_v60  ;;  %v4256_v60 = vld [vmem:[%s3439_s24 + $0x188] sm:$0xff] }
 0x15f   : > { %4937 = vst [vmem:[#allocation6_spill] sm:$0xff] %v4256_v60 }
 0x160   : > { %v1229_v55 = vadd.f32 %v1159_v6, %v950_v10  ;;  %v4261_v10 = vld [vmem:[%s3439_s24 + $0x189] sm:$0xff] }
 0x161   : > { %v1440_v4 = vpop.f32.mrf.mxu0 }
 0x162   : > { %v4240_v26 = vadd.f32 %v1437_v25, %v1229_v55  ;;  %2967 = vmatmul.msk.f32.gmra.mxu2 %vm265_vm1, %v4232_v11  ;;  %3033 = vmatmul.msk.f32.gmra.mxu3 %vm265_vm1, %v4235_v49  ;;  %v4253_v25 = vld [vmem:[%s3439_s24 + $0x172] sm:$0xff] }
 0x163   : > { %3149 = vmatmul.msk.f32.gmra.mxu1 %vm265_vm1, %v4935_v40 }
 0x164   : > { %4934 = vst [vmem:[#allocation2_spill] sm:$0xff] %v4240_v26  ;;  %3099 = vmatmul.msk.f32.gmra.mxu0 %vm265_vm1, %v4238_v18  ;;  %v4277_v26 = vpop.f32.mrf.mxu1 }
 0x165   : > { %v883_v31 = vpop.f32.mrf.mxu2  ;;  %v1162_v59 = vpop.f32.mrf.mxu3 }
 0x166   : > { %v951_v46 = vadd.f32 %v883_v31, %v638_v2 }
 0x168   : > { %v1230_v45 = vadd.f32 %v1162_v59, %v951_v46  ;;  %v3167_v59 = vld [vmem:[%s3439_s24 + $0x30] sm:$0xff] }
 0x169   : > { %v1443_v6 = vpop.f32.mrf.mxu0  ;;  %v3233_v46 = vld [vmem:[%s3439_s24 + $0x31] sm:$0xff] }
 0x16a   : > { %v4263_v55 = vadd.f32 %v1440_v4, %v1230_v45  ;;  %2968 = vmatmul.msk.f32.gmra.mxu2 %vm265_vm1, %v4253_v25  ;;  %3034 = vmatmul.msk.f32.gmra.mxu3 %vm265_vm1, %v4256_v60 }
 0x16b   : > { %3150 = vmatmul.msk.f32.gmra.mxu1 %vm265_vm1, %v4003_v52 }
 0x16c   : > { %4938 = vst [vmem:[#allocation23_spill] sm:$0xff] %v4263_v55  ;;  %3100 = vmatmul.msk.f32.gmra.mxu0 %vm265_vm1, %v4261_v10 }
 0x16d   : > { %v886_v2 = vpop.f32.mrf.mxu2  ;;  %v1165_v31 = vpop.f32.mrf.mxu3 }
 0x16e   : > { %v952_v4 = vadd.f32 %v886_v2, %v641_v15 }
 0x170   : > { %v1231_v45 = vadd.f32 %v1165_v31, %v952_v4  ;;  %v3234_v4 = vld [vmem:[%s3439_s24 + $0x39] sm:$0xff] }
 0x171   : > { %v1446_v55 = vpop.f32.mrf.mxu0 }
 0x172   : > { %v4279_v60 = vadd.f32 %v1443_v6, %v1231_v45  ;;  %3201 = vmatmul.msk.f32.vlgmr.msra.gmra.mxu2 %vm265_vm1, %v3167_v59  ;;  %3267 = vmatmul.msk.f32.vlgmr.msrb.gmra.mxu3 %vm265_vm1, %v3233_v46  ;;  %v3168_v6 = vld [vmem:[%s3439_s24 + $0x38] sm:$0xff]  ;;  %v4299_v46 = vpop.f32.mrf.mxu1 }
 0x173   : > { %3151 = vmatmul.msk.f32.gmra.mxu1 %vm265_vm1, %v4020_v14 }
 0x174   : > { %4940 = vst [vmem:[#allocation3_spill] sm:$0xff] %v4279_v60  ;;  %3333 = vmatmul.msk.f32.vlgmr.msra.gmra.mxu0 %vm265_vm1, %v3732_v61  ;;  %v647_v61 = vadd.f32 %v4138_v53, %v4942_v27  ;;  %v4943_v53 = vld [vmem:[#allocation19_spill] sm:$0xff] }
 0x175   : > { %v889_v15 = vpop.f32.mrf.mxu2  ;;  %v1168_v2 = vpop.f32.mrf.mxu3 }
 0x176   : > { %v953_v31 = vadd.f32 %v889_v15, %v644_v8  ;;  %v3169_v15 = vld [vmem:[%s3439_s24 + $0x48] sm:$0xff] }
 0x178   : > { %v1232_v45 = vadd.f32 %v1168_v2, %v953_v31  ;;  %v3235_v2 = vld [vmem:[%s3439_s24 + $0x49] sm:$0xff] }
 0x179   : > { %v1449_v59 = vpop.f32.mrf.mxu0 }
 0x17a   : > { %v4291_v60 = vadd.f32 %v1446_v55, %v1232_v45  ;;  %3202 = vmatmul.msk.f32.gmra.mxu2 %vm265_vm1, %v3168_v6  ;;  %3268 = vmatmul.msk.f32.gmra.mxu3 %vm265_vm1, %v3234_v4 }
 0x17b   : > { %3152 = vmatmul.msk.f32.gmra.mxu1 %vm265_vm1, %v4037_v48 }
 0x17c   : > { %3334 = vmatmul.msk.f32.gmra.mxu0 %vm265_vm1, %v3754_v5  ;;  %v650_v5 = vadd.f32 %v4166_v23, %v4943_v53 }
 0x17d   : > { %v892_v24 = vpop.f32.mrf.mxu2  ;;  %v1171_v8 = vpop.f32.mrf.mxu3 }
 0x17e   : > { %v954_v55 = vadd.f32 %v892_v24, %v647_v61  ;;  %v4315_v61 = vpop.f32.mrf.mxu1  ;;  %v3170_v24 = vld [vmem:[%s3439_s24 + $0x50] sm:$0xff] }
 0x180   : > { %v1233_v31 = vadd.f32 %v1171_v8, %v954_v55  ;;  %v3236_v8 = vld [vmem:[%s3439_s24 + $0x51] sm:$0xff] }
 0x181   : > { %v1452_v6 = vpop.f32.mrf.mxu0 }
 0x182   : > { %v4305_v4 = vadd.f32 %v1449_v59, %v1233_v31  ;;  %3203 = vmatmul.msk.f32.gmra.mxu2 %vm265_vm1, %v3169_v15  ;;  %3269 = vmatmul.msk.f32.gmra.mxu3 %vm265_vm1, %v3235_v2 }
 0x183   : > { %3153 = vmatmul.msk.f32.gmra.mxu1 %vm265_vm1, %v4054_v62 }
 0x184   : > { %3335 = vmatmul.msk.f32.gmra.mxu0 %vm265_vm1, %v3776_v17  ;;  %v4944_v17 = vld [vmem:[#allocation20_spill] sm:$0xff] }
 0x185   : > { %v895_v45 = vpop.f32.mrf.mxu2  ;;  %v1174_v27 = vpop.f32.mrf.mxu3  ;;  %v653_v23 = vadd.f32 %v4183_v7, %v4944_v17 }
 0x186   : > { %v955_v59 = vadd.f32 %v895_v45, %v650_v5  ;;  %v3237_v45 = vld [vmem:[%s3439_s24 + $0x61] sm:$0xff] }
 0x188   : > { %v1234_v55 = vadd.f32 %v1174_v27, %v955_v59  ;;  %v4331_v27 = vpop.f32.mrf.mxu1 }
 0x189   : > { %v1455_v15 = vpop.f32.mrf.mxu0 }
 0x18a   : > { %v4319_v2 = vadd.f32 %v1452_v6, %v1234_v55  ;;  %3204 = vmatmul.msk.f32.gmra.mxu2 %vm265_vm1, %v3170_v24  ;;  %3270 = vmatmul.msk.f32.gmra.mxu3 %vm265_vm1, %v3236_v8  ;;  %v3171_v6 = vld [vmem:[%s3439_s24 + $0x60] sm:$0xff] }
 0x18b   : > { %3154 = vmatmul.msk.f32.gmra.mxu1 %vm265_vm1, %v4069_v30 }
 0x18c   : > { %3336 = vmatmul.msk.f32.gmra.mxu0 %vm265_vm1, %v3798_v29  ;;  %v4945_v29 = vld [vmem:[#allocation21_spill] sm:$0xff] }
 0x18d   : > { %v898_v31 = vpop.f32.mrf.mxu2  ;;  %v1177_v53 = vpop.f32.mrf.mxu3  ;;  %v656_v7 = vadd.f32 %v4210_v16, %v4945_v29 }
 0x18e   : > { %v956_v5 = vadd.f32 %v898_v31, %v653_v23  ;;  %v3238_v31 = vld [vmem:[%s3439_s24 + $0x69] sm:$0xff] }
 0x190   : > { %v1235_v59 = vadd.f32 %v1177_v53, %v956_v5 }
 0x191   : > { %v1458_v24 = vpop.f32.mrf.mxu0 }
 0x192   : > { %v4333_v8 = vadd.f32 %v1455_v15, %v1235_v59  ;;  %3205 = vmatmul.msk.f32.gmra.mxu2 %vm265_vm1, %v3171_v6  ;;  %3271 = vmatmul.msk.f32.gmra.mxu3 %vm265_vm1, %v3237_v45  ;;  %v3172_v15 = vld [vmem:[%s3439_s24 + $0x68] sm:$0xff]  ;;  %v4345_v6 = vpop.f32.mrf.mxu1 }
 0x193   : > { %3155 = vmatmul.msk.f32.gmra.mxu1 %vm265_vm1, %v4086_v63 }
 0x194   : > { %3337 = vmatmul.msk.f32.gmra.mxu0 %vm265_vm1, %v3820_v39  ;;  %v4946_v39 = vld [vmem:[#allocation24_spill] sm:$0xff] }
 0x195   : > { %v901_v55 = vpop.f32.mrf.mxu2  ;;  %v1180_v17 = vpop.f32.mrf.mxu3  ;;  %v659_v16 = vadd.f32 %v4229_v42, %v4946_v39  ;;  %v4947_v42 = vld [vmem:[#allocation27_spill] sm:$0xff] }
 0x196   : > { %v957_v23 = vadd.f32 %v901_v55, %v656_v7  ;;  %v3239_v55 = vld [vmem:[%s3439_s24 + $0x79] sm:$0xff] }
 0x198   : > { %v1236_v53 = vadd.f32 %v1180_v17, %v957_v23 }
 0x199   : > { %v1461_v5 = vpop.f32.mrf.mxu0 }
 0x19a   : > { %v4347_v45 = vadd.f32 %v1458_v24, %v1236_v53  ;;  %3206 = vmatmul.msk.f32.gmra.mxu2 %vm265_vm1, %v3172_v15  ;;  %3272 = vmatmul.msk.f32.gmra.mxu3 %vm265_vm1, %v3238_v31  ;;  %v3173_v24 = vld [vmem:[%s3439_s24 + $0x78] sm:$0xff]  ;;  %v4367_v31 = vpop.f32.mrf.mxu1 }
 0x19b   : > { %3156 = vmatmul.msk.f32.gmra.mxu1 %vm265_vm1, %v4103_v0 }
 0x19c   : > { %3338 = vmatmul.msk.f32.gmra.mxu0 %vm265_vm1, %v3840_v38  ;;  %v662_v38 = vadd.f32 %v4258_v50, %v4947_v42  ;;  %v4948_v50 = vld [vmem:[#allocation30_spill] sm:$0xff] }
 0x19d   : > { %v904_v59 = vpop.f32.mrf.mxu2  ;;  %v1183_v29 = vpop.f32.mrf.mxu3 }
 0x19e   : > { %v958_v7 = vadd.f32 %v904_v59, %v659_v16  ;;  %v3174_v16 = vld [vmem:[%s3439_s24 + $0x80] sm:$0xff] }
 0x19f   : > { %v3240_v59 = vld [vmem:[%s3439_s24 + $0x81] sm:$0xff] }
 0x1a0   : > { %v1237_v17 = vadd.f32 %v1183_v29, %v958_v7 }
 0x1a1   : > { %v1464_v23 = vpop.f32.mrf.mxu0 }
 0x1a2   : > { %v4359_v15 = vadd.f32 %v1461_v5, %v1237_v17  ;;  %3207 = vmatmul.msk.f32.gmra.mxu2 %vm265_vm1, %v3173_v24  ;;  %3273 = vmatmul.msk.f32.gmra.mxu3 %vm265_vm1, %v3239_v55  ;;  %v4383_v42 = vpop.f32.mrf.mxu1 }
 0x1a3   : > { %3157 = vmatmul.msk.f32.gmra.mxu1 %vm265_vm1, %v4120_v22 }
 0x1a4   : > { %3339 = vmatmul.msk.f32.gmra.mxu0 %vm265_vm1, %v3860_v43  ;;  %v665_v43 = vadd.f32 %v4277_v26, %v4948_v50 }
 0x1a5   : > { %v907_v53 = vpop.f32.mrf.mxu2  ;;  %v1186_v39 = vpop.f32.mrf.mxu3 }
 0x1a6   : > { %v959_v5 = vadd.f32 %v907_v53, %v662_v38  ;;  %v3175_v38 = vld [vmem:[%s3439_s24 + $0x90] sm:$0xff] }
 0x1a7   : > { %v3241_v53 = vld [vmem:[%s3439_s24 + $0x91] sm:$0xff] }
 0x1a8   : > { %v1238_v29 = vadd.f32 %v1186_v39, %v959_v5 }
 0x1a9   : > { %v1467_v7 = vpop.f32.mrf.mxu0 }
 0x1aa   : > { %v4373_v24 = vadd.f32 %v1464_v23, %v1238_v29  ;;  %3208 = vmatmul.msk.f32.gmra.mxu2 %vm265_vm1, %v3174_v16  ;;  %3274 = vmatmul.msk.f32.gmra.mxu3 %vm265_vm1, %v3240_v59 }
 0x1ab   : > { %3158 = vmatmul.msk.f32.gmra.mxu1 %vm265_vm1, %v4144_v54 }
 0x1ac   : > { %3340 = vmatmul.msk.f32.gmra.mxu0 %vm265_vm1, %v3878_v47  ;;  %v4949_v47 = vld [vmem:[#allocation10_spill] sm:$0xff] }
 0x1ad   : > { %v910_v55 = vpop.f32.mrf.mxu2  ;;  %v1189_v17 = vpop.f32.mrf.mxu3  ;;  %v668_v26 = vadd.f32 %v4299_v46, %v4949_v47 }
 0x1ae   : > { %v960_v23 = vadd.f32 %v910_v55, %v665_v43  ;;  %v3242_v43 = vld [vmem:[%s3439_s24 + $0x99] sm:$0xff]  ;;  %v4399_v55 = vpop.f32.mrf.mxu1 }
 0x1b0   : > { %v1239_v39 = vadd.f32 %v1189_v17, %v960_v23 }
 0x1b1   : > { %v1470_v5 = vpop.f32.mrf.mxu0 }
 0x1b2   : > { %v4387_v16 = vadd.f32 %v1467_v7, %v1239_v39  ;;  %3209 = vmatmul.msk.f32.gmra.mxu2 %vm265_vm1, %v3175_v38  ;;  %3275 = vmatmul.msk.f32.gmra.mxu3 %vm265_vm1, %v3241_v53  ;;  %v3176_v7 = vld [vmem:[%s3439_s24 + $0x98] sm:$0xff] }
 0x1b3   : > { %3159 = vmatmul.msk.f32.gmra.mxu1 %vm265_vm1, %v4163_v57 }
 0x1b4   : > { %3341 = vmatmul.msk.f32.gmra.mxu0 %vm265_vm1, %v3898_v51  ;;  %v4950_v51 = vld [vmem:[#allocation12_spill] sm:$0xff] }
 0x1b5   : > { %v913_v59 = vpop.f32.mrf.mxu2  ;;  %v1192_v29 = vpop.f32.mrf.mxu3  ;;  %v671_v46 = vadd.f32 %v4315_v61, %v4950_v51 }
 0x1b6   : > { %v961_v50 = vadd.f32 %v913_v59, %v668_v26  ;;  %v3243_v26 = vld [vmem:[%s3439_s24 + $0xa9] sm:$0xff] }
 0x1b8   : > { %v1240_v17 = vadd.f32 %v1192_v29, %v961_v50  ;;  %v4413_v50 = vpop.f32.mrf.mxu1 }
 0x1b9   : > { %v1473_v23 = vpop.f32.mrf.mxu0 }
 0x1ba   : > { %v4401_v38 = vadd.f32 %v1470_v5, %v1240_v17  ;;  %3210 = vmatmul.msk.f32.gmra.mxu2 %vm265_vm1, %v3176_v7  ;;  %3276 = vmatmul.msk.f32.gmra.mxu3 %vm265_vm1, %v3242_v43  ;;  %v3177_v5 = vld [vmem:[%s3439_s24 + $0xa8] sm:$0xff] }
 0x1bb   : > { %3160 = vmatmul.msk.f32.gmra.mxu1 %vm265_vm1, %v4181_v34 }
 0x1bc   : > { %3342 = vmatmul.msk.f32.gmra.mxu0 %vm265_vm1, %v4924_v56  ;;  %v4951_v56 = vld [vmem:[#allocation14_spill] sm:$0xff] }
 0x1bd   : > { %v916_v53 = vpop.f32.mrf.mxu2  ;;  %v1195_v39 = vpop.f32.mrf.mxu3  ;;  %v674_v61 = vadd.f32 %v4331_v27, %v4951_v56  ;;  %v4952_v27 = vld [vmem:[#allocation16_spill] sm:$0xff]  ;;  %v3179_v56 = vld [vmem:[%s3439_s24 + $0xc0] sm:$0xff] }
 0x1be   : > { %v962_v47 = vadd.f32 %v916_v53, %v671_v46  ;;  %v3244_v46 = vld [vmem:[%s3439_s24 + $0xb1] sm:$0xff] }
 0x1c0   : > { %v1241_v59 = vadd.f32 %v1195_v39, %v962_v47 }
 0x1c1   : > { %v1476_v29 = vpop.f32.mrf.mxu0 }
 0x1c2   : > { %v4415_v7 = vadd.f32 %v1473_v23, %v1241_v59  ;;  %3211 = vmatmul.msk.f32.gmra.mxu2 %vm265_vm1, %v3177_v5  ;;  %3277 = vmatmul.msk.f32.gmra.mxu3 %vm265_vm1, %v3243_v26  ;;  %v3178_v23 = vld [vmem:[%s3439_s24 + $0xb0] sm:$0xff]  ;;  %v4435_v5 = vpop.f32.mrf.mxu1 }
 0x1c3   : > { %3161 = vmatmul.msk.f32.gmra.mxu1 %vm265_vm1, %v4198_v1 }
 0x1c4   : > { %3343 = vmatmul.msk.f32.gmra.mxu0 %vm265_vm1, %v4927_v41  ;;  %v677_v41 = vadd.f32 %v4345_v6, %v4952_v27  ;;  %v3246_v27 = vld [vmem:[%s3439_s24 + $0xc9] sm:$0xff] }
 0x1c5   : > { %v919_v43 = vpop.f32.mrf.mxu2  ;;  %v1198_v17 = vpop.f32.mrf.mxu3 }
 0x1c6   : > { %v963_v51 = vadd.f32 %v919_v43, %v674_v61  ;;  %v3245_v61 = vld [vmem:[%s3439_s24 + $0xc1] sm:$0xff] }
 0x1c8   : > { %v1242_v53 = vadd.f32 %v1198_v17, %v963_v51 }
 0x1c9   : > { %v1479_v39 = vpop.f32.mrf.mxu0 }
 0x1ca   : > { %v4427_v47 = vadd.f32 %v1476_v29, %v1242_v53  ;;  %3212 = vmatmul.msk.f32.gmra.mxu2 %vm265_vm1, %v3178_v23  ;;  %3278 = vmatmul.msk.f32.gmra.mxu3 %vm265_vm1, %v3244_v46  ;;  %v4953_v23 = vld [vmem:[#allocation22_spill] sm:$0xff]  ;;  %v4450_v53 = vpop.f32.mrf.mxu1 }
 0x1cb   : > { %3162 = vmatmul.msk.f32.gmra.mxu1 %vm265_vm1, %v4215_v3 }
 0x1cc   : > { %3344 = vmatmul.msk.f32.gmra.mxu0 %vm265_vm1, %v4931_v32 }
 0x1cd   : > { %v922_v26 = vpop.f32.mrf.mxu2  ;;  %v1201_v59 = vpop.f32.mrf.mxu3 }
 0x1ce   : > { %v964_v29 = vadd.f32 %v922_v26, %v677_v41 }
 0x1d0   : > { %v1243_v43 = vadd.f32 %v1201_v59, %v964_v29 }
 0x1d1   : > { %v1482_v17 = vpop.f32.mrf.mxu0 }
 0x1d2   : > { %v4441_v51 = vadd.f32 %v1479_v39, %v1243_v43  ;;  %3213 = vmatmul.msk.f32.gmra.mxu2 %vm265_vm1, %v3179_v56  ;;  %3279 = vmatmul.msk.f32.gmra.mxu3 %vm265_vm1, %v3245_v61  ;;  %v3180_v39 = vld [vmem:[%s3439_s24 + $0xc8] sm:$0xff]  ;;  %v4954_v56 = vld [vmem:[#allocation25_spill] sm:$0xff] }
 0x1d3   : > { %3163 = vmatmul.msk.f32.gmra.mxu1 %vm265_vm1, %v4232_v11  ;;  %v3181_v43 = vld [vmem:[%s3439_s24 + $0xd8] sm:$0xff] }
 0x1d4   : > { %3345 = vmatmul.msk.f32.gmra.mxu0 %vm265_vm1, %v4935_v40 }
 0x1d5   : > { %v925_v32 = vpop.f32.mrf.mxu2  ;;  %v1204_v6 = vpop.f32.mrf.mxu3 }
 0x1d6   : > { %v965_v46 = vadd.f32 %v925_v32, %v4953_v23  ;;  %v3247_v32 = vld [vmem:[%s3439_s24 + $0xd9] sm:$0xff]  ;;  %v4468_v23 = vpop.f32.mrf.mxu1 }
 0x1d8   : > { %v1244_v41 = vadd.f32 %v1204_v6, %v965_v46  ;;  %v4466_v6 = vld [vmem:[%s3439_s24 + $0x182] sm:$0xff] }
 0x1d9   : > { %v1485_v26 = vpop.f32.mrf.mxu0 }
 0x1da   : > { %v4454_v59 = vadd.f32 %v1482_v17, %v1244_v41  ;;  %3214 = vmatmul.msk.f32.gmra.mxu2 %vm265_vm1, %v3180_v39  ;;  %3280 = vmatmul.msk.f32.gmra.mxu3 %vm265_vm1, %v3246_v27  ;;  %v4956_v41 = vld [vmem:[#allocation28_spill] sm:$0xff] }
 0x1db   : > { %3164 = vmatmul.msk.f32.gmra.mxu1 %vm265_vm1, %v4253_v25 }
 0x1dc   : > { %3346 = vmatmul.msk.f32.gmra.mxu0 %vm265_vm1, %v4003_v52 }
 0x1dd   : > { %v928_v40 = vpop.f32.mrf.mxu2  ;;  %v1207_v29 = vpop.f32.mrf.mxu3 }
 0x1de   : > { %v966_v61 = vadd.f32 %v928_v40, %v4954_v56  ;;  %v3248_v56 = vld [vmem:[%s3439_s24 + $0xe1] sm:$0xff] }
 0x1e0   : > { %v1245_v17 = vadd.f32 %v1207_v29, %v966_v61  ;;  %v3182_v29 = vld [vmem:[%s3439_s24 + $0xe0] sm:$0xff]  ;;  %v4482_v61 = vld [vmem:[%s3439_s24 + $0x18a] sm:$0xff] }
 0x1e1   : > { %v1488_v46 = vpop.f32.mrf.mxu0 }
 0x1e2   : > { %v4470_v39 = vadd.f32 %v1485_v26, %v1245_v17  ;;  %3215 = vmatmul.msk.f32.gmra.mxu2 %vm265_vm1, %v3181_v43  ;;  %3281 = vmatmul.msk.f32.gmra.mxu3 %vm265_vm1, %v3247_v32  ;;  %v4488_v32 = vpop.f32.mrf.mxu1 }
 0x1e3   : > { %3165 = vmatmul.msk.f32.gmra.mxu1 %vm265_vm1, %v4466_v6 }
 0x1e4   : > { %4955 = vst [vmem:[#allocation7_spill] sm:$0xff] %v4470_v39  ;;  %3347 = vmatmul.msk.f32.gmra.mxu0 %vm265_vm1, %v4020_v14 }
 0x1e5   : > { %v931_v52 = vpop.f32.mrf.mxu2  ;;  %v1210_v27 = vpop.f32.mrf.mxu3 }
 0x1e6   : > { %v967_v40 = vadd.f32 %v931_v52, %v4956_v41 }
 0x1e8   : > { %v1246_v26 = vadd.f32 %v1210_v27, %v967_v40  ;;  %v4958_v27 = vld [vmem:[#allocation31_spill] sm:$0xff]  ;;  %v3249_v40 = vld [vmem:[%s3439_s24 + $0xf1] sm:$0xff] }
 0x1e9   : > { %v1491_v43 = vpop.f32.mrf.mxu0 }
 0x1ea   : > { %v4484_v17 = vadd.f32 %v1488_v46, %v1246_v26  ;;  %3216 = vmatmul.msk.f32.gmra.mxu2 %vm265_vm1, %v3182_v29  ;;  %3282 = vmatmul.msk.f32.gmra.mxu3 %vm265_vm1, %v3248_v56  ;;  %v3183_v46 = vld [vmem:[%s3439_s24 + $0xf0] sm:$0xff]  ;;  %v1772_v56 = vadd.f32 %v4367_v31, %v4007_v21  ;;  %v1773_v21 = vadd.f32 %v4383_v42, %v4022_v9 }
 0x1eb   : > { %3166 = vmatmul.msk.f32.gmra.mxu1 %vm265_vm1, %v4482_v61  ;;  %v1774_v9 = vadd.f32 %v4399_v55, %v4039_v44  ;;  %v1775_v44 = vadd.f32 %v4413_v50, %v4056_v28  ;;  %v3253_v28 = vld [vmem:[%s3439_s24 + $0x121] sm:$0xff] }
 0x1ec   : > { %4957 = vst [vmem:[#allocation26_spill] sm:$0xff] %v4484_v17  ;;  %3348 = vmatmul.msk.f32.gmra.mxu0 %vm265_vm1, %v4037_v48  ;;  %v3184_v17 = vld [vmem:[%s3439_s24 + $0xf8] sm:$0xff] }
 0x1ed   : > { %v934_v14 = vpop.f32.mrf.mxu2  ;;  %v1213_v52 = vpop.f32.mrf.mxu3 }
 0x1ee   : > { %v968_v41 = vadd.f32 %v934_v14, %v4958_v27 }
 0x1f0   : > { %v1247_v26 = vadd.f32 %v1213_v52, %v968_v41  ;;  %v3250_v52 = vld [vmem:[%s3439_s24 + $0xf9] sm:$0xff] }
 0x1f1   : > { %v2511_v29 = vpop.f32.mrf.mxu0 }
 0x1f2   : > { %v4497_v39 = vadd.f32 %v1491_v43, %v1247_v26  ;;  %3217 = vmatmul.msk.f32.gmra.mxu2 %vm265_vm1, %v3183_v46  ;;  %3283 = vmatmul.msk.f32.gmra.mxu3 %vm265_vm1, %v3249_v40  ;;  %v3185_v40 = vld [vmem:[%s3439_s24 + $0x108] sm:$0xff] }
 0x1f4   : > { %3349 = vmatmul.msk.f32.gmra.mxu0 %vm265_vm1, %v4054_v62 }
 0x1f5   : > { %v1955_v48 = vpop.f32.mrf.mxu2  ;;  %v2233_v14 = vpop.f32.mrf.mxu3 }
 0x1f6   : > { %v2051_v27 = vadd.f32 %v1955_v48, %v1772_v56  ;;  %v3251_v56 = vld [vmem:[%s3439_s24 + $0x109] sm:$0xff] }
 0x1f8   : > { %v2329_v41 = vadd.f32 %v2233_v14, %v2051_v27 }
 0x1f9   : > { %v2514_v43 = vpop.f32.mrf.mxu0 }
 0x1fa   : > { %v2607_v26 = vadd.f32 %v2511_v29, %v2329_v41  ;;  %3218 = vmatmul.msk.f32.gmra.mxu2 %vm265_vm1, %v3184_v17  ;;  %3284 = vmatmul.msk.f32.gmra.mxu3 %vm265_vm1, %v3250_v52  ;;  %v4515_v29 = vpop.f32.mrf.mxu1  ;;  %v3186_v52 = vld [vmem:[%s3439_s24 + $0x110] sm:$0xff] }
 0x1fb   : > { %v3252_v41 = vld [vmem:[%s3439_s24 + $0x111] sm:$0xff] }
 0x1fc   : > { %3350 = vmatmul.msk.f32.gmra.mxu0 %vm265_vm1, %v4069_v30 }
 0x1fd   : > { %v1958_v62 = vpop.f32.mrf.mxu2  ;;  %v2236_v31 = vpop.f32.mrf.mxu3 }
 0x1fe   : > { %v2052_v46 = vadd.f32 %v1958_v62, %v1773_v21 }
 0x200   : > { %v2330_v48 = vadd.f32 %v2236_v31, %v2052_v46 }
 0x201   : > { %v2517_v14 = vpop.f32.mrf.mxu0 }
 0x202   : > { %v2608_v17 = vadd.f32 %v2514_v43, %v2330_v48  ;;  %3219 = vmatmul.msk.f32.gmra.mxu2 %vm265_vm1, %v3185_v40  ;;  %3285 = vmatmul.msk.f32.gmra.mxu3 %vm265_vm1, %v3251_v56  ;;  %v4529_v55 = vpop.f32.mrf.mxu1 }
 0x204   : > { %3351 = vmatmul.msk.f32.gmra.mxu0 %vm265_vm1, %v4086_v63  ;;  %v4532_v63 = vsel %vm2639_vm2, %v2607_v26, -inf }
 0x205   : > { %v1961_v30 = vpop.f32.mrf.mxu2  ;;  %v2239_v42 = vpop.f32.mrf.mxu3 }
 0x206   : > { %v2053_v27 = vadd.f32 %v1961_v30, %v1774_v9  ;;  %v4548_v30 = vsel %vm2639_vm2, %v2608_v17, -inf }
 0x208   : > { %v2331_v21 = vadd.f32 %v2239_v42, %v2053_v27 }
 0x209   : > { %v2520_v43 = vpop.f32.mrf.mxu0 }
 0x20a   : > { %v2609_v62 = vadd.f32 %v2517_v14, %v2331_v21  ;;  %3220 = vmatmul.msk.f32.gmra.mxu2 %vm265_vm1, %v3186_v52  ;;  %3286 = vmatmul.msk.f32.gmra.mxu3 %vm265_vm1, %v3252_v41  ;;  %v3187_v14 = vld [vmem:[%s3439_s24 + $0x120] sm:$0xff]  ;;  %v4557_v21 = vpop.f32.mrf.mxu1 }
 0x20c   : > { %v4535_v31 = vsel %vm2639_vm2, %v2609_v62, -inf  ;;  %3352 = vmatmul.msk.f32.gmra.mxu0 %vm265_vm1, %v4103_v0  ;;  %v1776_v0 = vadd.f32 %v4435_v5, %v4073_v37  ;;  %v3188_v37 = vld [vmem:[%s3439_s24 + $0x128] sm:$0xff] }
 0x20d   : > { %v1964_v46 = vpop.f32.mrf.mxu2  ;;  %v2242_v40 = vpop.f32.mrf.mxu3  ;;  %v3254_v5 = vld [vmem:[%s3439_s24 + $0x129] sm:$0xff] }
 0x20e   : > { %v2054_v48 = vadd.f32 %v1964_v46, %v1775_v44 }
 0x210   : > { %v2332_v50 = vadd.f32 %v2242_v40, %v2054_v48 }
 0x211   : > { %v2523_v9 = vpop.f32.mrf.mxu0 }
 0x212   : > { %v2610_v26 = vadd.f32 %v2520_v43, %v2332_v50  ;;  %3221 = vmatmul.msk.f32.gmra.mxu2 %vm265_vm1, %v3187_v14  ;;  %3287 = vmatmul.msk.f32.gmra.mxu3 %vm265_vm1, %v3253_v28  ;;  %v3189_v14 = vld [vmem:[%s3439_s24 + $0x138] sm:$0xff]  ;;  %v4569_v50 = vpop.f32.mrf.mxu1 }
 0x213   : > { %v3255_v28 = vld [vmem:[%s3439_s24 + $0x139] sm:$0xff] }
 0x214   : > { %v4551_v42 = vsel %vm2639_vm2, %v2610_v26, -inf  ;;  %3353 = vmatmul.msk.f32.gmra.mxu0 %vm265_vm1, %v4120_v22  ;;  %v1777_v22 = vadd.f32 %v4450_v53, %v4090_v13  ;;  %v1778_v13 = vadd.f32 %v4468_v23, %v4105_v33  ;;  %v1779_v33 = vadd.f32 %v4488_v32, %v4122_v19 }
 0x215   : > { %v1967_v27 = vpop.f32.mrf.mxu2  ;;  %v2245_v52 = vpop.f32.mrf.mxu3 }
 0x216   : > { %v2055_v43 = vadd.f32 %v1967_v27, %v1776_v0 }
 0x218   : > { %v2333_v17 = vadd.f32 %v2245_v52, %v2055_v43  ;;  %v3190_v52 = vld [vmem:[%s3439_s24 + $0x140] sm:$0xff] }
 0x219   : > { %v2526_v62 = vpop.f32.mrf.mxu0  ;;  %v3256_v43 = vld [vmem:[%s3439_s24 + $0x141] sm:$0xff] }
 0x21a   : > { %v2611_v44 = vadd.f32 %v2523_v9, %v2333_v17  ;;  %3222 = vmatmul.msk.f32.gmra.mxu2 %vm265_vm1, %v3188_v37  ;;  %3288 = vmatmul.msk.f32.gmra.mxu3 %vm265_vm1, %v3254_v5  ;;  %v4579_v17 = vpop.f32.mrf.mxu1 }
 0x21c   : > { %3354 = vmatmul.msk.f32.gmra.mxu0 %vm265_vm1, %v4144_v54 }
 0x21d   : > { %v1970_v46 = vpop.f32.mrf.mxu2  ;;  %v2248_v40 = vpop.f32.mrf.mxu3 }
 0x21e   : > { %v2056_v48 = vadd.f32 %v1970_v46, %v1777_v22 }
 0x220   : > { %v2334_v9 = vadd.f32 %v2248_v40, %v2056_v48 }
 0x221   : > { %v2529_v26 = vpop.f32.mrf.mxu0 }
 0x222   : > { %v2612_v0 = vadd.f32 %v2526_v62, %v2334_v9  ;;  %3223 = vmatmul.msk.f32.gmra.mxu2 %vm265_vm1, %v3189_v14  ;;  %3289 = vmatmul.msk.f32.gmra.mxu3 %vm265_vm1, %v3255_v28  ;;  %v3191_v14 = vld [vmem:[%s3439_s24 + $0x150] sm:$0xff]  ;;  %v4601_v9 = vpop.f32.mrf.mxu1 }
 0x223   : > { %v3257_v28 = vld [vmem:[%s3439_s24 + $0x151] sm:$0xff] }
 0x224   : > { %3355 = vmatmul.msk.f32.gmra.mxu0 %vm265_vm1, %v4163_v57  ;;  %v4586_v57 = vsel %vm2639_vm2, %v2611_v44, -inf }
 0x225   : > { %v1973_v54 = vpop.f32.mrf.mxu2  ;;  %v2251_v53 = vpop.f32.mrf.mxu3 }
 0x226   : > { %v2057_v27 = vadd.f32 %v1973_v54, %v1778_v13 }
 0x228   : > { %v2335_v37 = vadd.f32 %v2251_v53, %v2057_v27 }
 0x229   : > { %v2532_v5 = vpop.f32.mrf.mxu0 }
 0x22a   : > { %v2613_v62 = vadd.f32 %v2529_v26, %v2335_v37  ;;  %3224 = vmatmul.msk.f32.gmra.mxu2 %vm265_vm1, %v3190_v52  ;;  %3290 = vmatmul.msk.f32.gmra.mxu3 %vm265_vm1, %v3256_v43  ;;  %v4604_v26 = vsel %vm2639_vm2, %v2612_v0, -inf }
 0x22c   : > { %v4589_v23 = vsel %vm2639_vm2, %v2613_v62, -inf  ;;  %3356 = vmatmul.msk.f32.gmra.mxu0 %vm265_vm1, %v4181_v34  ;;  %v1780_v34 = vadd.f32 %v4515_v29, %v4147_v35  ;;  %v3192_v35 = vld [vmem:[%s3439_s24 + $0x158] sm:$0xff] }
 0x22d   : > { %v1976_v22 = vpop.f32.mrf.mxu2  ;;  %v2254_v46 = vpop.f32.mrf.mxu3  ;;  %v3258_v29 = vld [vmem:[%s3439_s24 + $0x159] sm:$0xff] }
 0x22e   : > { %v2058_v48 = vadd.f32 %v1976_v22, %v1779_v33  ;;  %v4621_v33 = vpop.f32.mrf.mxu1 }
 0x230   : > { %v2336_v19 = vadd.f32 %v2254_v46, %v2058_v48  ;;  %v3193_v46 = vld [vmem:[%s3439_s24 + $0x168] sm:$0xff] }
 0x231   : > { %v2535_v32 = vpop.f32.mrf.mxu0  ;;  %v3259_v48 = vld [vmem:[%s3439_s24 + $0x169] sm:$0xff] }
 0x232   : > { %v2614_v44 = vadd.f32 %v2532_v5, %v2336_v19  ;;  %3225 = vmatmul.msk.f32.gmra.mxu2 %vm265_vm1, %v3191_v14  ;;  %3291 = vmatmul.msk.f32.gmra.mxu3 %vm265_vm1, %v3257_v28 }
 0x234   : > { %v4607_v13 = vsel %vm2639_vm2, %v2614_v44, -inf  ;;  %3357 = vmatmul.msk.f32.gmra.mxu0 %vm265_vm1, %v4198_v1  ;;  %v1781_v1 = vadd.f32 %v4529_v55, %v4168_v58  ;;  %v1782_v58 = vadd.f32 %v4557_v21, %v4185_v36  ;;  %v3194_v44 = vld [vmem:[%s3439_s24 + $0x170] sm:$0xff] }
 0x235   : > { %v1979_v54 = vpop.f32.mrf.mxu2  ;;  %v2257_v53 = vpop.f32.mrf.mxu3 }
 0x236   : > { %v2059_v52 = vadd.f32 %v1979_v54, %v1780_v34  ;;  %v3260_v34 = vld [vmem:[%s3439_s24 + $0x171] sm:$0xff]  ;;  %v1721_v54 = vpop.f32.mrf.mxu1 }
 0x238   : > { %v2337_v43 = vadd.f32 %v2257_v53, %v2059_v52 }
 0x239   : > { %v2538_v37 = vpop.f32.mrf.mxu0 }
 0x23a   : > { %v2615_v0 = vadd.f32 %v2535_v32, %v2337_v43  ;;  %3226 = vmatmul.msk.f32.gmra.mxu2 %vm265_vm1, %v3192_v35  ;;  %3292 = vmatmul.msk.f32.gmra.mxu3 %vm265_vm1, %v3258_v29  ;;  %v1783_v29 = vadd.f32 %v4569_v50, %v4200_v20  ;;  %v1784_v20 = vadd.f32 %v4579_v17, %v4217_v12 }
 0x23c   : > { %3358 = vmatmul.msk.f32.gmra.mxu0 %vm265_vm1, %v4215_v3  ;;  %v4638_v36 = vsel %vm2639_vm2, %v2615_v0, -inf }
 0x23d   : > { %v1982_v5 = vpop.f32.mrf.mxu2  ;;  %v2260_v62 = vpop.f32.mrf.mxu3 }
 0x23e   : > { %v2060_v22 = vadd.f32 %v1982_v5, %v1781_v1 }
 0x240   : > { %v2338_v14 = vadd.f32 %v2260_v62, %v2060_v22  ;;  %v1724_v22 = vpop.f32.mrf.mxu1 }
 0x241   : > { %v2541_v28 = vpop.f32.mrf.mxu0 }
 0x242   : > { %v2616_v19 = vadd.f32 %v2538_v37, %v2338_v14  ;;  %3227 = vmatmul.msk.f32.gmra.mxu2 %vm265_vm1, %v3193_v46  ;;  %3293 = vmatmul.msk.f32.gmra.mxu3 %vm265_vm1, %v3259_v48 }
 0x244   : > { %3359 = vmatmul.msk.f32.gmra.mxu0 %vm265_vm1, %v4232_v11 }
 0x245   : > { %v1985_v3 = vpop.f32.mrf.mxu2  ;;  %v2263_v55 = vpop.f32.mrf.mxu3 }
 0x246   : > { %v2061_v32 = vadd.f32 %v1985_v3, %v1782_v58 }
 0x248   : > { %v2339_v53 = vadd.f32 %v2263_v55, %v2061_v32  ;;  %v1727_v58 = vpop.f32.mrf.mxu1 }
 0x249   : > { %v2544_v52 = vpop.f32.mrf.mxu0 }
 0x24a   : > { %v2617_v35 = vadd.f32 %v2541_v28, %v2339_v53  ;;  %3228 = vmatmul.msk.f32.gmra.mxu2 %vm265_vm1, %v3194_v44  ;;  %3294 = vmatmul.msk.f32.gmra.mxu3 %vm265_vm1, %v3260_v34  ;;  %v4959_v28 = vld [vmem:[#allocation6_spill] sm:$0xff]  ;;  %v3197_v44 = vld [vmem:[%s3439_s24 + $0x198] sm:$0xff] }
 0x24b   : > { %v3263_v34 = vld [vmem:[%s3439_s24 + $0x199] sm:$0xff] }
 0x24c   : > { %v4641_v11 = vsel %vm2639_vm2, %v2617_v35, -inf  ;;  %3360 = vmatmul.msk.f32.gmra.mxu0 %vm265_vm1, %v4253_v25  ;;  %v4654_v25 = vsel %vm2639_vm2, %v2616_v19, -inf  ;;  %v4960_v19 = vld [vmem:[#allocation2_spill] sm:$0xff] }
 0x24d   : > { %v2654_v21 = vmax.f32 %v4638_v36, %v4641_v11  ;;  %v1988_v43 = vpop.f32.mrf.mxu2  ;;  %v2266_v37 = vpop.f32.mrf.mxu3  ;;  %v3329_v35 = vld [vmem:[%s3439_s24 + $0x19a] sm:$0xff]  ;;  %v4968_v36 = vmax.f32 %v4532_v63, %v4535_v31  ;;  %v2693_v31 = vld [vmem:[%s4873_s3 + $0x28] sm:$0xff] }
 0x24e   : > { %v2062_v1 = vadd.f32 %v1988_v43, %v1783_v29  ;;  %v2692_v63 = vld [vmem:[%s4873_s3 + $0x20] sm:$0xff]  ;;  %v2697_v11 = vld [vmem:[%s4873_s3 + $0x48] sm:$0xff] }
 0x250   : > { %v2340_v5 = vadd.f32 %v2266_v37, %v2062_v1  ;;  %v1730_v37 = vpop.f32.mrf.mxu1 }
 0x251   : > { %v2547_v62 = vpop.f32.mrf.mxu0 }
 0x252   : > { %v2618_v46 = vadd.f32 %v2544_v52, %v2340_v5  ;;  %3229 = vmatmul.msk.f32.gmra.mxu2 %vm265_vm1, %v4235_v49  ;;  %3295 = vmatmul.msk.f32.gmra.mxu3 %vm265_vm1, %v4238_v18  ;;  %v3198_v5 = vld [vmem:[%s3439_s24 + $0x1a0] sm:$0xff] }
 0x254   : > { %v4657_v50 = vsel %vm2639_vm2, %v2618_v46, -inf  ;;  %3361 = vmatmul.msk.f32.gmra.mxu0 %vm265_vm1, %v4466_v6  ;;  %v1785_v6 = vadd.f32 %v4601_v9, %v4960_v19 }
 0x255   : > { %v2657_v0 = vmax.f32 %v4654_v25, %v4657_v50  ;;  %v1991_v49 = vpop.f32.mrf.mxu2  ;;  %v2269_v48 = vpop.f32.mrf.mxu3  ;;  %v2688_v25 = vld [vmem:[%s4873_s3] sm:$0xff]  ;;  %v2699_v50 = vld [vmem:[%s4873_s3 + $0x58] sm:$0xff] }
 0x256   : > { %v2063_v18 = vadd.f32 %v1991_v49, %v1784_v20  ;;  %v3330_v49 = vld [vmem:[%s3439_s24 + $0x1a2] sm:$0xff] }
 0x258   : > { %v2341_v14 = vadd.f32 %v2269_v48, %v2063_v18  ;;  %v4962_v18 = vld [vmem:[#allocation3_spill] sm:$0xff] }
 0x259   : > { %v2550_v12 = vpop.f32.mrf.mxu0 }
 0x25a   : > { %v2619_v17 = vadd.f32 %v2547_v62, %v2341_v14  ;;  %3230 = vmatmul.msk.f32.gmra.mxu2 %vm265_vm1, %v4959_v28  ;;  %3296 = vmatmul.msk.f32.gmra.mxu3 %vm265_vm1, %v4261_v10  ;;  %v4961_v10 = vld [vmem:[#allocation23_spill] sm:$0xff]  ;;  %v1787_v14 = vadd.f32 %v1721_v54, %v4962_v18  ;;  %v1788_v54 = vadd.f32 %v1724_v22, %v4291_v60 }
 0x25b   : > { %v1786_v9 = vadd.f32 %v4621_v33, %v4961_v10  ;;  %v3264_v62 = vld [vmem:[%s3439_s24 + $0x1a1] sm:$0xff] }
 0x25c   : > { %3362 = vmatmul.msk.f32.gmra.mxu0 %vm265_vm1, %v4482_v61  ;;  %v4686_v33 = vsel %vm2639_vm2, %v2619_v17, -inf }
 0x25d   : > { %v1994_v3 = vpop.f32.mrf.mxu2  ;;  %v2272_v55 = vpop.f32.mrf.mxu3 }
 0x25e   : > { %v2064_v32 = vadd.f32 %v1994_v3, %v1785_v6 }
 0x260   : > { %v2342_v53 = vadd.f32 %v2272_v55, %v2064_v32  ;;  %v1733_v55 = vpop.f32.mrf.mxu1 }
 0x261   : > { %v2553_v52 = vpop.f32.mrf.mxu0 }
 0x262   : > { %v2620_v29 = vadd.f32 %v2550_v12, %v2342_v53  ;;  %3231 = vmatmul.msk.f32.gmra.mxu2 %vm265_vm1, %v3197_v44  ;;  %3297 = vmatmul.msk.f32.gmra.mxu3 %vm265_vm1, %v3263_v34 }
 0x264   : > { %3363 = vmatmul.msk.f32.gmra.mxu0 %vm265_vm1, %v3329_v35  ;;  %v4696_v17 = vsel %vm2639_vm2, %v2620_v29, -inf }
 0x265   : > { %v1997_v61 = vpop.f32.mrf.mxu2  ;;  %v2275_v43 = vpop.f32.mrf.mxu3 }
 0x266   : > { %v2065_v1 = vadd.f32 %v1997_v61, %v1786_v9 }
 0x268   : > { %v2343_v46 = vadd.f32 %v2275_v43, %v2065_v1  ;;  %v1736_v1 = vpop.f32.mrf.mxu1 }
 0x269   : > { %v2556_v20 = vpop.f32.mrf.mxu0 }
 0x26a   : > { %v2621_v48 = vadd.f32 %v2553_v52, %v2343_v46  ;;  %3232 = vmatmul.msk.f32.gmra.mxu2 %vm265_vm1, %v3198_v5  ;;  %3298 = vmatmul.msk.f32.gmra.mxu3 %vm265_vm1, %v3264_v62  ;;  %v1789_v62 = vadd.f32 %v1727_v58, %v4305_v4 }
 0x26c   : > { %v4689_v12 = vsel %vm2639_vm2, %v2621_v48, -inf  ;;  %3364 = vmatmul.msk.f32.gmra.mxu0 %vm265_vm1, %v3330_v49  ;;  %v1790_v48 = vadd.f32 %v1730_v37, %v4319_v2 }
 0x26d   : > { %v2660_v28 = vmax.f32 %v4686_v33, %v4689_v12  ;;  %v2000_v19 = vpop.f32.mrf.mxu2  ;;  %v2278_v6 = vpop.f32.mrf.mxu3  ;;  %v4967_v33 = vmax.f32 %v4548_v30, %v4551_v42  ;;  %v2691_v30 = vld [vmem:[%s4873_s3 + $0x18] sm:$0xff]  ;;  %v2694_v42 = vld [vmem:[%s4873_s3 + $0x30] sm:$0xff]  ;;  %v2701_v12 = vld [vmem:[%s4873_s3 + $0x68] sm:$0xff] }
 0x26e   : > { %v2066_v3 = vadd.f32 %v2000_v19, %v1787_v14 }
 0x270   : > { %v2344_v32 = vadd.f32 %v2278_v6, %v2066_v3  ;;  %v1739_v18 = vpop.f32.mrf.mxu1 }
 0x271   : > { %v2559_v44 = vpop.f32.mrf.mxu0 }
 0x272   : > { %v2622_v34 = vadd.f32 %v2556_v20, %v2344_v32 }
 0x274   : > { %v4699_v53 = vsel %vm2639_vm2, %v2622_v34, -inf }
 0x275   : > { %v2663_v52 = vmax.f32 %v4696_v17, %v4699_v53  ;;  %v2003_v35 = vpop.f32.mrf.mxu2  ;;  %v2281_v10 = vpop.f32.mrf.mxu3  ;;  %v4966_v17 = vmax.f32 %v4586_v57, %v4589_v23  ;;  %v2690_v57 = vld [vmem:[%s4873_s3 + $0x10] sm:$0xff]  ;;  %v2695_v23 = vld [vmem:[%s4873_s3 + $0x38] sm:$0xff] }
 0x276   : > { %v2067_v9 = vadd.f32 %v2003_v35, %v1788_v54  ;;  %v1791_v54 = vadd.f32 %v1733_v55, %v4333_v8  ;;  %v2703_v53 = vld [vmem:[%s4873_s3 + $0x78] sm:$0xff] }
 0x278   : > { %v2345_v61 = vadd.f32 %v2281_v10, %v2067_v9  ;;  %v1742_v37 = vpop.f32.mrf.mxu1 }
 0x279   : > { %v2562_v43 = vpop.f32.mrf.mxu0 }
 0x27a   : > { %v2623_v5 = vadd.f32 %v2559_v44, %v2345_v61 }
 0x27c   : > { %v4707_v44 = vsel %vm2639_vm2, %v2623_v5, -inf }
 0x27d   : > { %v2006_v46 = vpop.f32.mrf.mxu2  ;;  %v2284_v60 = vpop.f32.mrf.mxu3 }
 0x27e   : > { %v2068_v22 = vadd.f32 %v2006_v46, %v1789_v62  ;;  %v1792_v62 = vadd.f32 %v1736_v1, %v4347_v45 }
 0x280   : > { %v2346_v29 = vadd.f32 %v2284_v60, %v2068_v22 }
 0x281   : > { %v2565_v20 = vpop.f32.mrf.mxu0 }
 0x282   : > { %v2624_v49 = vadd.f32 %v2562_v43, %v2346_v29  ;;  %v1745_v29 = vpop.f32.mrf.mxu1 }
 0x284   : > { %v4716_v8 = vsel %vm2639_vm2, %v2624_v49, -inf }
 0x285   : > { %v2009_v14 = vpop.f32.mrf.mxu2  ;;  %v2287_v19 = vpop.f32.mrf.mxu3 }
 0x286   : > { %v2069_v6 = vadd.f32 %v2009_v14, %v1790_v48 }
 0x288   : > { %v2347_v3 = vadd.f32 %v2287_v19, %v2069_v6  ;;  %v1793_v19 = vadd.f32 %v1739_v18, %v4359_v15 }
 0x289   : > { %v2568_v32 = vpop.f32.mrf.mxu0 }
 0x28a   : > { %v2625_v34 = vadd.f32 %v2565_v20, %v2347_v3 }
 0x28c   : > { %v4710_v4 = vsel %vm2639_vm2, %v2625_v34, -inf }
 0x28d   : > { %v2666_v58 = vmax.f32 %v4707_v44, %v4710_v4  ;;  %v2012_v35 = vpop.f32.mrf.mxu2  ;;  %v2290_v2 = vpop.f32.mrf.mxu3 }
 0x28e   : > { %v2070_v10 = vadd.f32 %v2012_v35, %v1791_v54  ;;  %v1794_v54 = vadd.f32 %v1742_v37, %v4373_v24 }
 0x290   : > { %v2348_v9 = vadd.f32 %v2290_v2, %v2070_v10 }
 0x291   : > { %v2571_v61 = vpop.f32.mrf.mxu0 }
 0x292   : > { %v2626_v43 = vadd.f32 %v2568_v32, %v2348_v9  ;;  %v1748_v32 = vpop.f32.mrf.mxu1 }
 0x294   : > { %v4719_v55 = vsel %vm2639_vm2, %v2626_v43, -inf }
 0x295   : > { %v2669_v5 = vmax.f32 %v4716_v8, %v4719_v55  ;;  %v2015_v46 = vpop.f32.mrf.mxu2  ;;  %v2293_v60 = vpop.f32.mrf.mxu3 }
 0x296   : > { %v2071_v22 = vadd.f32 %v2015_v46, %v1792_v62  ;;  %v1795_v46 = vadd.f32 %v1745_v29, %v4387_v16 }
 0x298   : > { %v2349_v20 = vadd.f32 %v2293_v60, %v2071_v22 }
 0x299   : > { %v2574_v48 = vpop.f32.mrf.mxu0 }
 0x29a   : > { %v2627_v14 = vadd.f32 %v2571_v61, %v2349_v20  ;;  %v1751_v61 = vpop.f32.mrf.mxu1 }
 0x29c   : > { %v4727_v15 = vsel %vm2639_vm2, %v2627_v14, -inf }
 0x29d   : > { %v2018_v6 = vpop.f32.mrf.mxu2  ;;  %v2296_v45 = vpop.f32.mrf.mxu3 }
 0x29e   : > { %v2072_v1 = vadd.f32 %v2018_v6, %v1793_v19 }
 0x2a0   : > { %v2350_v49 = vadd.f32 %v2296_v45, %v2072_v1 }
 0x2a1   : > { %v2577_v3 = vpop.f32.mrf.mxu0 }
 0x2a2   : > { %v2628_v34 = vadd.f32 %v2574_v48, %v2350_v49  ;;  %v1754_v1 = vpop.f32.mrf.mxu1 }
 0x2a4   : > { %v4735_v6 = vsel %vm2639_vm2, %v2628_v34, -inf  ;;  %v1798_v34 = vadd.f32 %v1754_v1, %v4427_v47 }
 0x2a5   : > { %v2021_v35 = vpop.f32.mrf.mxu2  ;;  %v2299_v2 = vpop.f32.mrf.mxu3 }
 0x2a6   : > { %v2073_v10 = vadd.f32 %v2021_v35, %v1794_v54  ;;  %v1796_v35 = vadd.f32 %v1748_v32, %v4401_v38 }
 0x2a8   : > { %v2351_v9 = vadd.f32 %v2299_v2, %v2073_v10 }
 0x2a9   : > { %v2580_v43 = vpop.f32.mrf.mxu0 }
 0x2aa   : > { %v2629_v62 = vadd.f32 %v2577_v3, %v2351_v9  ;;  %v1757_v2 = vpop.f32.mrf.mxu1 }
 0x2ab   : > { %v1799_v27 = vadd.f32 %v1757_v2, %v4441_v51 }
 0x2ac   : > { %v4730_v18 = vsel %vm2639_vm2, %v2629_v62, -inf }
 0x2ad   : > { %v2672_v60 = vmax.f32 %v4727_v15, %v4730_v18  ;;  %v2024_v22 = vpop.f32.mrf.mxu2  ;;  %v2302_v24 = vpop.f32.mrf.mxu3  ;;  %v3380_v18 = vld [vmem:[%s4872_s2] ss:$0 sm:$0xff] }
 0x2ae   : > { %v2074_v37 = vadd.f32 %v2024_v22, %v1795_v46  ;;  %v1797_v22 = vadd.f32 %v1751_v61, %v4415_v7 }
 0x2b0   : > { %v2352_v20 = vadd.f32 %v2302_v24, %v2074_v37 }
 0x2b1   : > { %v2583_v48 = vpop.f32.mrf.mxu0 }
 0x2b2   : > { %v2630_v19 = vadd.f32 %v2580_v43, %v2352_v20  ;;  %v1760_v41 = vpop.f32.mrf.mxu1 }
 0x2b4   : > { %v4738_v16 = vsel %vm2639_vm2, %v2630_v19, -inf }
 0x2b5   : > { %v2675_v29 = vmax.f32 %v4735_v6, %v4738_v16  ;;  %v2027_v14 = vpop.f32.mrf.mxu2  ;;  %v2305_v45 = vpop.f32.mrf.mxu3 }
 0x2b6   : > { %v2075_v10 = vadd.f32 %v2027_v14, %v1796_v35 }
 0x2b8   : > { %v2353_v43 = vadd.f32 %v2305_v45, %v2075_v10 }
 0x2b9   : > { %v2586_v49 = vpop.f32.mrf.mxu0 }
 0x2ba   : > { %v2631_v37 = vadd.f32 %v2583_v48, %v2353_v43 }
 0x2bc   : > { %v2676_v38 = vsel %vm2639_vm2, %v2631_v37, -inf }
 0x2bd   : > { %v2030_v3 = vpop.f32.mrf.mxu2  ;;  %v2308_v54 = vpop.f32.mrf.mxu3 }
 0x2be   : > { %v2076_v20 = vadd.f32 %v2030_v3, %v1797_v22  ;;  %v1763_v3 = vpop.f32.mrf.mxu1 }
 0x2c0   : > { %v2354_v32 = vadd.f32 %v2308_v54, %v2076_v20 }
 0x2c1   : > { %v2589_v9 = vpop.f32.mrf.mxu0 }
 0x2c2   : > { %v2632_v10 = vadd.f32 %v2586_v49, %v2354_v32 }
 0x2c5   : > { %v2033_v62 = vpop.f32.mrf.mxu2  ;;  %v2311_v46 = vpop.f32.mrf.mxu3 }
 0x2c6   : > { %v2077_v24 = vadd.f32 %v2033_v62, %v1798_v34  ;;  %v2679_v34 = vsel %vm2639_vm2, %v2632_v10, -inf  ;;  %v1766_v22 = vpop.f32.mrf.mxu1 }
 0x2c8   : > { %v2355_v19 = vadd.f32 %v2311_v46, %v2077_v24 }
 0x2c9   : > { %v2592_v56 = vpop.f32.mrf.mxu0 }
 0x2ca   : > { %v2633_v40 = vadd.f32 %v2589_v9, %v2355_v19 }
 0x2cc   : > { %v2677_v14 = vsel %vm2639_vm2, %v2633_v40, -inf  ;;  %v1800_v40 = vadd.f32 %v1760_v41, %v4454_v59 }
 0x2cd   : > { %v2678_v47 = vmax.f32 %v2676_v38, %v2677_v14  ;;  %v2036_v45 = vpop.f32.mrf.mxu2  ;;  %v2314_v1 = vpop.f32.mrf.mxu3  ;;  %v4964_v38 = vld [vmem:[#allocation7_spill] sm:$0xff] }
 0x2ce   : > { %v2078_v35 = vadd.f32 %v2036_v45, %v1799_v27  ;;  %v4963_v27 = vld [vmem:[#allocation26_spill] sm:$0xff]  ;;  %v1801_v32 = vadd.f32 %v1763_v3, %v4964_v38  ;;  %v1769_v10 = vpop.f32.mrf.mxu1 }
 0x2cf   : > { %v1802_v49 = vadd.f32 %v1766_v22, %v4963_v27 }
 0x2d0   : > { %v2356_v7 = vadd.f32 %v2314_v1, %v2078_v35 }
 0x2d1   : > { %v2595_v61 = vpop.f32.mrf.mxu0 }
 0x2d2   : > { %v2634_v48 = vadd.f32 %v2592_v56, %v2356_v7 }
 0x2d4   : > { %v2680_v9 = vsel %vm2639_vm2, %v2634_v48, -inf  ;;  %v1803_v48 = vadd.f32 %v1769_v10, %v4497_v39  ;;  %v4965_v39 = vmax.f32 %v4604_v26, %v4607_v13  ;;  %v2689_v26 = vld [vmem:[%s4873_s3 + $0x8] sm:$0xff]  ;;  %v2696_v13 = vld [vmem:[%s4873_s3 + $0x40] sm:$0xff] }
 0x2d5   : > { %v2681_v43 = vmax.f32 %v2679_v34, %v2680_v9  ;;  %v2039_v51 = vpop.f32.mrf.mxu2  ;;  %v2317_v2 = vpop.f32.mrf.mxu3 }
 0x2d6   : > { %v2079_v24 = vadd.f32 %v2039_v51, %v1800_v40 }
 0x2d8   : > { %v2357_v37 = vadd.f32 %v2317_v2, %v2079_v24 }
 0x2d9   : > { %v2598_v62 = vpop.f32.mrf.mxu0 }
 0x2da   : > { %v2635_v45 = vadd.f32 %v2595_v61, %v2357_v37 }
 0x2dc   : > { %v2682_v59 = vsel %vm2639_vm2, %v2635_v45, -inf }
 0x2dd   : > { %v2042_v54 = vpop.f32.mrf.mxu2  ;;  %v2320_v46 = vpop.f32.mrf.mxu3 }
 0x2de   : > { %v2080_v1 = vadd.f32 %v2042_v54, %v1801_v32 }
 0x2e0   : > { %v2358_v41 = vadd.f32 %v2320_v46, %v2080_v1 }
 0x2e1   : > { %v2601_v20 = vpop.f32.mrf.mxu0 }
 0x2e2   : > { %v2636_v24 = vadd.f32 %v2598_v62, %v2358_v41 }
 0x2e4   : > { %v2685_v61 = vsel %vm2639_vm2, %v2636_v24, -inf }
 0x2e5   : > { %v2045_v56 = vpop.f32.mrf.mxu2  ;;  %v2323_v19 = vpop.f32.mrf.mxu3 }
 0x2e6   : > { %v2081_v14 = vadd.f32 %v2045_v56, %v1802_v49 }
 0x2e8   : > { %v2359_v35 = vadd.f32 %v2323_v19, %v2081_v14 }
 0x2e9   : > { %v2604_v22 = vpop.f32.mrf.mxu0 }
 0x2ea   : > { %v2637_v7 = vadd.f32 %v2601_v20, %v2359_v35 }
 0x2ec   : > { %v2683_v34 = vsel %vm2639_vm2, %v2637_v7, -inf }
 0x2ed   : > { %v2684_v9 = vmax.f32 %v2682_v59, %v2683_v34  ;;  %v2048_v51 = vpop.f32.mrf.mxu2  ;;  %v2326_v2 = vpop.f32.mrf.mxu3 }
 0x2ee   : > { %v2082_v40 = vadd.f32 %v2048_v51, %v1803_v48 }
 0x2f0   : > { %v2360_v3 = vadd.f32 %v2326_v2, %v2082_v40 }
 0x2f2   : > { %v2638_v27 = vadd.f32 %v2604_v22, %v2360_v3 }
 0x2f4   : > { %v2686_v54 = vsel %vm2639_vm2, %v2638_v27, -inf }
 0x2f5   : > { %v2687_v49 = vmax.f32 %v2685_v61, %v2686_v54 }
 0x2f7   : > { %2704 = vmatpush.msra.mxu1 %v2687_v49 }
 0x2f9   : > { %2705 = vmatpush.msra.mxu1 %v2684_v9 }
 0x2fb   : > { %2706 = vmatpush.msra.mxu1 %v2681_v43 }
 0x2fd   : > { %2707 = vmatpush.msra.mxu1 %v2678_v47 }
 0x2ff   : > { %2708 = vmatpush.msra.mxu1 %v2675_v29 }
 0x301   : > { %2709 = vmatpush.msra.mxu1 %v2672_v60 }
 0x303   : > { %2710 = vmatpush.msra.mxu1 %v2669_v5 }
 0x305   : > { %2711 = vmatpush.msra.mxu1 %v2666_v58 }
 0x307   : > { %2712 = vmatpush.msra.mxu1 %v2663_v52 }
 0x309   : > { %2713 = vmatpush.msra.mxu1 %v2660_v28  ;;  %v2702_v28 = vld [vmem:[%s4873_s3 + $0x70] sm:$0xff] }
 0x30b   : > { %2714 = vmatpush.msra.mxu1 %v2657_v0  ;;  %v2700_v0 = vld [vmem:[%s4873_s3 + $0x60] sm:$0xff] }
 0x30d   : > { %2715 = vmatpush.msra.mxu1 %v2654_v21  ;;  %v2698_v21 = vld [vmem:[%s4873_s3 + $0x50] sm:$0xff] }
 0x30f   : > { %2716 = vmatpush.msra.mxu1 %v4965_v39 }
 0x311   : > { %2717 = vmatpush.msra.mxu1 %v4966_v17 }
 0x313   : > { %2718 = vmatpush.msra.mxu1 %v4967_v33 }
 0x315   : > { %2719 = vmatpush.msra.mxu1 %v4968_v36 }
 0x316   : > { %2720 = vmatmul.f32.vlgmr.msra.gmra.mxu1 %v2688_v25 }
 0x31e   : > { %2723 = vmatmul.f32.gmra.mxu1 %v2689_v26 }
 0x326   : > { %2726 = vmatmul.f32.gmra.mxu1 %v2690_v57 }
 0x32e   : > { %2729 = vmatmul.f32.gmra.mxu1 %v2691_v30 }
 0x336   : > { %2732 = vmatmul.f32.gmra.mxu1 %v2692_v63 }
 0x33e   : > { %2735 = vmatmul.f32.gmra.mxu1 %v2693_v31 }
 0x346   : > { %2738 = vmatmul.f32.gmra.mxu1 %v2694_v42 }
 0x34e   : > { %2741 = vmatmul.f32.gmra.mxu1 %v2695_v23 }
 0x356   : > { %2744 = vmatmul.f32.gmra.mxu1 %v2696_v13 }
 0x35e   : > { %2747 = vmatmul.f32.gmra.mxu1 %v2697_v11 }
 0x366   : > { %2750 = vmatmul.f32.gmra.mxu1 %v2698_v21 }
 0x36e   : > { %2753 = vmatmul.f32.gmra.mxu1 %v2699_v50 }
 0x376   : > { %2756 = vmatmul.f32.gmra.mxu1 %v2700_v0 }
 0x37e   : > { %2759 = vmatmul.f32.gmra.mxu1 %v2701_v12 }
 0x386   : > { %2762 = vmatmul.f32.gmra.mxu1 %v2702_v28 }
 0x38e   : > { %2765 = vmatmul.f32.gmra.mxu1 %v2703_v53 }
 0x393   : > { %v2721_v52 = vpop.f32.mrf.mxu1 }
 0x39b   : > { %v2724_v44 = vpop.f32.mrf.mxu1 }
 0x3a3   : > { %v2727_v4 = vpop.f32.mrf.mxu1 }
 0x3ab   : > { %v2730_v58 = vpop.f32.mrf.mxu1 }
 0x3b3   : > { %v2733_v8 = vpop.f32.mrf.mxu1 }
 0x3bb   : > { %v2736_v55 = vpop.f32.mrf.mxu1 }
 0x3c3   : > { %v2739_v5 = vpop.f32.mrf.mxu1 }
 0x3cb   : > { %v2742_v15 = vpop.f32.mrf.mxu1 }
 0x3d3   : > { %v2745_v60 = vpop.f32.mrf.mxu1 }
 0x3d4   : > { %v2769_v6 = vmax.f32 %v2721_v52, %v2745_v60 }
 0x3d6   : > { %v2781_v16 = vadd.f32 %v3380_v18, %v2769_v6 }
 0x3d8   : > { %v2789_v29 = vmax.f32 %v2781_v16, 0.0 }
 0x3da   : > { %2797 = vst.msk [vmem:[%s4849_s28] sm:$0xff] %vm2639_vm2, %v2789_v29 }
 0x3db   : > { %v2748_v47 = vpop.f32.mrf.mxu1 }
 0x3dc   : > { %v2770_v43 = vmax.f32 %v2724_v44, %v2748_v47 }
 0x3de   : > { %v2782_v62 = vadd.f32 %v3380_v18, %v2770_v43 }
 0x3e0   : > { %v2790_v46 = vmax.f32 %v2782_v62, 0.0 }
 0x3e2   : > { %2798 = vst.msk [vmem:[%s4849_s28 + $0x8] sm:$0xff] %vm2639_vm2, %v2790_v46 }
 0x3e3   : > { %v2751_v37 = vpop.f32.mrf.mxu1 }
 0x3e4   : > { %v2771_v20 = vmax.f32 %v2727_v4, %v2751_v37 }
 0x3e6   : > { %v2783_v56 = vadd.f32 %v3380_v18, %v2771_v20 }
 0x3e8   : > { %v2791_v19 = vmax.f32 %v2783_v56, 0.0 }
 0x3ea   : > { %2799 = vst.msk [vmem:[%s4849_s28 + $0x10] sm:$0xff] %vm2639_vm2, %v2791_v19 }
 0x3eb   : > { %v2754_v38 = vpop.f32.mrf.mxu1 }
 0x3ec   : > { %v2772_v32 = vmax.f32 %v2730_v58, %v2754_v38 }
 0x3ee   : > { %v2784_v14 = vadd.f32 %v3380_v18, %v2772_v32 }
 0x3f0   : > { %v2792_v45 = vmax.f32 %v2784_v14, 0.0 }
 0x3f2   : > { %2800 = vst.msk [vmem:[%s4849_s28 + $0x18] sm:$0xff] %vm2639_vm2, %v2792_v45 }
 0x3f3   : > { %v2757_v1 = vpop.f32.mrf.mxu1 }
 0x3f4   : > { %v2773_v35 = vmax.f32 %v2733_v8, %v2757_v1 }
 0x3f6   : > { %v2785_v10 = vadd.f32 %v3380_v18, %v2773_v35 }
 0x3f8   : > { %v2793_v7 = vmax.f32 %v2785_v10, 0.0 }
 0x3fa   : > { %2801 = vst.msk [vmem:[%s4849_s28 + $0x20] sm:$0xff] %vm2639_vm2, %v2793_v7 }
 0x3fb   : > { %v2760_v48 = vpop.f32.mrf.mxu1 }
 0x3fc   : > { %v2774_v59 = vmax.f32 %v2736_v55, %v2760_v48 }
 0x3fe   : > { %v2786_v41 = vadd.f32 %v3380_v18, %v2774_v59 }
 0x400   : > { %v2794_v34 = vmax.f32 %v2786_v41, 0.0 }
 0x402   : > { %2802 = vst.msk [vmem:[%s4849_s28 + $0x28] sm:$0xff] %vm2639_vm2, %v2794_v34 }
 0x403   : > { %v2763_v9 = vpop.f32.mrf.mxu1 }
 0x404   : > { %v2775_v51 = vmax.f32 %v2739_v5, %v2763_v9 }
 0x406   : > { %v2787_v2 = vadd.f32 %v3380_v18, %v2775_v51 }
 0x408   : > { %v2795_v40 = vmax.f32 %v2787_v2, 0.0 }
 0x40a   : > { %2803 = vst.msk [vmem:[%s4849_s28 + $0x30] sm:$0xff] %vm2639_vm2, %v2795_v40 }
 0x40b   : > { %v2766_v22 = vpop.f32.mrf.mxu1 }
 0x40c   : > { %v2776_v24 = vmax.f32 %v2742_v15, %v2766_v22 }
 0x40e   : > { %v2788_v3 = vadd.f32 %v3380_v18, %v2776_v24 }
 0x410   : > { %v2796_v27 = vmax.f32 %v2788_v3, 0.0 }
 0x412   : > { %2804 = vst.msk [vmem:[%s4849_s28 + $0x38] sm:$0xff] %vm2639_vm2, %v2796_v27 }
 0x413 PF: > { %s14_s15 = sadd.s32 1, %s3387_s15  }
 0x414   : > { %p11_p4 = scmp.ge.s32.totalorder %s14_s15, 4  }
 0x416   :  { %13 = sbr.rel (!%p11_p4) target bundleno = 1 (0x1), region = 76 }

</bundles_post_ra>
